<compile_context>
chip_gen: v7x
topology: tpu7x:2x2x1
jax: 0.10.0
libtpu: 0.0.40
codegen_flags: <defaults>
</compile_context>

<pallas_src>
import functools
import math

import jax
import jax.numpy as jnp
import numpy as np
from jax import lax
from jax.experimental import pallas as pl
from jax.experimental.pallas import tpu as pltpu

LN_EPS = 1e-5
HEAD_NAMES = ("crysystem", "blt", "spg", "composition")
HEAD_SIZES = {"crysystem": 7, "blt": 7, "spg": 230, "composition": 118}


# ------------------------------ in-kernel math ------------------------------ #

def _layernorm(x, w, b):
    # PyTorch nn.LayerNorm: biased variance, eps inside rsqrt.
    mean = jnp.mean(x, axis=-1, keepdims=True)
    var = jnp.mean((x - mean) ** 2, axis=-1, keepdims=True)
    return (x - mean) * lax.rsqrt(var + LN_EPS) * w + b


def _erf(x):
    # Abramowitz & Stegun 7.1.26 rational approximation (|err| <= 1.5e-7),
    # built only from ops guaranteed to lower in Mosaic (abs/exp/mul/add/where).
    p = 0.3275911
    a1, a2, a3, a4, a5 = (0.254829592, -0.284496736, 1.421413741,
                          -1.453152027, 1.061405429)
    ax = jnp.abs(x)
    t = 1.0 / (1.0 + p * ax)
    poly = ((((a5 * t + a4) * t + a3) * t + a2) * t + a1) * t
    y = 1.0 - poly * jnp.exp(-ax * ax)
    return jnp.where(x >= 0, y, -y)


def _gelu(x):
    # exact (erf-based) GELU, matching torch.nn.GELU() default
    return 0.5 * x * (1.0 + _erf(x * (1.0 / math.sqrt(2.0))))


# -------------------------- fused Transformer kernel ------------------------ #

def transformer_kernel(x_ref, ln1_w, ln1_b, wqkv_ref, wout_ref, bout_ref,
                       ln2_w, ln2_b, w1_ref, b1_ref, w2_ref, b2_ref,
                       y_ref, x_vmem, *, heads, dim_head):
    layer = pl.program_id(1)                 # depth axis (innermost, "arbitrary")

    @pl.when(layer == 0)
    def _():                                 # load residual stream once per batch block
        x_vmem[...] = x_ref[...].astype(jnp.float32)

    bb, n_tok, d = x_vmem.shape
    rows = bb * n_tok                        # n_tok % 8 == 0 -> layout-free reshape
    inner = heads * dim_head
    scale = dim_head ** (-0.5)

    x2 = x_vmem[...].reshape(rows, d)

    # ---- attention: x += b_out + sum_h softmax(q_h k_h^T * s) v_h @ Wout_h ---- #
    xn = _layernorm(x2, ln1_w[...], ln1_b[...])
    qkv = jnp.dot(xn.astype(jnp.bfloat16), wqkv_ref[...],
                  preferred_element_type=jnp.float32)          # (rows, 3*inner)
    qkv = qkv.reshape(bb, n_tok, 3 * inner)

    wout = wout_ref[...]                                        # (inner, d) bf16
    attn_out = jnp.zeros((rows, d), jnp.float32)
    for h in range(heads):                   # static loop; matmuls batched over batch
        lo = h * dim_head
        qh = qkv[:, :, lo:lo + dim_head].astype(jnp.bfloat16)
        kh = qkv[:, :, inner + lo:inner + lo + dim_head].astype(jnp.bfloat16)
        vh = qkv[:, :, 2 * inner + lo:2 * inner + lo + dim_head].astype(jnp.bfloat16)

        dots = jnp.einsum("bnd,bmd->bnm", qh, kh,
                          preferred_element_type=jnp.float32) * scale
        dots = dots - jnp.max(dots, axis=-1, keepdims=True)
        e = jnp.exp(dots)
        p = e * pl.reciprocal(jnp.sum(e, axis=-1, keepdims=True), approx=True)
        oh = jnp.einsum("bnm,bmd->bnd", p.astype(jnp.bfloat16), vh,
                        preferred_element_type=jnp.float32)     # (bb, n, dh)
        # fold heads into the output projection (no lane-axis concatenate)
        attn_out = attn_out + jnp.dot(
            oh.reshape(rows, dim_head).astype(jnp.bfloat16),
            wout[lo:lo + dim_head, :],
            preferred_element_type=jnp.float32)
    x2 = x2 + attn_out + bout_ref[...]

    # ---- feed-forward: x += W2 gelu(W1 ln(x) + b1) + b2 ---- #
    xn = _layernorm(x2, ln2_w[...], ln2_b[...])
    h1 = jnp.dot(xn.astype(jnp.bfloat16), w1_ref[...],
                 preferred_element_type=jnp.float32) + b1_ref[...]
    h1 = _gelu(h1)
    x2 = x2 + jnp.dot(h1.astype(jnp.bfloat16), w2_ref[...],
                      preferred_element_type=jnp.float32) + b2_ref[...]

    x_vmem[...] = x2.reshape(bb, n_tok, d)

    @pl.when(layer == pl.num_programs(1) - 1)
    def _():
        y_ref[...] = x_vmem[...].astype(y_ref.dtype)


def transformer_call(x, tp, *, heads, dim_head, batch_block=None):
    B, n_tok, d = x.shape
    depth = tp["w_qkv"].shape[0]
    inner = tp["w_qkv"].shape[-1] // 3
    mlp_dim = tp["w1"].shape[-1]
    assert inner == heads * dim_head
    assert n_tok % 8 == 0, "token count must be sublane-aligned for the free reshape"

    # Whole batch in one block by default (best on single-TC v5e/v6e).
    # On v7x pass batch_block = B // 2 so the "parallel" axis spans both TensorCores.
    bb = B if batch_block is None else batch_block
    assert B % bb == 0
    nb = B // bb

    def wspec(*shape):
        # one layer's slice of a (depth, ...) stacked parameter
        return pl.BlockSpec((None,) + shape, lambda b, l: (l,) + (0,) * len(shape))

    kernel = functools.partial(transformer_kernel, heads=heads, dim_head=dim_head)
    # TODO(synk): at real ViT sizes on v7x, tile W1/W2 over mlp_dim (or mark the
    # weight specs pipeline_mode=pl.Buffered(1)) and raise vmem_limit_bytes on v6e.
    return pl.pallas_call(
        kernel,
        out_shape=jax.ShapeDtypeStruct((B, n_tok, d), x.dtype),
        grid=(nb, depth),
        in_specs=[
            pl.BlockSpec((bb, n_tok, d), lambda b, l: (b, 0, 0)),  # x (fetched once)
            wspec(1, d),            # ln1 weight
            wspec(1, d),            # ln1 bias
            wspec(d, 3 * inner),    # W_qkv (bf16)
            wspec(inner, d),        # W_out (bf16)
            wspec(1, d),            # b_out
            wspec(1, d),            # ln2 weight
            wspec(1, d),            # ln2 bias
            wspec(d, mlp_dim),      # W1 (bf16)
            wspec(1, mlp_dim),      # b1
            wspec(mlp_dim, d),      # W2 (bf16)
            wspec(1, d),            # b2
        ],
        out_specs=pl.BlockSpec((bb, n_tok, d), lambda b, l: (b, 0, 0)),
        scratch_shapes=[pltpu.VMEM((bb, n_tok, d), jnp.float32)],  # residual carry
        compiler_params=pltpu.CompilerParams(
            dimension_semantics=("parallel", "arbitrary")),
    )(x, tp["ln1_w"], tp["ln1_b"], tp["w_qkv"], tp["w_out"], tp["b_out"],
      tp["ln2_w"], tp["ln2_b"], tp["w1"], tp["b1"], tp["w2"], tp["b2"])


# ----------------------- patch-embedding & head kernels --------------------- #

def embed_kernel(p_ref, ln1_w, ln1_b, w_ref, b_ref, ln2_w, ln2_b, o_ref):
    # LN(patch_dim) -> Linear(patch_dim, dim) -> LN(dim) on flattened patches
    t = _layernorm(p_ref[...], ln1_w[...], ln1_b[...])
    t = jnp.dot(t, w_ref[...], preferred_element_type=jnp.float32) + b_ref[...]
    o_ref[...] = _layernorm(t, ln2_w[...], ln2_b[...]).astype(o_ref.dtype)


def embed_call(patches, ep):
    rows = patches.shape[0]
    d = ep["w"].shape[1]
    return pl.pallas_call(
        embed_kernel,
        out_shape=jax.ShapeDtypeStruct((rows, d), jnp.float32),
    )(patches, ep["ln1_w"], ep["ln1_b"], ep["w"], ep["b"],
      ep["ln2_w"], ep["ln2_b"])


def heads_kernel(x_ref, *refs):
    n_heads = len(HEAD_NAMES)
    param_refs, out_refs = refs[:-n_heads], refs[-n_heads:]
    x = x_ref[...]
    # The four heads apply separate LayerNorms to the same input -> normalization
    # statistics are identical; only the affine parameters differ.
    mean = jnp.mean(x, axis=-1, keepdims=True)
    var = jnp.mean((x - mean) ** 2, axis=-1, keepdims=True)
    xhat = (x - mean) * lax.rsqrt(var + LN_EPS)
    for i, o_ref in enumerate(out_refs):
        ln_w, ln_b, w, b = param_refs[4 * i:4 * i + 4]
        h = xhat * ln_w[...] + ln_b[...]
        o_ref[...] = (jnp.dot(h, w[...], preferred_element_type=jnp.float32)
                      + b[...]).astype(o_ref.dtype)


def heads_call(cls_vec, hp):
    B = cls_vec.shape[0]
    args = [cls_vec]
    out_shapes = []
    for nm in HEAD_NAMES:
        p = hp[nm]
        args.extend([p["ln_w"], p["ln_b"], p["w"], p["b"]])
        out_shapes.append(jax.ShapeDtypeStruct((B, p["w"].shape[1]), jnp.float32))
    outs = pl.pallas_call(heads_kernel, out_shape=tuple(out_shapes))(*args)
    return dict(zip(HEAD_NAMES, outs))


# --------------------------------- full model ------------------------------- #

def vit_forward(series, params, cfg):
    B = series.shape[0]
    n = (cfg["seq_len"] - 1) // cfg["patch_size"]
    p_sz, C, D = cfg["patch_size"], cfg["channels"], cfg["dim"]

    # series[:, :, :n*p] ; einops Rearrange('b c (n p) -> b n (p c)')
    s = series[:, :, : n * p_sz]
    patches = s.reshape(B, C, n, p_sz).transpose(0, 2, 3, 1).reshape(B * n, p_sz * C)

    emb = embed_call(patches, params["embed"]).reshape(B, n, D)

    cls = jnp.broadcast_to(params["cls_token"][None, None, :], (B, 1, D))
    x = jnp.concatenate([cls, emb], axis=1) + params["pos_embedding"][:, : n + 1]
    # emb_dropout / dropout: eval-mode identity.

    x = transformer_call(x, params["transformer"],
                         heads=cfg["heads"], dim_head=cfg["dim_head"])

    return heads_call(x[:, 0, :], params["heads"])


# ---------------------- deterministic parameter initialization -------------- #

def init_params(key, cfg):
    n_patches = (cfg["seq_len"] - 1) // cfg["patch_size"]
    patch_dim = cfg["channels"] * cfg["patch_size"]
    dim, depth = cfg["dim"], cfg["depth"]
    heads, dh, mlp = cfg["heads"], cfg["dim_head"], cfg["mlp_dim"]
    inner = heads * dh

    keys = iter(jax.random.split(key, 128))

    def nrm(shape, s=1.0):
        return jax.random.normal(next(keys), shape, jnp.float32) * s

    def dense(fan_in, fan_out, dtype=jnp.float32):
        return nrm((fan_in, fan_out), 1.0 / math.sqrt(fan_in)).astype(dtype)

    def ln_pair(n):
        return 1.0 + nrm((1, n), 0.1), nrm((1, n), 0.05)

    e1w, e1b = ln_pair(patch_dim)
    e2w, e2b = ln_pair(dim)
    embed = {"ln1_w": e1w, "ln1_b": e1b,
             "w": dense(patch_dim, dim), "b": nrm((1, dim), 0.02),
             "ln2_w": e2w, "ln2_b": e2b}

    stacks = {k: [] for k in ("ln1_w", "ln1_b", "w_qkv", "w_out", "b_out",
                              "ln2_w", "ln2_b", "w1", "b1", "w2", "b2")}
    for _ in range(depth):
        lw, lb = ln_pair(dim)
        stacks["ln1_w"].append(lw); stacks["ln1_b"].append(lb)
        stacks["w_qkv"].append(dense(dim, 3 * inner, jnp.bfloat16))
        stacks["w_out"].append(dense(inner, dim, jnp.bfloat16))
        stacks["b_out"].append(nrm((1, dim), 0.02))
        lw, lb = ln_pair(dim)
        stacks["ln2_w"].append(lw); stacks["ln2_b"].append(lb)
        stacks["w1"].append(dense(dim, mlp, jnp.bfloat16))
        stacks["b1"].append(nrm((1, mlp), 0.02))
        stacks["w2"].append(dense(mlp, dim, jnp.bfloat16))
        stacks["b2"].append(nrm((1, dim), 0.02))
    transformer = {k: jnp.stack(v) for k, v in stacks.items()}

    heads_p = {}
    for nm in HEAD_NAMES:
        lw, lb = ln_pair(dim)
        heads_p[nm] = {"ln_w": lw, "ln_b": lb,
                       "w": dense(dim, HEAD_SIZES[nm]),
                       "b": nrm((1, HEAD_SIZES[nm]), 0.02)}

    return {"embed": embed,
            "cls_token": nrm((dim,)),
            "pos_embedding": nrm((1, n_patches + 1, dim)),
            "transformer": transformer,
            "heads": heads_p}


# ------------------------------ pure-JAX reference --------------------------- #

def reference_forward(series, params, cfg):
    B = series.shape[0]
    n = (cfg["seq_len"] - 1) // cfg["patch_size"]
    p_sz, C, D = cfg["patch_size"], cfg["channels"], cfg["dim"]
    heads, dh, depth = cfg["heads"], cfg["dim_head"], cfg["depth"]
    inner = heads * dh

    def ln(x, w, b):
        m = jnp.mean(x, axis=-1, keepdims=True)
        v = jnp.mean((x - m) ** 2, axis=-1, keepdims=True)
        return (x - m) * lax.rsqrt(v + LN_EPS) * w + b

    s = series[:, :, : n * p_sz]
    patches = s.reshape(B, C, n, p_sz).transpose(0, 2, 3, 1).reshape(B, n, p_sz * C)

    e = params["embed"]
    t = ln(patches, e["ln1_w"], e["ln1_b"])
    t = t @ e["w"] + e["b"]
    t = ln(t, e["ln2_w"], e["ln2_b"])

    cls = jnp.broadcast_to(params["cls_token"][None, None, :], (B, 1, D))
    x = jnp.concatenate([cls, t], axis=1) + params["pos_embedding"][:, : n + 1]

    tp = params["transformer"]
    for i in range(depth):
        wqkv = tp["w_qkv"][i].astype(jnp.float32)
        wout = tp["w_out"][i].astype(jnp.float32)
        w1 = tp["w1"][i].astype(jnp.float32)
        w2 = tp["w2"][i].astype(jnp.float32)

        xn = ln(x, tp["ln1_w"][i], tp["ln1_b"][i])
        qkv = xn @ wqkv
        q, k, v = jnp.split(qkv, 3, axis=-1)
        to_heads = lambda a: a.reshape(B, -1, heads, dh).transpose(0, 2, 1, 3)
        q, k, v = map(to_heads, (q, k, v))
        dots = jnp.einsum("bhnd,bhmd->bhnm", q, k) * dh ** (-0.5)
        attn = jax.nn.softmax(dots, axis=-1)
        o = jnp.einsum("bhnm,bhmd->bhnd", attn, v)
        o = o.transpose(0, 2, 1, 3).reshape(B, -1, inner)
        x = o @ wout + tp["b_out"][i] + x

        xn = ln(x, tp["ln2_w"][i], tp["ln2_b"][i])
        h = xn @ w1 + tp["b1"][i]
        h = 0.5 * h * (1.0 + lax.erf(h / math.sqrt(2.0)))
        x = h @ w2 + tp["b2"][i] + x

    cls_out = x[:, 0, :]
    outs = {}
    for nm in HEAD_NAMES:
        hp = params["heads"][nm]
        outs[nm] = ln(cls_out, hp["ln_w"], hp["ln_b"]) @ hp["w"] + hp["b"]
    return outs


# ------------------------------------ main ----------------------------------- #

if __name__ == "__main__":
    # Small config consistent with the module (dim / dim_head match the defaults;
    # seq_len chosen so num_patches+1 = 8 tokens).
    cfg = dict(seq_len=141, patch_size=20, channels=1, dim=128,
               depth=2, heads=4, dim_head=32, mlp_dim=256)
    B = 2

    key = jax.random.PRNGKey(0)
    k_series, k_params = jax.random.split(key)
    series = jax.random.normal(k_series, (B, cfg["channels"], cfg["seq_len"]),
                               jnp.float32)
    params = init_params(k_params, cfg)

    fwd = jax.jit(functools.partial(vit_forward, cfg=cfg))
    out = jax.block_until_ready(fwd(series, params))

    ref = reference_forward(series, params, cfg)
    for name in HEAD_NAMES:
        # loosened tolerance: kernel casts matmul operands to bf16 (f32 accumulation)
        np.testing.assert_allclose(np.asarray(out[name]), np.asarray(ref[name]),
                                   rtol=5e-2, atol=5e-2)

    print("KERNEL_OK")
</pallas_src>

<mosaic_0001>
module attributes {stable_mosaic.version = 11 : i64} {
  func.func @embed_kernel(%arg0: memref<14x20xf32, #tpu.memory_space<vmem>>, %arg1: memref<1x20xf32, #tpu.memory_space<vmem>>, %arg2: memref<1x20xf32, #tpu.memory_space<vmem>>, %arg3: memref<20x128xf32, #tpu.memory_space<vmem>>, %arg4: memref<1x128xf32, #tpu.memory_space<vmem>>, %arg5: memref<1x128xf32, #tpu.memory_space<vmem>>, %arg6: memref<1x128xf32, #tpu.memory_space<vmem>>, %arg7: memref<14x128xf32, #tpu.memory_space<vmem>>) attributes {dimension_semantics = [], scalar_prefetch = 0 : i64, scratch_operands = 0 : i64, tpu.core_type = #tpu.core_type<tc>} {
    %c0 = arith.constant 0 : index
    %c0_0 = arith.constant 0 : index
    %0 = vector.load %arg0[%c0, %c0_0] : memref<14x20xf32, #tpu.memory_space<vmem>>, vector<14x20xf32>
    %c0_1 = arith.constant 0 : index
    %c0_2 = arith.constant 0 : index
    %1 = vector.load %arg1[%c0_1, %c0_2] : memref<1x20xf32, #tpu.memory_space<vmem>>, vector<1x20xf32>
    %c0_3 = arith.constant 0 : index
    %c0_4 = arith.constant 0 : index
    %2 = vector.load %arg2[%c0_3, %c0_4] : memref<1x20xf32, #tpu.memory_space<vmem>>, vector<1x20xf32>
    %cst = arith.constant dense<0.000000e+00> : vector<14xf32>
    %3 = vector.multi_reduction <add>, %0, %cst [1] : vector<14x20xf32> to vector<14xf32>
    %4 = vector.shape_cast %3 : vector<14xf32> to vector<14x1xf32>
    %cst_5 = arith.constant 2.000000e+01 : f32
    %5 = vector.broadcast %cst_5 : f32 to vector<14x1xf32>
    %6 = arith.divf %4, %5 : vector<14x1xf32>
    %7 = vector.broadcast %6 : vector<14x1xf32> to vector<14x20xf32>
    %8 = arith.subf %0, %7 : vector<14x20xf32>
    %9 = arith.mulf %8, %8 : vector<14x20xf32>
    %cst_6 = arith.constant dense<0.000000e+00> : vector<14xf32>
    %10 = vector.multi_reduction <add>, %9, %cst_6 [1] : vector<14x20xf32> to vector<14xf32>
    %11 = vector.shape_cast %10 : vector<14xf32> to vector<14x1xf32>
    %cst_7 = arith.constant 2.000000e+01 : f32
    %12 = vector.broadcast %cst_7 : f32 to vector<14x1xf32>
    %13 = arith.divf %11, %12 : vector<14x1xf32>
    %14 = vector.broadcast %6 : vector<14x1xf32> to vector<14x20xf32>
    %15 = arith.subf %0, %14 : vector<14x20xf32>
    %cst_8 = arith.constant 9.99999974E-6 : f32
    %16 = vector.broadcast %cst_8 : f32 to vector<14x1xf32>
    %17 = arith.addf %13, %16 : vector<14x1xf32>
    %18 = math.rsqrt %17 : vector<14x1xf32>
    %19 = vector.broadcast %18 : vector<14x1xf32> to vector<14x20xf32>
    %20 = arith.mulf %15, %19 : vector<14x20xf32>
    %21 = vector.broadcast %1 : vector<1x20xf32> to vector<14x20xf32>
    %22 = arith.mulf %20, %21 : vector<14x20xf32>
    %23 = vector.broadcast %2 : vector<1x20xf32> to vector<14x20xf32>
    %24 = arith.addf %22, %23 : vector<14x20xf32>
    %c0_9 = arith.constant 0 : index
    %c0_10 = arith.constant 0 : index
    %25 = vector.load %arg3[%c0_9, %c0_10] : memref<20x128xf32, #tpu.memory_space<vmem>>, vector<20x128xf32>
    %cst_11 = arith.constant dense<0.000000e+00> : vector<14x128xf32>
    %26 = tpu.matmul %24, %25, %cst_11 {dimension_numbers = #tpu.dot_dimension_numbers<[1], [0], [0], [1], [0, 0, 1, 1], [], []>} : vector<14x20xf32>, vector<20x128xf32>, vector<14x128xf32> -> vector<14x128xf32>
    %c0_12 = arith.constant 0 : index
    %c0_13 = arith.constant 0 : index
    %27 = vector.load %arg4[%c0_12, %c0_13] : memref<1x128xf32, #tpu.memory_space<vmem>>, vector<1x128xf32>
    %28 = vector.broadcast %27 : vector<1x128xf32> to vector<14x128xf32>
    %29 = arith.addf %26, %28 : vector<14x128xf32>
    %c0_14 = arith.constant 0 : index
    %c0_15 = arith.constant 0 : index
    %30 = vector.load %arg5[%c0_14, %c0_15] : memref<1x128xf32, #tpu.memory_space<vmem>>, vector<1x128xf32>
    %c0_16 = arith.constant 0 : index
    %c0_17 = arith.constant 0 : index
    %31 = vector.load %arg6[%c0_16, %c0_17] : memref<1x128xf32, #tpu.memory_space<vmem>>, vector<1x128xf32>
    %cst_18 = arith.constant dense<0.000000e+00> : vector<14xf32>
    %32 = vector.multi_reduction <add>, %29, %cst_18 [1] : vector<14x128xf32> to vector<14xf32>
    %33 = vector.shape_cast %32 : vector<14xf32> to vector<14x1xf32>
    %cst_19 = arith.constant 1.280000e+02 : f32
    %34 = vector.broadcast %cst_19 : f32 to vector<14x1xf32>
    %35 = arith.divf %33, %34 : vector<14x1xf32>
    %36 = vector.broadcast %35 : vector<14x1xf32> to vector<14x128xf32>
    %37 = arith.subf %29, %36 : vector<14x128xf32>
    %38 = arith.mulf %37, %37 : vector<14x128xf32>
    %cst_20 = arith.constant dense<0.000000e+00> : vector<14xf32>
    %39 = vector.multi_reduction <add>, %38, %cst_20 [1] : vector<14x128xf32> to vector<14xf32>
    %40 = vector.shape_cast %39 : vector<14xf32> to vector<14x1xf32>
    %cst_21 = arith.constant 1.280000e+02 : f32
    %41 = vector.broadcast %cst_21 : f32 to vector<14x1xf32>
    %42 = arith.divf %40, %41 : vector<14x1xf32>
    %43 = vector.broadcast %35 : vector<14x1xf32> to vector<14x128xf32>
    %44 = arith.subf %29, %43 : vector<14x128xf32>
    %cst_22 = arith.constant 9.99999974E-6 : f32
    %45 = vector.broadcast %cst_22 : f32 to vector<14x1xf32>
    %46 = arith.addf %42, %45 : vector<14x1xf32>
    %47 = math.rsqrt %46 : vector<14x1xf32>
    %48 = vector.broadcast %47 : vector<14x1xf32> to vector<14x128xf32>
    %49 = arith.mulf %44, %48 : vector<14x128xf32>
    %50 = vector.broadcast %30 : vector<1x128xf32> to vector<14x128xf32>
    %51 = arith.mulf %49, %50 : vector<14x128xf32>
    %52 = vector.broadcast %31 : vector<1x128xf32> to vector<14x128xf32>
    %53 = arith.addf %51, %52 : vector<14x128xf32>
    %c0_23 = arith.constant 0 : index
    %c0_24 = arith.constant 0 : index
    %54 = vector.load %arg7[%c0_23, %c0_24] : memref<14x128xf32, #tpu.memory_space<vmem>>, vector<14x128xf32>
    tpu.vector_store %arg7[%c0_23, %c0_24], %53 {strides = array<i32>} : memref<14x128xf32, #tpu.memory_space<vmem>>, vector<14x128xf32>,
    return
  }
}

module attributes {stable_mosaic.version = 11 : i64} {
  func.func @heads_kernel(%arg0: memref<2x128xf32, #tpu.memory_space<vmem>>, %arg1: memref<1x128xf32, #tpu.memory_space<vmem>>, %arg2: memref<1x128xf32, #tpu.memory_space<vmem>>, %arg3: memref<128x7xf32, #tpu.memory_space<vmem>>, %arg4: memref<1x7xf32, #tpu.memory_space<vmem>>, %arg5: memref<1x128xf32, #tpu.memory_space<vmem>>, %arg6: memref<1x128xf32, #tpu.memory_space<vmem>>, %arg7: memref<128x7xf32, #tpu.memory_space<vmem>>, %arg8: memref<1x7xf32, #tpu.memory_space<vmem>>, %arg9: memref<1x128xf32, #tpu.memory_space<vmem>>, %arg10: memref<1x128xf32, #tpu.memory_space<vmem>>, %arg11: memref<128x230xf32, #tpu.memory_space<vmem>>, %arg12: memref<1x230xf32, #tpu.memory_space<vmem>>, %arg13: memref<1x128xf32, #tpu.memory_space<vmem>>, %arg14: memref<1x128xf32, #tpu.memory_space<vmem>>, %arg15: memref<128x118xf32, #tpu.memory_space<vmem>>, %arg16: memref<1x118xf32, #tpu.memory_space<vmem>>, %arg17: memref<2x7xf32, #tpu.memory_space<vmem>>, %arg18: memref<2x7xf32, #tpu.memory_space<vmem>>, %arg19: memref<2x230xf32, #tpu.memory_space<vmem>>, %arg20: memref<2x118xf32, #tpu.memory_space<vmem>>) attributes {dimension_semantics = [], scalar_prefetch = 0 : i64, scratch_operands = 0 : i64, tpu.core_type = #tpu.core_type<tc>} {
    %c0 = arith.constant 0 : index
    %c0_0 = arith.constant 0 : index
    %0 = vector.load %arg0[%c0, %c0_0] : memref<2x128xf32, #tpu.memory_space<vmem>>, vector<2x128xf32>
    %cst = arith.constant dense<0.000000e+00> : vector<2xf32>
    %1 = vector.multi_reduction <add>, %0, %cst [1] : vector<2x128xf32> to vector<2xf32>
    %2 = vector.shape_cast %1 : vector<2xf32> to vector<2x1xf32>
    %cst_1 = arith.constant 1.280000e+02 : f32
    %3 = vector.broadcast %cst_1 : f32 to vector<2x1xf32>
    %4 = arith.divf %2, %3 : vector<2x1xf32>
    %5 = vector.broadcast %4 : vector<2x1xf32> to vector<2x128xf32>
    %6 = arith.subf %0, %5 : vector<2x128xf32>
    %7 = arith.mulf %6, %6 : vector<2x128xf32>
    %cst_2 = arith.constant dense<0.000000e+00> : vector<2xf32>
    %8 = vector.multi_reduction <add>, %7, %cst_2 [1] : vector<2x128xf32> to vector<2xf32>
    %9 = vector.shape_cast %8 : vector<2xf32> to vector<2x1xf32>
    %cst_3 = arith.constant 1.280000e+02 : f32
    %10 = vector.broadcast %cst_3 : f32 to vector<2x1xf32>
    %11 = arith.divf %9, %10 : vector<2x1xf32>
    %12 = vector.broadcast %4 : vector<2x1xf32> to vector<2x128xf32>
    %13 = arith.subf %0, %12 : vector<2x128xf32>
    %cst_4 = arith.constant 9.99999974E-6 : f32
    %14 = vector.broadcast %cst_4 : f32 to vector<2x1xf32>
    %15 = arith.addf %11, %14 : vector<2x1xf32>
    %16 = math.rsqrt %15 : vector<2x1xf32>
    %17 = vector.broadcast %16 : vector<2x1xf32> to vector<2x128xf32>
    %18 = arith.mulf %13, %17 : vector<2x128xf32>
    %c0_5 = arith.constant 0 : index
    %c0_6 = arith.constant 0 : index
    %19 = vector.load %arg1[%c0_5, %c0_6] : memref<1x128xf32, #tpu.memory_space<vmem>>, vector<1x128xf32>
    %20 = vector.broadcast %19 : vector<1x128xf32> to vector<2x128xf32>
    %21 = arith.mulf %18, %20 : vector<2x128xf32>
    %c0_7 = arith.constant 0 : index
    %c0_8 = arith.constant 0 : index
    %22 = vector.load %arg2[%c0_7, %c0_8] : memref<1x128xf32, #tpu.memory_space<vmem>>, vector<1x128xf32>
    %23 = vector.broadcast %22 : vector<1x128xf32> to vector<2x128xf32>
    %24 = arith.addf %21, %23 : vector<2x128xf32>
    %c0_9 = arith.constant 0 : index
    %c0_10 = arith.constant 0 : index
    %25 = vector.load %arg3[%c0_9, %c0_10] : memref<128x7xf32, #tpu.memory_space<vmem>>, vector<128x7xf32>
    %cst_11 = arith.constant dense<0.000000e+00> : vector<2x7xf32>
    %26 = tpu.matmul %24, %25, %cst_11 {dimension_numbers = #tpu.dot_dimension_numbers<[1], [0], [0], [1], [0, 0, 1, 1], [], []>} : vector<2x128xf32>, vector<128x7xf32>, vector<2x7xf32> -> vector<2x7xf32>
    %c0_12 = arith.constant 0 : index
    %c0_13 = arith.constant 0 : index
    %27 = vector.load %arg4[%c0_12, %c0_13] : memref<1x7xf32, #tpu.memory_space<vmem>>, vector<1x7xf32>
    %28 = vector.broadcast %27 : vector<1x7xf32> to vector<2x7xf32>
    %29 = arith.addf %26, %28 : vector<2x7xf32>
    %c0_14 = arith.constant 0 : index
    %c0_15 = arith.constant 0 : index
    %30 = vector.load %arg17[%c0_14, %c0_15] : memref<2x7xf32, #tpu.memory_space<vmem>>, vector<2x7xf32>
    tpu.vector_store %arg17[%c0_14, %c0_15], %29 {strides = array<i32>} : memref<2x7xf32, #tpu.memory_space<vmem>>, vector<2x7xf32>,
    %c0_16 = arith.constant 0 : index
    %c0_17 = arith.constant 0 : index
    %31 = vector.load %arg5[%c0_16, %c0_17] : memref<1x128xf32, #tpu.memory_space<vmem>>, vector<1x128xf32>
    %32 = vector.broadcast %31 : vector<1x128xf32> to vector<2x128xf32>
    %33 = arith.mulf %18, %32 : vector<2x128xf32>
    %c0_18 = arith.constant 0 : index
    %c0_19 = arith.constant 0 : index
    %34 = vector.load %arg6[%c0_18, %c0_19] : memref<1x128xf32, #tpu.memory_space<vmem>>, vector<1x128xf32>
    %35 = vector.broadcast %34 : vector<1x128xf32> to vector<2x128xf32>
    %36 = arith.addf %33, %35 : vector<2x128xf32>
    %c0_20 = arith.constant 0 : index
    %c0_21 = arith.constant 0 : index
    %37 = vector.load %arg7[%c0_20, %c0_21] : memref<128x7xf32, #tpu.memory_space<vmem>>, vector<128x7xf32>
    %cst_22 = arith.constant dense<0.000000e+00> : vector<2x7xf32>
    %38 = tpu.matmul %36, %37, %cst_22 {dimension_numbers = #tpu.dot_dimension_numbers<[1], [0], [0], [1], [0, 0, 1, 1], [], []>} : vector<2x128xf32>, vector<128x7xf32>, vector<2x7xf32> -> vector<2x7xf32>
    %c0_23 = arith.constant 0 : index
    %c0_24 = arith.constant 0 : index
    %39 = vector.load %arg8[%c0_23, %c0_24] : memref<1x7xf32, #tpu.memory_space<vmem>>, vector<1x7xf32>
    %40 = vector.broadcast %39 : vector<1x7xf32> to vector<2x7xf32>
    %41 = arith.addf %38, %40 : vector<2x7xf32>
    %c0_25 = arith.constant 0 : index
    %c0_26 = arith.constant 0 : index
    %42 = vector.load %arg18[%c0_25, %c0_26] : memref<2x7xf32, #tpu.memory_space<vmem>>, vector<2x7xf32>
    tpu.vector_store %arg18[%c0_25, %c0_26], %41 {strides = array<i32>} : memref<2x7xf32, #tpu.memory_space<vmem>>, vector<2x7xf32>,
    %c0_27 = arith.constant 0 : index
    %c0_28 = arith.constant 0 : index
    %43 = vector.load %arg9[%c0_27, %c0_28] : memref<1x128xf32, #tpu.memory_space<vmem>>, vector<1x128xf32>
    %44 = vector.broadcast %43 : vector<1x128xf32> to vector<2x128xf32>
    %45 = arith.mulf %18, %44 : vector<2x128xf32>
    %c0_29 = arith.constant 0 : index
    %c0_30 = arith.constant 0 : index
    %46 = vector.load %arg10[%c0_29, %c0_30] : memref<1x128xf32, #tpu.memory_space<vmem>>, vector<1x128xf32>
    %47 = vector.broadcast %46 : vector<1x128xf32> to vector<2x128xf32>
    %48 = arith.addf %45, %47 : vector<2x128xf32>
    %c0_31 = arith.constant 0 : index
    %c0_32 = arith.constant 0 : index
    %49 = vector.load %arg11[%c0_31, %c0_32] : memref<128x230xf32, #tpu.memory_space<vmem>>, vector<128x230xf32>
    %cst_33 = arith.constant dense<0.000000e+00> : vector<2x230xf32>
    %50 = tpu.matmul %48, %49, %cst_33 {dimension_numbers = #tpu.dot_dimension_numbers<[1], [0], [0], [1], [0, 0, 1, 1], [], []>} : vector<2x128xf32>, vector<128x230xf32>, vector<2x230xf32> -> vector<2x230xf32>
    %c0_34 = arith.constant 0 : index
    %c0_35 = arith.constant 0 : index
    %51 = vector.load %arg12[%c0_34, %c0_35] : memref<1x230xf32, #tpu.memory_space<vmem>>, vector<1x230xf32>
    %52 = vector.broadcast %51 : vector<1x230xf32> to vector<2x230xf32>
    %53 = arith.addf %50, %52 : vector<2x230xf32>
    %c0_36 = arith.constant 0 : index
    %c0_37 = arith.constant 0 : index
    %54 = vector.load %arg19[%c0_36, %c0_37] : memref<2x230xf32, #tpu.memory_space<vmem>>, vector<2x230xf32>
    tpu.vector_store %arg19[%c0_36, %c0_37], %53 {strides = array<i32>} : memref<2x230xf32, #tpu.memory_space<vmem>>, vector<2x230xf32>,
    %c0_38 = arith.constant 0 : index
    %c0_39 = arith.constant 0 : index
    %55 = vector.load %arg13[%c0_38, %c0_39] : memref<1x128xf32, #tpu.memory_space<vmem>>, vector<1x128xf32>
    %56 = vector.broadcast %55 : vector<1x128xf32> to vector<2x128xf32>
    %57 = arith.mulf %18, %56 : vector<2x128xf32>
    %c0_40 = arith.constant 0 : index
    %c0_41 = arith.constant 0 : index
    %58 = vector.load %arg14[%c0_40, %c0_41] : memref<1x128xf32, #tpu.memory_space<vmem>>, vector<1x128xf32>
    %59 = vector.broadcast %58 : vector<1x128xf32> to vector<2x128xf32>
    %60 = arith.addf %57, %59 : vector<2x128xf32>
    %c0_42 = arith.constant 0 : index
    %c0_43 = arith.constant 0 : index
    %61 = vector.load %arg15[%c0_42, %c0_43] : memref<128x118xf32, #tpu.memory_space<vmem>>, vector<128x118xf32>
    %cst_44 = arith.constant dense<0.000000e+00> : vector<2x118xf32>
    %62 = tpu.matmul %60, %61, %cst_44 {dimension_numbers = #tpu.dot_dimension_numbers<[1], [0], [0], [1], [0, 0, 1, 1], [], []>} : vector<2x128xf32>, vector<128x118xf32>, vector<2x118xf32> -> vector<2x118xf32>
    %c0_45 = arith.constant 0 : index
    %c0_46 = arith.constant 0 : index
    %63 = vector.load %arg16[%c0_45, %c0_46] : memref<1x118xf32, #tpu.memory_space<vmem>>, vector<1x118xf32>
    %64 = vector.broadcast %63 : vector<1x118xf32> to vector<2x118xf32>
    %65 = arith.addf %62, %64 : vector<2x118xf32>
    %c0_47 = arith.constant 0 : index
    %c0_48 = arith.constant 0 : index
    %66 = vector.load %arg20[%c0_47, %c0_48] : memref<2x118xf32, #tpu.memory_space<vmem>>, vector<2x118xf32>
    tpu.vector_store %arg20[%c0_47, %c0_48], %65 {strides = array<i32>} : memref<2x118xf32, #tpu.memory_space<vmem>>, vector<2x118xf32>,
    return
  }
}

module attributes {stable_mosaic.version = 11 : i64} {
  func.func @transformer_kernel(%arg0: i32, %arg1: i32, %arg2: memref<2x8x128xf32, #tpu.memory_space<vmem>>, %arg3: memref<1x1x128xf32, #tpu.memory_space<vmem>>, %arg4: memref<1x1x128xf32, #tpu.memory_space<vmem>>, %arg5: memref<1x128x384xbf16, #tpu.memory_space<vmem>>, %arg6: memref<1x128x128xbf16, #tpu.memory_space<vmem>>, %arg7: memref<1x1x128xf32, #tpu.memory_space<vmem>>, %arg8: memref<1x1x128xf32, #tpu.memory_space<vmem>>, %arg9: memref<1x1x128xf32, #tpu.memory_space<vmem>>, %arg10: memref<1x128x256xbf16, #tpu.memory_space<vmem>>, %arg11: memref<1x1x256xf32, #tpu.memory_space<vmem>>, %arg12: memref<1x256x128xbf16, #tpu.memory_space<vmem>>, %arg13: memref<1x1x128xf32, #tpu.memory_space<vmem>>, %arg14: memref<2x8x128xf32, #tpu.memory_space<vmem>>, %arg15: memref<2x8x128xf32, #tpu.memory_space<vmem>>) attributes {dimension_semantics = [#tpu.dimension_semantics<parallel>, #tpu.dimension_semantics<arbitrary>], iteration_bounds = array<i64: 1, 2>, scalar_prefetch = 0 : i64, scratch_operands = 1 : i64, tpu.core_type = #tpu.core_type<tc>, window_params = [{transform_indices = @transform_0, window_bounds = array<i64: 2, 8, 128>}, {transform_indices = @transform_1, window_bounds = array<i64: 1, 1, 128>}, {transform_indices = @transform_2, window_bounds = array<i64: 1, 1, 128>}, {transform_indices = @transform_3, window_bounds = array<i64: 1, 128, 384>}, {transform_indices = @transform_4, window_bounds = array<i64: 1, 128, 128>}, {transform_indices = @transform_5, window_bounds = array<i64: 1, 1, 128>}, {transform_indices = @transform_6, window_bounds = array<i64: 1, 1, 128>}, {transform_indices = @transform_7, window_bounds = array<i64: 1, 1, 128>}, {transform_indices = @transform_8, window_bounds = array<i64: 1, 128, 256>}, {transform_indices = @transform_9, window_bounds = array<i64: 1, 1, 256>}, {transform_indices = @transform_10, window_bounds = array<i64: 1, 256, 128>}, {transform_indices = @transform_11, window_bounds = array<i64: 1, 1, 128>}, {transform_indices = @transform_12, window_bounds = array<i64: 2, 8, 128>}]} {
    %c0_i32 = arith.constant 0 : i32
    %0 = arith.cmpi eq, %arg1, %c0_i32 : i32
    %1 = arith.extui %0 : i1 to i32
    %c0_i32_0 = arith.constant 0 : i32
    %2 = arith.cmpi ne, %1, %c0_i32_0 : i32
    scf.if %2 {
      %c0_92 = arith.constant 0 : index
      %c0_93 = arith.constant 0 : index
      %c0_94 = arith.constant 0 : index
      %236 = vector.load %arg2[%c0_92, %c0_93, %c0_94] : memref<2x8x128xf32, #tpu.memory_space<vmem>>, vector<2x8x128xf32>
      %c0_95 = arith.constant 0 : index
      %c0_96 = arith.constant 0 : index
      %c0_97 = arith.constant 0 : index
      %237 = vector.load %arg15[%c0_95, %c0_96, %c0_97] : memref<2x8x128xf32, #tpu.memory_space<vmem>>, vector<2x8x128xf32>
      tpu.vector_store %arg15[%c0_95, %c0_96, %c0_97], %236 {strides = array<i32>} : memref<2x8x128xf32, #tpu.memory_space<vmem>>, vector<2x8x128xf32>,
    } else {
    }
    %c0 = arith.constant 0 : index
    %c0_1 = arith.constant 0 : index
    %c0_2 = arith.constant 0 : index
    %3 = vector.load %arg15[%c0, %c0_1, %c0_2] : memref<2x8x128xf32, #tpu.memory_space<vmem>>, vector<2x8x128xf32>
    %4 = vector.shape_cast %3 : vector<2x8x128xf32> to vector<16x128xf32>
    %c0_3 = arith.constant 0 : index
    %c0_4 = arith.constant 0 : index
    %c0_5 = arith.constant 0 : index
    %5 = vector.load %arg3[%c0_3, %c0_4, %c0_5] : memref<1x1x128xf32, #tpu.memory_space<vmem>>, vector<1x1x128xf32>
    %6 = vector.shape_cast %5 : vector<1x1x128xf32> to vector<1x128xf32>
    %c0_6 = arith.constant 0 : index
    %c0_7 = arith.constant 0 : index
    %c0_8 = arith.constant 0 : index
    %7 = vector.load %arg4[%c0_6, %c0_7, %c0_8] : memref<1x1x128xf32, #tpu.memory_space<vmem>>, vector<1x1x128xf32>
    %8 = vector.shape_cast %7 : vector<1x1x128xf32> to vector<1x128xf32>
    %cst = arith.constant dense<0.000000e+00> : vector<16xf32>
    %9 = vector.multi_reduction <add>, %4, %cst [1] : vector<16x128xf32> to vector<16xf32>
    %10 = vector.shape_cast %9 : vector<16xf32> to vector<16x1xf32>
    %cst_9 = arith.constant 1.280000e+02 : f32
    %11 = vector.broadcast %cst_9 : f32 to vector<16x1xf32>
    %12 = arith.divf %10, %11 : vector<16x1xf32>
    %13 = vector.broadcast %12 : vector<16x1xf32> to vector<16x128xf32>
    %14 = arith.subf %4, %13 : vector<16x128xf32>
    %15 = arith.mulf %14, %14 : vector<16x128xf32>
    %cst_10 = arith.constant dense<0.000000e+00> : vector<16xf32>
    %16 = vector.multi_reduction <add>, %15, %cst_10 [1] : vector<16x128xf32> to vector<16xf32>
    %17 = vector.shape_cast %16 : vector<16xf32> to vector<16x1xf32>
    %cst_11 = arith.constant 1.280000e+02 : f32
    %18 = vector.broadcast %cst_11 : f32 to vector<16x1xf32>
    %19 = arith.divf %17, %18 : vector<16x1xf32>
    %20 = vector.broadcast %12 : vector<16x1xf32> to vector<16x128xf32>
    %21 = arith.subf %4, %20 : vector<16x128xf32>
    %cst_12 = arith.constant 9.99999974E-6 : f32
    %22 = vector.broadcast %cst_12 : f32 to vector<16x1xf32>
    %23 = arith.addf %19, %22 : vector<16x1xf32>
    %24 = math.rsqrt %23 : vector<16x1xf32>
    %25 = vector.broadcast %24 : vector<16x1xf32> to vector<16x128xf32>
    %26 = arith.mulf %21, %25 : vector<16x128xf32>
    %27 = vector.broadcast %6 : vector<1x128xf32> to vector<16x128xf32>
    %28 = arith.mulf %26, %27 : vector<16x128xf32>
    %29 = vector.broadcast %8 : vector<1x128xf32> to vector<16x128xf32>
    %30 = arith.addf %28, %29 : vector<16x128xf32>
    %31 = arith.truncf %30 : vector<16x128xf32> to vector<16x128xbf16>
    %c0_13 = arith.constant 0 : index
    %c0_14 = arith.constant 0 : index
    %c0_15 = arith.constant 0 : index
    %32 = vector.load %arg5[%c0_13, %c0_14, %c0_15] : memref<1x128x384xbf16, #tpu.memory_space<vmem>>, vector<1x128x384xbf16>
    %33 = vector.shape_cast %32 : vector<1x128x384xbf16> to vector<128x384xbf16>
    %cst_16 = arith.constant dense<0.000000e+00> : vector<16x384xf32>
    %34 = tpu.matmul %31, %33, %cst_16 {dimension_numbers = #tpu.dot_dimension_numbers<[1], [0], [0], [1], [0, 0, 1, 1], [], []>} : vector<16x128xbf16>, vector<128x384xbf16>, vector<16x384xf32> -> vector<16x384xf32>
    %35 = vector.shape_cast %34 : vector<16x384xf32> to vector<2x8x384xf32>
    %c0_17 = arith.constant 0 : index
    %c0_18 = arith.constant 0 : index
    %c0_19 = arith.constant 0 : index
    %36 = vector.load %arg6[%c0_17, %c0_18, %c0_19] : memref<1x128x128xbf16, #tpu.memory_space<vmem>>, vector<1x128x128xbf16>
    %37 = vector.shape_cast %36 : vector<1x128x128xbf16> to vector<128x128xbf16>
    %cst_20 = arith.constant 0.000000e+00 : f32
    %38 = vector.broadcast %cst_20 : f32 to vector<16x128xf32>
    %39 = vector.extract_strided_slice %35 {offsets = [0, 0, 0], sizes = [2, 8, 32], strides = [1, 1, 1]} : vector<2x8x384xf32> to vector<2x8x32xf32>
    %40 = arith.truncf %39 : vector<2x8x32xf32> to vector<2x8x32xbf16>
    %41 = vector.extract_strided_slice %35 {offsets = [0, 0, 128], sizes = [2, 8, 32], strides = [1, 1, 1]} : vector<2x8x384xf32> to vector<2x8x32xf32>
    %42 = arith.truncf %41 : vector<2x8x32xf32> to vector<2x8x32xbf16>
    %43 = vector.extract_strided_slice %35 {offsets = [0, 0, 256], sizes = [2, 8, 32], strides = [1, 1, 1]} : vector<2x8x384xf32> to vector<2x8x32xf32>
    %44 = arith.truncf %43 : vector<2x8x32xf32> to vector<2x8x32xbf16>
    "tpu.trace_start"() <{level = 10 : i32, message = "bnd,bmd->bnm"}> : () -> ()
    %cst_21 = arith.constant dense<0.000000e+00> : vector<2x8x8xf32>
    %45 = tpu.matmul %40, %42, %cst_21 {dimension_numbers = #tpu.dot_dimension_numbers<[2], [2], [1], [1], [0, 0, 0, 1, 1, 1], [0], [0]>} : vector<2x8x32xbf16>, vector<2x8x32xbf16>, vector<2x8x8xf32> -> vector<2x8x8xf32>
    "tpu.trace_stop"() : () -> ()
    %cst_22 = arith.constant 0.176776692 : f32
    %46 = vector.broadcast %cst_22 : f32 to vector<2x8x8xf32>
    %47 = arith.mulf %45, %46 : vector<2x8x8xf32>
    %cst_23 = arith.constant dense<0xFF800000> : vector<2x8xf32>
    %48 = vector.multi_reduction <maximumf>, %47, %cst_23 [2] : vector<2x8x8xf32> to vector<2x8xf32>
    %49 = vector.shape_cast %48 : vector<2x8xf32> to vector<2x8x1xf32>
    %50 = vector.broadcast %49 : vector<2x8x1xf32> to vector<2x8x8xf32>
    %51 = arith.subf %47, %50 : vector<2x8x8xf32>
    %52 = math.exp %51 : vector<2x8x8xf32>
    %cst_24 = arith.constant dense<0.000000e+00> : vector<2x8xf32>
    %53 = vector.multi_reduction <add>, %52, %cst_24 [2] : vector<2x8x8xf32> to vector<2x8xf32>
    %54 = vector.shape_cast %53 : vector<2x8xf32> to vector<2x8x1xf32>
    %55 = tpu.reciprocal %54 {approx = true} : vector<2x8x1xf32> -> vector<2x8x1xf32>
    %56 = vector.broadcast %55 : vector<2x8x1xf32> to vector<2x8x8xf32>
    %57 = arith.mulf %52, %56 : vector<2x8x8xf32>
    %58 = arith.truncf %57 : vector<2x8x8xf32> to vector<2x8x8xbf16>
    "tpu.trace_start"() <{level = 10 : i32, message = "bnm,bmd->bnd"}> : () -> ()
    %cst_25 = arith.constant dense<0.000000e+00> : vector<2x8x32xf32>
    %59 = tpu.matmul %58, %44, %cst_25 {dimension_numbers = #tpu.dot_dimension_numbers<[2], [1], [1], [2], [0, 0, 0, 1, 1, 2], [0], [0]>} : vector<2x8x8xbf16>, vector<2x8x32xbf16>, vector<2x8x32xf32> -> vector<2x8x32xf32>
    "tpu.trace_stop"() : () -> ()
    %60 = vector.shape_cast %59 : vector<2x8x32xf32> to vector<16x32xf32>
    %61 = arith.truncf %60 : vector<16x32xf32> to vector<16x32xbf16>
    %62 = vector.extract_strided_slice %37 {offsets = [0, 0], sizes = [32, 128], strides = [1, 1]} : vector<128x128xbf16> to vector<32x128xbf16>
    %cst_26 = arith.constant dense<0.000000e+00> : vector<16x128xf32>
    %63 = tpu.matmul %61, %62, %cst_26 {dimension_numbers = #tpu.dot_dimension_numbers<[1], [0], [0], [1], [0, 0, 1, 1], [], []>} : vector<16x32xbf16>, vector<32x128xbf16>, vector<16x128xf32> -> vector<16x128xf32>
    %64 = arith.addf %38, %63 : vector<16x128xf32>
    %65 = vector.extract_strided_slice %35 {offsets = [0, 0, 32], sizes = [2, 8, 32], strides = [1, 1, 1]} : vector<2x8x384xf32> to vector<2x8x32xf32>
    %66 = arith.truncf %65 : vector<2x8x32xf32> to vector<2x8x32xbf16>
    %67 = vector.extract_strided_slice %35 {offsets = [0, 0, 160], sizes = [2, 8, 32], strides = [1, 1, 1]} : vector<2x8x384xf32> to vector<2x8x32xf32>
    %68 = arith.truncf %67 : vector<2x8x32xf32> to vector<2x8x32xbf16>
    %69 = vector.extract_strided_slice %35 {offsets = [0, 0, 288], sizes = [2, 8, 32], strides = [1, 1, 1]} : vector<2x8x384xf32> to vector<2x8x32xf32>
    %70 = arith.truncf %69 : vector<2x8x32xf32> to vector<2x8x32xbf16>
    "tpu.trace_start"() <{level = 10 : i32, message = "bnd,bmd->bnm"}> : () -> ()
    %cst_27 = arith.constant dense<0.000000e+00> : vector<2x8x8xf32>
    %71 = tpu.matmul %66, %68, %cst_27 {dimension_numbers = #tpu.dot_dimension_numbers<[2], [2], [1], [1], [0, 0, 0, 1, 1, 1], [0], [0]>} : vector<2x8x32xbf16>, vector<2x8x32xbf16>, vector<2x8x8xf32> -> vector<2x8x8xf32>
    "tpu.trace_stop"() : () -> ()
    %cst_28 = arith.constant 0.176776692 : f32
    %72 = vector.broadcast %cst_28 : f32 to vector<2x8x8xf32>
    %73 = arith.mulf %71, %72 : vector<2x8x8xf32>
    %cst_29 = arith.constant dense<0xFF800000> : vector<2x8xf32>
    %74 = vector.multi_reduction <maximumf>, %73, %cst_29 [2] : vector<2x8x8xf32> to vector<2x8xf32>
    %75 = vector.shape_cast %74 : vector<2x8xf32> to vector<2x8x1xf32>
    %76 = vector.broadcast %75 : vector<2x8x1xf32> to vector<2x8x8xf32>
    %77 = arith.subf %73, %76 : vector<2x8x8xf32>
    %78 = math.exp %77 : vector<2x8x8xf32>
    %cst_30 = arith.constant dense<0.000000e+00> : vector<2x8xf32>
    %79 = vector.multi_reduction <add>, %78, %cst_30 [2] : vector<2x8x8xf32> to vector<2x8xf32>
    %80 = vector.shape_cast %79 : vector<2x8xf32> to vector<2x8x1xf32>
    %81 = tpu.reciprocal %80 {approx = true} : vector<2x8x1xf32> -> vector<2x8x1xf32>
    %82 = vector.broadcast %81 : vector<2x8x1xf32> to vector<2x8x8xf32>
    %83 = arith.mulf %78, %82 : vector<2x8x8xf32>
    %84 = arith.truncf %83 : vector<2x8x8xf32> to vector<2x8x8xbf16>
    "tpu.trace_start"() <{level = 10 : i32, message = "bnm,bmd->bnd"}> : () -> ()
    %cst_31 = arith.constant dense<0.000000e+00> : vector<2x8x32xf32>
    %85 = tpu.matmul %84, %70, %cst_31 {dimension_numbers = #tpu.dot_dimension_numbers<[2], [1], [1], [2], [0, 0, 0, 1, 1, 2], [0], [0]>} : vector<2x8x8xbf16>, vector<2x8x32xbf16>, vector<2x8x32xf32> -> vector<2x8x32xf32>
    "tpu.trace_stop"() : () -> ()
    %86 = vector.shape_cast %85 : vector<2x8x32xf32> to vector<16x32xf32>
    %87 = arith.truncf %86 : vector<16x32xf32> to vector<16x32xbf16>
    %88 = vector.extract_strided_slice %37 {offsets = [32, 0], sizes = [32, 128], strides = [1, 1]} : vector<128x128xbf16> to vector<32x128xbf16>
    %cst_32 = arith.constant dense<0.000000e+00> : vector<16x128xf32>
    %89 = tpu.matmul %87, %88, %cst_32 {dimension_numbers = #tpu.dot_dimension_numbers<[1], [0], [0], [1], [0, 0, 1, 1], [], []>} : vector<16x32xbf16>, vector<32x128xbf16>, vector<16x128xf32> -> vector<16x128xf32>
    %90 = arith.addf %64, %89 : vector<16x128xf32>
    %91 = vector.extract_strided_slice %35 {offsets = [0, 0, 64], sizes = [2, 8, 32], strides = [1, 1, 1]} : vector<2x8x384xf32> to vector<2x8x32xf32>
    %92 = arith.truncf %91 : vector<2x8x32xf32> to vector<2x8x32xbf16>
    %93 = vector.extract_strided_slice %35 {offsets = [0, 0, 192], sizes = [2, 8, 32], strides = [1, 1, 1]} : vector<2x8x384xf32> to vector<2x8x32xf32>
    %94 = arith.truncf %93 : vector<2x8x32xf32> to vector<2x8x32xbf16>
    %95 = vector.extract_strided_slice %35 {offsets = [0, 0, 320], sizes = [2, 8, 32], strides = [1, 1, 1]} : vector<2x8x384xf32> to vector<2x8x32xf32>
    %96 = arith.truncf %95 : vector<2x8x32xf32> to vector<2x8x32xbf16>
    "tpu.trace_start"() <{level = 10 : i32, message = "bnd,bmd->bnm"}> : () -> ()
    %cst_33 = arith.constant dense<0.000000e+00> : vector<2x8x8xf32>
    %97 = tpu.matmul %92, %94, %cst_33 {dimension_numbers = #tpu.dot_dimension_numbers<[2], [2], [1], [1], [0, 0, 0, 1, 1, 1], [0], [0]>} : vector<2x8x32xbf16>, vector<2x8x32xbf16>, vector<2x8x8xf32> -> vector<2x8x8xf32>
    "tpu.trace_stop"() : () -> ()
    %cst_34 = arith.constant 0.176776692 : f32
    %98 = vector.broadcast %cst_34 : f32 to vector<2x8x8xf32>
    %99 = arith.mulf %97, %98 : vector<2x8x8xf32>
    %cst_35 = arith.constant dense<0xFF800000> : vector<2x8xf32>
    %100 = vector.multi_reduction <maximumf>, %99, %cst_35 [2] : vector<2x8x8xf32> to vector<2x8xf32>
    %101 = vector.shape_cast %100 : vector<2x8xf32> to vector<2x8x1xf32>
    %102 = vector.broadcast %101 : vector<2x8x1xf32> to vector<2x8x8xf32>
    %103 = arith.subf %99, %102 : vector<2x8x8xf32>
    %104 = math.exp %103 : vector<2x8x8xf32>
    %cst_36 = arith.constant dense<0.000000e+00> : vector<2x8xf32>
    %105 = vector.multi_reduction <add>, %104, %cst_36 [2] : vector<2x8x8xf32> to vector<2x8xf32>
    %106 = vector.shape_cast %105 : vector<2x8xf32> to vector<2x8x1xf32>
    %107 = tpu.reciprocal %106 {approx = true} : vector<2x8x1xf32> -> vector<2x8x1xf32>
    %108 = vector.broadcast %107 : vector<2x8x1xf32> to vector<2x8x8xf32>
    %109 = arith.mulf %104, %108 : vector<2x8x8xf32>
    %110 = arith.truncf %109 : vector<2x8x8xf32> to vector<2x8x8xbf16>
    "tpu.trace_start"() <{level = 10 : i32, message = "bnm,bmd->bnd"}> : () -> ()
    %cst_37 = arith.constant dense<0.000000e+00> : vector<2x8x32xf32>
    %111 = tpu.matmul %110, %96, %cst_37 {dimension_numbers = #tpu.dot_dimension_numbers<[2], [1], [1], [2], [0, 0, 0, 1, 1, 2], [0], [0]>} : vector<2x8x8xbf16>, vector<2x8x32xbf16>, vector<2x8x32xf32> -> vector<2x8x32xf32>
    "tpu.trace_stop"() : () -> ()
    %112 = vector.shape_cast %111 : vector<2x8x32xf32> to vector<16x32xf32>
    %113 = arith.truncf %112 : vector<16x32xf32> to vector<16x32xbf16>
    %114 = vector.extract_strided_slice %37 {offsets = [64, 0], sizes = [32, 128], strides = [1, 1]} : vector<128x128xbf16> to vector<32x128xbf16>
    %cst_38 = arith.constant dense<0.000000e+00> : vector<16x128xf32>
    %115 = tpu.matmul %113, %114, %cst_38 {dimension_numbers = #tpu.dot_dimension_numbers<[1], [0], [0], [1], [0, 0, 1, 1], [], []>} : vector<16x32xbf16>, vector<32x128xbf16>, vector<16x128xf32> -> vector<16x128xf32>
    %116 = arith.addf %90, %115 : vector<16x128xf32>
    %117 = vector.extract_strided_slice %35 {offsets = [0, 0, 96], sizes = [2, 8, 32], strides = [1, 1, 1]} : vector<2x8x384xf32> to vector<2x8x32xf32>
    %118 = arith.truncf %117 : vector<2x8x32xf32> to vector<2x8x32xbf16>
    %119 = vector.extract_strided_slice %35 {offsets = [0, 0, 224], sizes = [2, 8, 32], strides = [1, 1, 1]} : vector<2x8x384xf32> to vector<2x8x32xf32>
    %120 = arith.truncf %119 : vector<2x8x32xf32> to vector<2x8x32xbf16>
    %121 = vector.extract_strided_slice %35 {offsets = [0, 0, 352], sizes = [2, 8, 32], strides = [1, 1, 1]} : vector<2x8x384xf32> to vector<2x8x32xf32>
    %122 = arith.truncf %121 : vector<2x8x32xf32> to vector<2x8x32xbf16>
    "tpu.trace_start"() <{level = 10 : i32, message = "bnd,bmd->bnm"}> : () -> ()
    %cst_39 = arith.constant dense<0.000000e+00> : vector<2x8x8xf32>
    %123 = tpu.matmul %118, %120, %cst_39 {dimension_numbers = #tpu.dot_dimension_numbers<[2], [2], [1], [1], [0, 0, 0, 1, 1, 1], [0], [0]>} : vector<2x8x32xbf16>, vector<2x8x32xbf16>, vector<2x8x8xf32> -> vector<2x8x8xf32>
    "tpu.trace_stop"() : () -> ()
    %cst_40 = arith.constant 0.176776692 : f32
    %124 = vector.broadcast %cst_40 : f32 to vector<2x8x8xf32>
    %125 = arith.mulf %123, %124 : vector<2x8x8xf32>
    %cst_41 = arith.constant dense<0xFF800000> : vector<2x8xf32>
    %126 = vector.multi_reduction <maximumf>, %125, %cst_41 [2] : vector<2x8x8xf32> to vector<2x8xf32>
    %127 = vector.shape_cast %126 : vector<2x8xf32> to vector<2x8x1xf32>
    %128 = vector.broadcast %127 : vector<2x8x1xf32> to vector<2x8x8xf32>
    %129 = arith.subf %125, %128 : vector<2x8x8xf32>
    %130 = math.exp %129 : vector<2x8x8xf32>
    %cst_42 = arith.constant dense<0.000000e+00> : vector<2x8xf32>
    %131 = vector.multi_reduction <add>, %130, %cst_42 [2] : vector<2x8x8xf32> to vector<2x8xf32>
    %132 = vector.shape_cast %131 : vector<2x8xf32> to vector<2x8x1xf32>
    %133 = tpu.reciprocal %132 {approx = true} : vector<2x8x1xf32> -> vector<2x8x1xf32>
    %134 = vector.broadcast %133 : vector<2x8x1xf32> to vector<2x8x8xf32>
    %135 = arith.mulf %130, %134 : vector<2x8x8xf32>
    %136 = arith.truncf %135 : vector<2x8x8xf32> to vector<2x8x8xbf16>
    "tpu.trace_start"() <{level = 10 : i32, message = "bnm,bmd->bnd"}> : () -> ()
    %cst_43 = arith.constant dense<0.000000e+00> : vector<2x8x32xf32>
    %137 = tpu.matmul %136, %122, %cst_43 {dimension_numbers = #tpu.dot_dimension_numbers<[2], [1], [1], [2], [0, 0, 0, 1, 1, 2], [0], [0]>} : vector<2x8x8xbf16>, vector<2x8x32xbf16>, vector<2x8x32xf32> -> vector<2x8x32xf32>
    "tpu.trace_stop"() : () -> ()
    %138 = vector.shape_cast %137 : vector<2x8x32xf32> to vector<16x32xf32>
    %139 = arith.truncf %138 : vector<16x32xf32> to vector<16x32xbf16>
    %140 = vector.extract_strided_slice %37 {offsets = [96, 0], sizes = [32, 128], strides = [1, 1]} : vector<128x128xbf16> to vector<32x128xbf16>
    %cst_44 = arith.constant dense<0.000000e+00> : vector<16x128xf32>
    %141 = tpu.matmul %139, %140, %cst_44 {dimension_numbers = #tpu.dot_dimension_numbers<[1], [0], [0], [1], [0, 0, 1, 1], [], []>} : vector<16x32xbf16>, vector<32x128xbf16>, vector<16x128xf32> -> vector<16x128xf32>
    %142 = arith.addf %116, %141 : vector<16x128xf32>
    %143 = arith.addf %4, %142 : vector<16x128xf32>
    %c0_45 = arith.constant 0 : index
    %c0_46 = arith.constant 0 : index
    %c0_47 = arith.constant 0 : index
    %144 = vector.load %arg7[%c0_45, %c0_46, %c0_47] : memref<1x1x128xf32, #tpu.memory_space<vmem>>, vector<1x1x128xf32>
    %145 = vector.shape_cast %144 : vector<1x1x128xf32> to vector<1x128xf32>
    %146 = vector.broadcast %145 : vector<1x128xf32> to vector<16x128xf32>
    %147 = arith.addf %143, %146 : vector<16x128xf32>
    %c0_48 = arith.constant 0 : index
    %c0_49 = arith.constant 0 : index
    %c0_50 = arith.constant 0 : index
    %148 = vector.load %arg8[%c0_48, %c0_49, %c0_50] : memref<1x1x128xf32, #tpu.memory_space<vmem>>, vector<1x1x128xf32>
    %149 = vector.shape_cast %148 : vector<1x1x128xf32> to vector<1x128xf32>
    %c0_51 = arith.constant 0 : index
    %c0_52 = arith.constant 0 : index
    %c0_53 = arith.constant 0 : index
    %150 = vector.load %arg9[%c0_51, %c0_52, %c0_53] : memref<1x1x128xf32, #tpu.memory_space<vmem>>, vector<1x1x128xf32>
    %151 = vector.shape_cast %150 : vector<1x1x128xf32> to vector<1x128xf32>
    %cst_54 = arith.constant dense<0.000000e+00> : vector<16xf32>
    %152 = vector.multi_reduction <add>, %147, %cst_54 [1] : vector<16x128xf32> to vector<16xf32>
    %153 = vector.shape_cast %152 : vector<16xf32> to vector<16x1xf32>
    %cst_55 = arith.constant 1.280000e+02 : f32
    %154 = vector.broadcast %cst_55 : f32 to vector<16x1xf32>
    %155 = arith.divf %153, %154 : vector<16x1xf32>
    %156 = vector.broadcast %155 : vector<16x1xf32> to vector<16x128xf32>
    %157 = arith.subf %147, %156 : vector<16x128xf32>
    %158 = arith.mulf %157, %157 : vector<16x128xf32>
    %cst_56 = arith.constant dense<0.000000e+00> : vector<16xf32>
    %159 = vector.multi_reduction <add>, %158, %cst_56 [1] : vector<16x128xf32> to vector<16xf32>
    %160 = vector.shape_cast %159 : vector<16xf32> to vector<16x1xf32>
    %cst_57 = arith.constant 1.280000e+02 : f32
    %161 = vector.broadcast %cst_57 : f32 to vector<16x1xf32>
    %162 = arith.divf %160, %161 : vector<16x1xf32>
    %163 = vector.broadcast %155 : vector<16x1xf32> to vector<16x128xf32>
    %164 = arith.subf %147, %163 : vector<16x128xf32>
    %cst_58 = arith.constant 9.99999974E-6 : f32
    %165 = vector.broadcast %cst_58 : f32 to vector<16x1xf32>
    %166 = arith.addf %162, %165 : vector<16x1xf32>
    %167 = math.rsqrt %166 : vector<16x1xf32>
    %168 = vector.broadcast %167 : vector<16x1xf32> to vector<16x128xf32>
    %169 = arith.mulf %164, %168 : vector<16x128xf32>
    %170 = vector.broadcast %149 : vector<1x128xf32> to vector<16x128xf32>
    %171 = arith.mulf %169, %170 : vector<16x128xf32>
    %172 = vector.broadcast %151 : vector<1x128xf32> to vector<16x128xf32>
    %173 = arith.addf %171, %172 : vector<16x128xf32>
    %174 = arith.truncf %173 : vector<16x128xf32> to vector<16x128xbf16>
    %c0_59 = arith.constant 0 : index
    %c0_60 = arith.constant 0 : index
    %c0_61 = arith.constant 0 : index
    %175 = vector.load %arg10[%c0_59, %c0_60, %c0_61] : memref<1x128x256xbf16, #tpu.memory_space<vmem>>, vector<1x128x256xbf16>
    %176 = vector.shape_cast %175 : vector<1x128x256xbf16> to vector<128x256xbf16>
    %cst_62 = arith.constant dense<0.000000e+00> : vector<16x256xf32>
    %177 = tpu.matmul %174, %176, %cst_62 {dimension_numbers = #tpu.dot_dimension_numbers<[1], [0], [0], [1], [0, 0, 1, 1], [], []>} : vector<16x128xbf16>, vector<128x256xbf16>, vector<16x256xf32> -> vector<16x256xf32>
    %c0_63 = arith.constant 0 : index
    %c0_64 = arith.constant 0 : index
    %c0_65 = arith.constant 0 : index
    %178 = vector.load %arg11[%c0_63, %c0_64, %c0_65] : memref<1x1x256xf32, #tpu.memory_space<vmem>>, vector<1x1x256xf32>
    %179 = vector.shape_cast %178 : vector<1x1x256xf32> to vector<1x256xf32>
    %180 = vector.broadcast %179 : vector<1x256xf32> to vector<16x256xf32>
    %181 = arith.addf %177, %180 : vector<16x256xf32>
    %cst_66 = arith.constant 5.000000e-01 : f32
    %182 = vector.broadcast %cst_66 : f32 to vector<16x256xf32>
    %183 = arith.mulf %182, %181 : vector<16x256xf32>
    %cst_67 = arith.constant 0.707106769 : f32
    %184 = vector.broadcast %cst_67 : f32 to vector<16x256xf32>
    %185 = arith.mulf %181, %184 : vector<16x256xf32>
    %186 = math.absf %185 : vector<16x256xf32>
    %cst_68 = arith.constant 0.327591091 : f32
    %187 = vector.broadcast %cst_68 : f32 to vector<16x256xf32>
    %188 = arith.mulf %187, %186 : vector<16x256xf32>
    %cst_69 = arith.constant 1.000000e+00 : f32
    %189 = vector.broadcast %cst_69 : f32 to vector<16x256xf32>
    %190 = arith.addf %189, %188 : vector<16x256xf32>
    %cst_70 = arith.constant 1.000000e+00 : f32
    %191 = vector.broadcast %cst_70 : f32 to vector<16x256xf32>
    %192 = arith.divf %191, %190 : vector<16x256xf32>
    %cst_71 = arith.constant 1.06140542 : f32
    %193 = vector.broadcast %cst_71 : f32 to vector<16x256xf32>
    %194 = arith.mulf %193, %192 : vector<16x256xf32>
    %cst_72 = arith.constant -1.45315206 : f32
    %195 = vector.broadcast %cst_72 : f32 to vector<16x256xf32>
    %196 = arith.addf %194, %195 : vector<16x256xf32>
    %197 = arith.mulf %196, %192 : vector<16x256xf32>
    %cst_73 = arith.constant 1.42141378 : f32
    %198 = vector.broadcast %cst_73 : f32 to vector<16x256xf32>
    %199 = arith.addf %197, %198 : vector<16x256xf32>
    %200 = arith.mulf %199, %192 : vector<16x256xf32>
    %cst_74 = arith.constant -0.284496725 : f32
    %201 = vector.broadcast %cst_74 : f32 to vector<16x256xf32>
    %202 = arith.addf %200, %201 : vector<16x256xf32>
    %203 = arith.mulf %202, %192 : vector<16x256xf32>
    %cst_75 = arith.constant 0.254829586 : f32
    %204 = vector.broadcast %cst_75 : f32 to vector<16x256xf32>
    %205 = arith.addf %203, %204 : vector<16x256xf32>
    %206 = arith.mulf %205, %192 : vector<16x256xf32>
    %cst_76 = arith.constant 0.000000e+00 : f32
    %207 = vector.broadcast %cst_76 : f32 to vector<16x256xf32>
    %208 = arith.subf %207, %186 : vector<16x256xf32>
    %209 = arith.mulf %208, %186 : vector<16x256xf32>
    %210 = math.exp %209 : vector<16x256xf32>
    %211 = arith.mulf %206, %210 : vector<16x256xf32>
    %cst_77 = arith.constant 1.000000e+00 : f32
    %212 = vector.broadcast %cst_77 : f32 to vector<16x256xf32>
    %213 = arith.subf %212, %211 : vector<16x256xf32>
    %cst_78 = arith.constant 0.000000e+00 : f32
    %214 = vector.broadcast %cst_78 : f32 to vector<16x256xf32>
    %215 = arith.cmpf oge, %185, %214 : vector<16x256xf32>
    %cst_79 = arith.constant 0.000000e+00 : f32
    %216 = vector.broadcast %cst_79 : f32 to vector<16x256xf32>
    %217 = arith.subf %216, %213 : vector<16x256xf32>
    %218 = arith.select %215, %213, %217 : vector<16x256xi1>, vector<16x256xf32>
    %cst_80 = arith.constant 1.000000e+00 : f32
    %219 = vector.broadcast %cst_80 : f32 to vector<16x256xf32>
    %220 = arith.addf %219, %218 : vector<16x256xf32>
    %221 = arith.mulf %183, %220 : vector<16x256xf32>
    %222 = arith.truncf %221 : vector<16x256xf32> to vector<16x256xbf16>
    %c0_81 = arith.constant 0 : index
    %c0_82 = arith.constant 0 : index
    %c0_83 = arith.constant 0 : index
    %223 = vector.load %arg12[%c0_81, %c0_82, %c0_83] : memref<1x256x128xbf16, #tpu.memory_space<vmem>>, vector<1x256x128xbf16>
    %224 = vector.shape_cast %223 : vector<1x256x128xbf16> to vector<256x128xbf16>
    %cst_84 = arith.constant dense<0.000000e+00> : vector<16x128xf32>
    %225 = tpu.matmul %222, %224, %cst_84 {dimension_numbers = #tpu.dot_dimension_numbers<[1], [0], [0], [1], [0, 0, 1, 1], [], []>} : vector<16x256xbf16>, vector<256x128xbf16>, vector<16x128xf32> -> vector<16x128xf32>
    %226 = arith.addf %147, %225 : vector<16x128xf32>
    %c0_85 = arith.constant 0 : index
    %c0_86 = arith.constant 0 : index
    %c0_87 = arith.constant 0 : index
    %227 = vector.load %arg13[%c0_85, %c0_86, %c0_87] : memref<1x1x128xf32, #tpu.memory_space<vmem>>, vector<1x1x128xf32>
    %228 = vector.shape_cast %227 : vector<1x1x128xf32> to vector<1x128xf32>
    %229 = vector.broadcast %228 : vector<1x128xf32> to vector<16x128xf32>
    %230 = arith.addf %226, %229 : vector<16x128xf32>
    %231 = vector.shape_cast %230 : vector<16x128xf32> to vector<2x8x128xf32>
    %c0_88 = arith.constant 0 : index
    %c0_89 = arith.constant 0 : index
    %c0_90 = arith.constant 0 : index
    %232 = vector.load %arg15[%c0_88, %c0_89, %c0_90] : memref<2x8x128xf32, #tpu.memory_space<vmem>>, vector<2x8x128xf32>
    tpu.vector_store %arg15[%c0_88, %c0_89, %c0_90], %231 {strides = array<i32>} : memref<2x8x128xf32, #tpu.memory_space<vmem>>, vector<2x8x128xf32>,
    %c1_i32 = arith.constant 1 : i32
    %233 = arith.cmpi eq, %arg1, %c1_i32 : i32
    %234 = arith.extui %233 : i1 to i32
    %c0_i32_91 = arith.constant 0 : i32
    %235 = arith.cmpi ne, %234, %c0_i32_91 : i32
    scf.if %235 {
      %c0_92 = arith.constant 0 : index
      %c0_93 = arith.constant 0 : index
      %c0_94 = arith.constant 0 : index
      %236 = vector.load %arg15[%c0_92, %c0_93, %c0_94] : memref<2x8x128xf32, #tpu.memory_space<vmem>>, vector<2x8x128xf32>
      %c0_95 = arith.constant 0 : index
      %c0_96 = arith.constant 0 : index
      %c0_97 = arith.constant 0 : index
      %237 = vector.load %arg14[%c0_95, %c0_96, %c0_97] : memref<2x8x128xf32, #tpu.memory_space<vmem>>, vector<2x8x128xf32>
      tpu.vector_store %arg14[%c0_95, %c0_96, %c0_97], %236 {strides = array<i32>} : memref<2x8x128xf32, #tpu.memory_space<vmem>>, vector<2x8x128xf32>,
    } else {
    }
    return
  }
  func.func @transform_0(%arg0: i32, %arg1: i32) -> (i32, i32, i32) {
    %c0_i32 = arith.constant 0 : i32
    %c0_i32_0 = arith.constant 0 : i32
    %c0_i32_1 = arith.constant 0 : i32
    return %arg0, %c0_i32, %c0_i32_0 : i32, i32, i32
  }
  func.func @transform_1(%arg0: i32, %arg1: i32) -> (i32, i32, i32) {
    %c0_i32 = arith.constant 0 : i32
    %c0_i32_0 = arith.constant 0 : i32
    %c0_i32_1 = arith.constant 0 : i32
    return %arg1, %c0_i32, %c0_i32_0 : i32, i32, i32
  }
  func.func @transform_2(%arg0: i32, %arg1: i32) -> (i32, i32, i32) {
    %c0_i32 = arith.constant 0 : i32
    %c0_i32_0 = arith.constant 0 : i32
    %c0_i32_1 = arith.constant 0 : i32
    return %arg1, %c0_i32, %c0_i32_0 : i32, i32, i32
  }
  func.func @transform_3(%arg0: i32, %arg1: i32) -> (i32, i32, i32) {
    %c0_i32 = arith.constant 0 : i32
    %c0_i32_0 = arith.constant 0 : i32
    %c0_i32_1 = arith.constant 0 : i32
    return %arg1, %c0_i32, %c0_i32_0 : i32, i32, i32
  }
  func.func @transform_4(%arg0: i32, %arg1: i32) -> (i32, i32, i32) {
    %c0_i32 = arith.constant 0 : i32
    %c0_i32_0 = arith.constant 0 : i32
    %c0_i32_1 = arith.constant 0 : i32
    return %arg1, %c0_i32, %c0_i32_0 : i32, i32, i32
  }
  func.func @transform_5(%arg0: i32, %arg1: i32) -> (i32, i32, i32) {
    %c0_i32 = arith.constant 0 : i32
    %c0_i32_0 = arith.constant 0 : i32
    %c0_i32_1 = arith.constant 0 : i32
    return %arg1, %c0_i32, %c0_i32_0 : i32, i32, i32
  }
  func.func @transform_6(%arg0: i32, %arg1: i32) -> (i32, i32, i32) {
    %c0_i32 = arith.constant 0 : i32
    %c0_i32_0 = arith.constant 0 : i32
    %c0_i32_1 = arith.constant 0 : i32
    return %arg1, %c0_i32, %c0_i32_0 : i32, i32, i32
  }
  func.func @transform_7(%arg0: i32, %arg1: i32) -> (i32, i32, i32) {
    %c0_i32 = arith.constant 0 : i32
    %c0_i32_0 = arith.constant 0 : i32
    %c0_i32_1 = arith.constant 0 : i32
    return %arg1, %c0_i32, %c0_i32_0 : i32, i32, i32
  }
  func.func @transform_8(%arg0: i32, %arg1: i32) -> (i32, i32, i32) {
    %c0_i32 = arith.constant 0 : i32
    %c0_i32_0 = arith.constant 0 : i32
    %c0_i32_1 = arith.constant 0 : i32
    return %arg1, %c0_i32, %c0_i32_0 : i32, i32, i32
  }
  func.func @transform_9(%arg0: i32, %arg1: i32) -> (i32, i32, i32) {
    %c0_i32 = arith.constant 0 : i32
    %c0_i32_0 = arith.constant 0 : i32
    %c0_i32_1 = arith.constant 0 : i32
    return %arg1, %c0_i32, %c0_i32_0 : i32, i32, i32
  }
  func.func @transform_10(%arg0: i32, %arg1: i32) -> (i32, i32, i32) {
    %c0_i32 = arith.constant 0 : i32
    %c0_i32_0 = arith.constant 0 : i32
    %c0_i32_1 = arith.constant 0 : i32
    return %arg1, %c0_i32, %c0_i32_0 : i32, i32, i32
  }
  func.func @transform_11(%arg0: i32, %arg1: i32) -> (i32, i32, i32) {
    %c0_i32 = arith.constant 0 : i32
    %c0_i32_0 = arith.constant 0 : i32
    %c0_i32_1 = arith.constant 0 : i32
    return %arg1, %c0_i32, %c0_i32_0 : i32, i32, i32
  }
  func.func @transform_12(%arg0: i32, %arg1: i32) -> (i32, i32, i32) {
    %c0_i32 = arith.constant 0 : i32
    %c0_i32_0 = arith.constant 0 : i32
    %c0_i32_1 = arith.constant 0 : i32
    return %arg0, %c0_i32, %c0_i32_0 : i32, i32, i32
  }
}

</mosaic_0001>

<bundles_post_ra>
// kernel: vit_forward.3
= control target key start
LH: loop header
LB: loop body
LE: loop exit
PB: predicated region body
PF: predicated region fallthrough
CT: control target
= control target key end

     0   :  { %12 = vsyncpa [#allocation3], 0  ;;  %s623_s0 = inlined_call_operand.vmem [shape: f32[14,20], index: 0, kind: input, shape index: {}]   ;;  %s624_s1 = inlined_call_operand.hbm [shape: f32[1,20], index: 1, kind: input, shape index: {}]   ;;  %s625_s2 = inlined_call_operand.hbm [shape: f32[1,20], index: 2, kind: input, shape index: {}]   ;;  %s626_s3 = inlined_call_operand.hbm [shape: f32[20,128], index: 3, kind: input, shape index: {}]   ;;  %s627_s4 = inlined_call_operand.hbm [shape: f32[1,128], index: 4, kind: input, shape index: {}]   ;;  %s628_s5 = inlined_call_operand.hbm [shape: f32[1,128], index: 5, kind: input, shape index: {}]   ;;  %s629_s6 = inlined_call_operand.hbm [shape: f32[1,128], index: 6, kind: input, shape index: {}]   ;;  %s630_s7 = inlined_call_operand.vmem [shape: f32[14,128], index: 7, kind: output, shape index: {}]  }
   0x1   :  { %13 = vsyncpa [#allocation5], 0 }
   0x2   :  { %14 = vsyncpa [#allocation8], 0 }
   0x3   :  { %15 = vsyncpa [#allocation11], 0  ;;  %s478_s24 = smov [#allocation4]   ;;  %s479_s26 = smov [#allocation7]  }
   0x4   :  { %s34_s25 = sshll.u32 %s478_s24, 4  ;;  %s56_s27 = sshll.u32 %s479_s26, 4  ;;  %s35_s25 = int_to_ptr.vmem [resolvable:$true] %s34_s25  ;;  %s57_s27 = int_to_ptr.vmem [resolvable:$true] %s56_s27 }
   0x5   :  { %s338_s30 = scalar_lea.hbm %s625_s2, 16 }
   0x6   :  { %p339_p0 = scmp.ne.s32.totalorder %s625_s2, %s338_s30  ;;  %p342_p1 = scmp.lt.u32.totalorder %s338_s30, %s625_s2 }
   0x8   :  { %p344_p2 = pnand %p342_p1, %p339_p0 }
   0xa   :  { %347 = shalt.err (!%p344_p2)
}
   0xb   :  { %s348_s12 = scalar_lea.vmem %s35_s25, 16  ;;  %s352_s13 = scalar_lea.vmem %s35_s25, 32 }
   0xc   :  { %p349_p3 = scmp.ne.s32.totalorder %s35_s25, %s348_s12  ;;  %p353_p4 = scmp.lt.s32.totalorder %s35_s25, %s35_s25 }
   0xd   :  { %p354_p5 = scmp.lt.s32.totalorder %s352_s13, %s348_s12 }
   0xf   :  { %p355_p6 = por %p354_p5, %p353_p4 }
  0x11   :  { %p356_p7 = pnand %p355_p6, %p349_p3 }
  0x13   :  { %359 = shalt.err (!%p356_p7)
}
  0x14   :  { %37 = dma.hbm_to_vmem [thread:$0]  %s625_s2, 16, %s35_s25, [#allocation5]  }
  0x15   :  { %s360_s18 = scalar_lea.hbm %s627_s4, 16 }
  0x16   :  { %p361_p8 = scmp.ne.s32.totalorder %s627_s4, %s360_s18  ;;  %p364_p9 = scmp.lt.u32.totalorder %s360_s18, %s627_s4 }
  0x18   :  { %p366_p10 = pnand %p364_p9, %p361_p8 }
  0x1a   :  { %369 = shalt.err (!%p366_p10)
}
  0x1b   :  { %s370_s23 = scalar_lea.vmem %s57_s27, 16  ;;  %s374_s24 = scalar_lea.vmem %s57_s27, 32 }
  0x1c   :  { %p371_p11 = scmp.ne.s32.totalorder %s57_s27, %s370_s23  ;;  %p375_p12 = scmp.lt.s32.totalorder %s57_s27, %s57_s27 }
  0x1d   :  { %p376_p13 = scmp.lt.s32.totalorder %s374_s24, %s370_s23 }
  0x1f   :  { %p377_p0 = por %p376_p13, %p375_p12 }
  0x21   :  { %p378_p1 = pnand %p377_p0, %p371_p11 }
  0x23   :  { %381 = shalt.err (!%p378_p1)
}
  0x24   :  { %59 = dma.hbm_to_vmem [thread:$0]  %s627_s4, 16, %s57_s27, [#allocation8]  }
  0x25   :  { %s480_s26 = smov [#allocation2]   ;;  %s481_s29 = smov [#allocation6]  }
  0x26   :  { %s24_s28 = sshll.u32 %s480_s26, 4  ;;  %s43_s30 = sshll.u32 %s481_s29, 4  ;;  %s25_s28 = int_to_ptr.vmem [resolvable:$true] %s24_s28  ;;  %s550_s30 = int_to_ptr.vmem [resolvable:$true] %s43_s30 }
  0x27   :  { %s382_s10 = scalar_lea.hbm %s624_s1, 16 }
  0x28   :  { %p383_p2 = scmp.ne.s32.totalorder %s624_s1, %s382_s10  ;;  %p386_p3 = scmp.lt.u32.totalorder %s382_s10, %s624_s1 }
  0x2a   :  { %p388_p4 = pnand %p386_p3, %p383_p2 }
  0x2c   :  { %391 = shalt.err (!%p388_p4)
}
  0x2d   :  { %s392_s4 = scalar_lea.vmem %s25_s28, 16  ;;  %s396_s27 = scalar_lea.vmem %s25_s28, 32 }
  0x2e   :  { %p393_p5 = scmp.ne.s32.totalorder %s25_s28, %s392_s4  ;;  %p397_p6 = scmp.lt.s32.totalorder %s25_s28, %s25_s28 }
  0x2f   :  { %p398_p7 = scmp.lt.s32.totalorder %s396_s27, %s392_s4 }
  0x31   :  { %p399_p8 = por %p398_p7, %p397_p6 }
  0x33   :  { %p400_p9 = pnand %p399_p8, %p393_p5 }
  0x35   :  { %403 = shalt.err (!%p400_p9)
}
  0x36   :  { %27 = dma.hbm_to_vmem [thread:$0]  %s624_s1, 16, %s25_s28, [#allocation3]  }
  0x37   :  { %s404_s19 = scalar_lea.hbm %s626_s3, 384 }
  0x38   :  { %p405_p10 = scmp.ne.s32.totalorder %s626_s3, %s404_s19  ;;  %p408_p11 = scmp.lt.u32.totalorder %s404_s19, %s626_s3 }
  0x3a   :  { %p410_p12 = pnand %p408_p11, %p405_p10 }
  0x3c   :  { %413 = shalt.err (!%p410_p12)
}
  0x3d   :  { %s414_s24 = scalar_lea.vmem %s550_s30, 384  ;;  %p419_p0 = scmp.lt.s32.totalorder %s550_s30, %s550_s30 }
  0x3e   :  { %p415_p13 = scmp.ne.s32.totalorder %s550_s30, %s414_s24  ;;  %p420_p1 = scmp.lt.s32.totalorder %s414_s24, %s414_s24 }
  0x40   :  { %p421_p2 = por %p420_p1, %p419_p0 }
  0x42   :  { %p422_p3 = pnand %p421_p2, %p415_p13 }
  0x44   :  { %425 = shalt.err (!%p422_p3)
}
  0x45   :  { %s482_s1 = smov 128   ;;  %s483_s2 = smov 8  }
  0x46   :  { %49 = dma.hbm_to_vmem [thread:$0]  %s626_s3, 384, %s550_s30, [#allocation5], %s482_s1, %s482_s1, %s483_s2  }
  0x47   :  { %s484_s28 = smov [#allocation9]   ;;  %s485_s8 = smov [#allocation10]  }
  0x48   :  { %s66_s29 = sshll.u32 %s484_s28, 4  ;;  %s76_s9 = sshll.u32 %s485_s8, 4  ;;  %s67_s29 = int_to_ptr.vmem [resolvable:$true] %s66_s29  ;;  %s77_s9 = int_to_ptr.vmem [resolvable:$true] %s76_s9 }
  0x49   :  { %s426_s12 = scalar_lea.hbm %s628_s5, 16 }
  0x4a   :  { %p427_p4 = scmp.ne.s32.totalorder %s628_s5, %s426_s12  ;;  %p430_p5 = scmp.lt.u32.totalorder %s426_s12, %s628_s5 }
  0x4c   :  { %p432_p6 = pnand %p430_p5, %p427_p4 }
  0x4e   :  { %435 = shalt.err (!%p432_p6)
}
  0x4f   :  { %s436_s3 = scalar_lea.vmem %s67_s29, 16  ;;  %s440_s30 = scalar_lea.vmem %s67_s29, 32 }
  0x50   :  { %p437_p7 = scmp.ne.s32.totalorder %s67_s29, %s436_s3  ;;  %p441_p8 = scmp.lt.s32.totalorder %s67_s29, %s67_s29 }
  0x51   :  { %p442_p9 = scmp.lt.s32.totalorder %s440_s30, %s436_s3 }
  0x53   :  { %p443_p10 = por %p442_p9, %p441_p8 }
  0x55   :  { %p444_p11 = pnand %p443_p10, %p437_p7 }
  0x57   :  { %447 = shalt.err (!%p444_p11)
}
  0x58   :  { %69 = dma.hbm_to_vmem [thread:$0]  %s628_s5, 16, %s67_s29, [#allocation8]  }
  0x59   :  { %s448_s19 = scalar_lea.hbm %s629_s6, 16 }
  0x5a   :  { %p449_p12 = scmp.ne.s32.totalorder %s629_s6, %s448_s19  ;;  %p452_p13 = scmp.lt.u32.totalorder %s448_s19, %s629_s6 }
  0x5c   :  { %p454_p0 = pnand %p452_p13, %p449_p12 }
  0x5e   :  { %457 = shalt.err (!%p454_p0)
}
  0x5f   :  { %s458_s24 = scalar_lea.vmem %s77_s9, 16  ;;  %s462_s1 = scalar_lea.vmem %s77_s9, 32 }
  0x60   :  { %p459_p1 = scmp.ne.s32.totalorder %s77_s9, %s458_s24  ;;  %p463_p2 = scmp.lt.s32.totalorder %s77_s9, %s77_s9 }
  0x61   :  { %p464_p3 = scmp.lt.s32.totalorder %s462_s1, %s458_s24 }
  0x63   :  { %p465_p4 = por %p464_p3, %p463_p2 }
  0x65   :  { %p466_p5 = pnand %p465_p4, %p459_p1 }
  0x67   :  { %469 = shalt.err (!%p466_p5)
}
  0x68   :  { %79 = dma.hbm_to_vmem [thread:$0]  %s629_s6, 16, %s77_s9, [#allocation11]  }
  0x69   :  { %470 = dma.done.wait [#allocation3], 16  }
  0x6a   :  { %471 = vsyncadd [#allocation3], 4294967280 }
  0x6b   :  { %472 = dma.done.wait [#allocation5], 400  }
  0x6c   :  { %473 = vsyncadd [#allocation5], 4294966896 }
  0x6d   :  { %474 = dma.done.wait [#allocation8], 32  }
  0x6e   :  { %475 = vsyncadd [#allocation8], 4294967264 }
  0x6f   :  { %476 = dma.done.wait [#allocation11], 16  }
  0x70   :  { %477 = vsyncadd [#allocation11], 4294967280  ;;  %vm102_vm0 = vcmask 162816   ;;  %v98_v0 = vld [vmem:[%s623_s0] sm:$0xff]  ;;  %v99_v1 = vld [vmem:[%s623_s0 + $0x8] sm:$0x3f] }
  0x71   :  { %vm106_vm1 = vcmask 160768   ;;  %v103_v2 = vsel %vm102_vm0, %v98_v0, 0.0  ;;  %v147_v14 = vld [vmem:[#allocation6] sm:$0xff]  ;;  %v148_v15 = vld [vmem:[#allocation6 + $0x8] sm:$0xff]  ;;  %v149_v17 = vld [vmem:[#allocation6 + $0x10] sm:$0xf] }
  0x72   :  { %104 = vadd.xlane.f32.xlu0 %v103_v2  ;;  %v107_v3 = vsel %vm106_vm1, %v99_v1, 0.0  ;;  %v318_v16 = vpack.c.bf16 %v148_v15, %v147_v14  ;;  %vm163_vm2 = vcmask 1043456   ;;  %v296_v25 = vld [vmem:[#allocation2] ss:$0 sm:$0xff]  ;;  %v297_v27 = vld [vmem:[#allocation4] ss:$0 sm:$0xff] }
  0x73   :  { %v298_v34 = vld [vmem:[#allocation7] ss:$0 sm:$0xff]  ;;  %vm246_vm3 = vcmask 1045504   ;;  %v302_v56 = vld [vmem:[#allocation9] ss:$0 sm:$0xff] }
  0x74   :  { %319 = vmatprep.subr.bf16.mxu0 %v318_v16  ;;  %v303_v59 = vld [vmem:[#allocation10] ss:$0 sm:$0xff] }
  0x75   :  { %321 = vmatpush3.bf16.msra.mxu0 %v318_v16 }
  0x76   :  { %108 = vadd.xlane.f32.xlu0 %v107_v3  ;;  %313 = vmatprep.subr.msk.mxu0 %vm163_vm2, %v149_v17 }
  0x79   :  { %314 = vmatpush3.msk.msra.mxu0 %vm163_vm2, %v149_v17 }
  0xff   :  { %v105_v4 = vpop.xlane.xlu0 %104 }
 0x100   :  { %v111_v5 = vmul.f32 0.05, %v105_v4 }
 0x102   :  { %v113_v6 = vsub.f32 %v98_v0, %v111_v5 }
 0x103   :  { %v109_v7 = vpop.xlane.xlu0 %108 }
 0x104   :  { %v112_v8 = vmul.f32 0.05, %v109_v7  ;;  %v115_v9 = vmul.f32 %v113_v6, %v113_v6 }
 0x106   :  { %v114_v10 = vsub.f32 %v99_v1, %v112_v8  ;;  %v117_v11 = vsel %vm102_vm0, %v115_v9, 0.0 }
 0x107   :  { %118 = vadd.xlane.f32.xlu1 %v117_v11 }
 0x108   :  { %v116_v12 = vmul.f32 %v114_v10, %v114_v10 }
 0x10a   :  { %v120_v13 = vsel %vm106_vm1, %v116_v12, 0.0 }
 0x10b   :  { %121 = vadd.xlane.f32.xlu1 %v120_v13 }
 0x194   :  { %v119_v18 = vpop.xlane.xlu1 %118 }
 0x195   :  { %v123_v19 = vmul.f32 0.05, %v119_v18 }
 0x197   :  { %v125_v20 = vadd.f32 1e-05, %v123_v19 }
 0x198   :  { %v122_v21 = vpop.xlane.xlu1 %121 }
 0x199   :  { %330 = vrsqrt.f32 %v125_v20  ;;  %v124_v22 = vmul.f32 0.05, %v122_v21 }
 0x19b   :  { %v126_v23 = vadd.f32 1e-05, %v124_v22 }
 0x19d   :  { %332 = vrsqrt.f32 %v126_v23 }
 0x1a3   :  { %v331_v24 = vpop.eup %330 }
 0x1a4   :  { %v129_v26 = vmul.f32 %v331_v24, %v113_v6 }
 0x1a6   :  { %v137_v28 = vmul.f32 %v296_v25, %v129_v26 }
 0x1a7   :  { %v333_v29 = vpop.eup %332 }
 0x1a8   :  { %v130_v30 = vmul.f32 %v333_v29, %v114_v10  ;;  %v145_v31 = vadd.f32 %v297_v27, %v137_v28 }
 0x1aa   :  { %v138_v32 = vmul.f32 %v296_v25, %v130_v30  ;;  %315 = vmatprep.mubr.msk.f32.mxu0 %vm102_vm0, %v145_v31 }
 0x1ac   :  { %v146_v33 = vadd.f32 %v297_v27, %v138_v32 }
 0x1ae   :  { %316 = vmatmul.mubr.msk.f32.vlgmr.msra.gmra.mrb[0].mxu0 %vm102_vm0, %v146_v33 }
 0x281   :  { %v317_v35 = vpop.f32.mrb[0].mxu0 }
 0x282   :  { %v239_v36 = vadd.f32 %v317_v35, %v298_v34  ;;  %v233_v37 = vpop.f32.mrb[1].mxu0 }
 0x283   :  { %v234_v38 = vadd.f32 %v298_v34, %v233_v37 }
 0x284   :  { %v247_v39 = vsel %vm246_vm3, %v239_v36, 0.0 }
 0x285   :  { %248 = vadd.xlane.f32.xlu0 %v247_v39  ;;  %244 = vadd.xlane.f32.xlu1 %v234_v38 }
 0x312   :  { %v249_v40 = vpop.xlane.xlu0 %248  ;;  %v245_v41 = vpop.xlane.xlu1 %244 }
 0x313   :  { %v252_v42 = vmul.f32 0.0078125, %v249_v40  ;;  %v251_v43 = vmul.f32 0.0078125, %v245_v41 }
 0x315   :  { %v254_v44 = vsub.f32 %v239_v36, %v252_v42  ;;  %v253_v45 = vsub.f32 %v234_v38, %v251_v43 }
 0x317   :  { %v255_v46 = vmul.f32 %v253_v45, %v253_v45  ;;  %v256_v47 = vmul.f32 %v254_v44, %v254_v44 }
 0x319   :  { %257 = vadd.xlane.f32.xlu0 %v255_v46  ;;  %v259_v48 = vsel %vm246_vm3, %v256_v47, 0.0 }
 0x31a   :  { %260 = vadd.xlane.f32.xlu1 %v259_v48 }
 0x3a6   :  { %v258_v49 = vpop.xlane.xlu0 %257 }
 0x3a7   :  { %v262_v50 = vmul.f32 0.0078125, %v258_v49  ;;  %v261_v51 = vpop.xlane.xlu1 %260 }
 0x3a8   :  { %v263_v52 = vmul.f32 0.0078125, %v261_v51 }
 0x3a9   :  { %v264_v53 = vadd.f32 1e-05, %v262_v50 }
 0x3aa   :  { %v265_v54 = vadd.f32 1e-05, %v263_v52 }
 0x3ab   :  { %334 = vrsqrt.f32 %v264_v53 }
 0x3ac   :  { %336 = vrsqrt.f32 %v265_v54 }
 0x3b5   :  { %v335_v55 = vpop.eup %334 }
 0x3b6   :  { %v337_v57 = vpop.eup %336  ;;  %v268_v58 = vmul.f32 %v335_v55, %v253_v45 }
 0x3b7   :  { %v269_v60 = vmul.f32 %v337_v57, %v254_v44 }
 0x3b8   :  { %v276_v61 = vmul.f32 %v302_v56, %v268_v58 }
 0x3b9   :  { %v277_v62 = vmul.f32 %v302_v56, %v269_v60 }
 0x3ba   :  { %v284_v63 = vadd.f32 %v303_v59, %v276_v61 }
 0x3bb   :  { %v285_v0 = vadd.f32 %v303_v59, %v277_v62 }
 0x3bc   :  { %286 = vst [vmem:[%s630_s7] sm:$0xff] %v284_v63 }
 0x3bd   :  { %287 = vst [vmem:[%s630_s7 + $0x8] sm:$0x3f] %v285_v0 }
 0x3be   :  { %292 = vsyncpa [#allocation3], 1 }
 0x3bf   :  { %293 = vsyncpa [#allocation5], 1 }
 0x3c0   :  { %294 = vsyncpa [#allocation8], 1 }
 0x3c1   :  { %295 = vsyncpa [#allocation11], 1 }

// kernel: vit_forward.5
= control target key start
LH: loop header
LB: loop body
LE: loop exit
PB: predicated region body
PF: predicated region fallthrough
CT: control target
= control target key end

     0   :  { %s1468_s0 = inlined_call_operand.vmem [shape: f32[2,128], index: 0, kind: input, shape index: {}]   ;;  %s1469_s1 = inlined_call_operand.vmem [shape: f32[1,128], index: 1, kind: input, shape index: {}]   ;;  %s1470_s2 = inlined_call_operand.vmem [shape: f32[1,128], index: 2, kind: input, shape index: {}]   ;;  %s1471_s3 = inlined_call_operand.vmem [shape: f32[128,7], index: 3, kind: input, shape index: {}]   ;;  %s1472_s4 = inlined_call_operand.vmem [shape: f32[1,7], index: 4, kind: input, shape index: {}]   ;;  %s1473_s5 = inlined_call_operand.vmem [shape: f32[1,128], index: 5, kind: input, shape index: {}]   ;;  %s1474_s6 = inlined_call_operand.vmem [shape: f32[1,128], index: 6, kind: input, shape index: {}]   ;;  %s1475_s7 = inlined_call_operand.vmem [shape: f32[128,7], index: 7, kind: input, shape index: {}]   ;;  %s1476_s8 = inlined_call_operand.vmem [shape: f32[1,7], index: 8, kind: input, shape index: {}]   ;;  %s1477_s9 = inlined_call_operand.vmem [shape: f32[1,128], index: 9, kind: input, shape index: {}]   ;;  %s1478_s10 = inlined_call_operand.vmem [shape: f32[1,128], index: 10, kind: input, shape index: {}]   ;;  %s1479_s11 = inlined_call_operand.vmem [shape: f32[128,230], index: 11, kind: input, shape index: {}]   ;;  %s1480_s12 = inlined_call_operand.vmem [shape: f32[1,230], index: 12, kind: input, shape index: {}]   ;;  %s1481_s13 = inlined_call_operand.vmem [shape: f32[1,128], index: 13, kind: input, shape index: {}]   ;;  %s1482_s14 = inlined_call_operand.vmem [shape: f32[1,128], index: 14, kind: input, shape index: {}]   ;;  %s1483_s15 = inlined_call_operand.vmem [shape: f32[128,118], index: 15, kind: input, shape index: {}]   ;;  %s1484_s16 = inlined_call_operand.vmem [shape: f32[1,118], index: 16, kind: input, shape index: {}]   ;;  %s1485_s17 = inlined_call_operand.hbm [shape: f32[2,7], index: 17, kind: output, shape index: {0}]   ;;  %s1486_s18 = inlined_call_operand.hbm [shape: f32[2,7], index: 18, kind: output, shape index: {1}]   ;;  %s1487_s19 = inlined_call_operand.hbm [shape: f32[2,230], index: 19, kind: output, shape index: {2}]   ;;  %s1488_s20 = inlined_call_operand.hbm [shape: f32[2,118], index: 20, kind: output, shape index: {3}]  }
   0x1   :  { %1490 = sst [smem:[#allocation12_spill]] %s1468_s0 }
   0x2   :  { %1491 = sst [smem:[#allocation13_spill]] %s1469_s1 }
   0x3   :  { %1492 = sst [smem:[#allocation14_spill]] %s1470_s2 }
   0x4   :  { %1493 = sst [smem:[#allocation15_spill]] %s1471_s3 }
   0x5   :  { %1494 = sst [smem:[#allocation16_spill]] %s1472_s4 }
   0x6   :  { %26 = vsyncpa [#allocation3], 0 }
   0x7   :  { %27 = vsyncpa [#allocation5], 0  ;;  %s1495_s23 = sld [smem:[#allocation12_spill]]  ;;  %vm64_vm0 = vcmask 1041408  }
   0xd   :  { %v63_v0 = vld [vmem:[%s1495_s23] sm:$0x3] }
   0xe   :  { %28 = vsyncpa [#allocation8], 0  ;;  %v65_v1 = vsel %vm64_vm0, %v63_v0, 0.0  ;;  %s1496_s25 = sld [smem:[#allocation15_spill]]  ;;  %v206_v4 = vld [vmem:[%s1475_s7] sm:$0xff]  ;;  %v986_v5 = vmov 0.0|0.0  }
   0xf   :  { %66 = vadd.xlane.f32.xlu0 %v65_v1  ;;  %778 = vmatprep.subr.bf16.mxu0 %v986_v5  ;;  %v207_v7 = vld [vmem:[%s1475_s7 + $0x8] sm:$0xff]  ;;  %v208_v11 = vld [vmem:[%s1475_s7 + $0x10] sm:$0xff]  ;;  %v209_v12 = vld [vmem:[%s1475_s7 + $0x18] sm:$0xff]  ;;  %vm987_vm1 = vmmov 0   ;;  %v988_v58 = vmov 0.0   ;;  %s1497_s22 = sld [smem:[#allocation13_spill]] }
  0x10   :  { %802 = vmatprep.subr.bf16.mxu1 %v986_v5  ;;  %v803_v10 = vpack.c.bf16 %v207_v7, %v206_v4  ;;  %v806_v14 = vpack.c.bf16 %v209_v12, %v208_v11  ;;  %v210_v17 = vld [vmem:[%s1475_s7 + $0x20] sm:$0xff]  ;;  %v211_v18 = vld [vmem:[%s1475_s7 + $0x28] sm:$0xff]  ;;  %v212_v28 = vld [vmem:[%s1475_s7 + $0x30] sm:$0xff]  ;;  %705 = vmatprep.mubr.msk.f32.mxu0 %vm987_vm1, %v988_v58  ;;  %s1498_s2 = sld [smem:[#allocation14_spill]]  ;;  %s989_s24 = smov [#allocation4]   ;;  %vm188_vm2 = vcmask 50176  }
  0x11   :  { %v809_v20 = vpack.c.bf16 %v211_v18, %v210_v17  ;;  %v213_v30 = vld [vmem:[%s1475_s7 + $0x38] sm:$0xff]  ;;  %v214_v34 = vld [vmem:[%s1475_s7 + $0x40] sm:$0xff]  ;;  %v215_v36 = vld [vmem:[%s1475_s7 + $0x48] sm:$0xff]  ;;  %740 = vmatprep.mubr.msk.f32.mxu1 %vm987_vm1, %v988_v58 }
  0x12   :  { %804 = vmatpush3.bf16.msra.mxu1 %v803_v10  ;;  %v812_v31 = vpack.c.bf16 %v213_v30, %v212_v28  ;;  %v815_v37 = vpack.c.bf16 %v215_v36, %v214_v34  ;;  %v216_v40 = vld [vmem:[%s1475_s7 + $0x50] sm:$0xff]  ;;  %v217_v42 = vld [vmem:[%s1475_s7 + $0x58] sm:$0xff]  ;;  %v218_v46 = vld [vmem:[%s1475_s7 + $0x60] sm:$0xff] }
  0x13   :  { %805 = vmatprep.subr.bf16.mxu1 %v986_v5  ;;  %v818_v43 = vpack.c.bf16 %v217_v42, %v216_v40  ;;  %v219_v48 = vld [vmem:[%s1475_s7 + $0x68] sm:$0xff]  ;;  %v220_v52 = vld [vmem:[%s1475_s7 + $0x70] sm:$0xff]  ;;  %v221_v54 = vld [vmem:[%s1475_s7 + $0x78] sm:$0xff] }
  0x14   :  { %v95_v2 = vld [vmem:[%s1496_s25] sm:$0xff]  ;;  %v96_v3 = vld [vmem:[%s1496_s25 + $0x8] sm:$0xff]  ;;  %v97_v8 = vld [vmem:[%s1496_s25 + $0x10] sm:$0xff]  ;;  %v821_v49 = vpack.c.bf16 %v219_v48, %v218_v46  ;;  %v824_v57 = vpack.c.bf16 %v221_v54, %v220_v52 }
  0x15   :  { %v779_v6 = vpack.c.bf16 %v96_v3, %v95_v2  ;;  %v98_v9 = vld [vmem:[%s1496_s25 + $0x18] sm:$0xff]  ;;  %v99_v15 = vld [vmem:[%s1496_s25 + $0x20] sm:$0xff]  ;;  %v100_v16 = vld [vmem:[%s1496_s25 + $0x28] sm:$0xff] }
  0x16   :  { %v782_v13 = vpack.c.bf16 %v98_v9, %v97_v8  ;;  %v785_v19 = vpack.c.bf16 %v100_v16, %v99_v15  ;;  %807 = vmatpush3.bf16.msra.mxu1 %v806_v14  ;;  %v101_v26 = vld [vmem:[%s1496_s25 + $0x30] sm:$0xff]  ;;  %v102_v27 = vld [vmem:[%s1496_s25 + $0x38] sm:$0xff]  ;;  %v103_v32 = vld [vmem:[%s1496_s25 + $0x40] sm:$0xff] }
  0x17   :  { %780 = vmatpush3.bf16.msra.mxu0 %v779_v6  ;;  %808 = vmatprep.subr.bf16.mxu1 %v986_v5  ;;  %v788_v29 = vpack.c.bf16 %v102_v27, %v101_v26  ;;  %v104_v33 = vld [vmem:[%s1496_s25 + $0x48] sm:$0xff]  ;;  %v105_v38 = vld [vmem:[%s1496_s25 + $0x50] sm:$0xff]  ;;  %v106_v39 = vld [vmem:[%s1496_s25 + $0x58] sm:$0xff] }
  0x18   :  { %781 = vmatprep.subr.bf16.mxu0 %v986_v5  ;;  %v791_v35 = vpack.c.bf16 %v104_v33, %v103_v32  ;;  %v794_v41 = vpack.c.bf16 %v106_v39, %v105_v38  ;;  %v107_v44 = vld [vmem:[%s1496_s25 + $0x60] sm:$0xff]  ;;  %v108_v45 = vld [vmem:[%s1496_s25 + $0x68] sm:$0xff]  ;;  %v109_v50 = vld [vmem:[%s1496_s25 + $0x70] sm:$0xff] }
  0x19   :  { %v797_v47 = vpack.c.bf16 %v108_v45, %v107_v44  ;;  %v110_v51 = vld [vmem:[%s1496_s25 + $0x78] sm:$0xff]  ;;  %v317_v55 = vld [vmem:[%s1479_s11 + $0x8] sm:$0xff]  ;;  %v611_v63 = vld [vmem:[%s1497_s22] ss:$0 sm:$0xff]  ;;  %s1499_s25 = sld [smem:[#allocation16_spill]] }
  0x1a   :  { %810 = vmatpush3.bf16.msra.mxu1 %v809_v20  ;;  %v800_v53 = vpack.c.bf16 %v110_v51, %v109_v50  ;;  %v319_v56 = vld [vmem:[%s1479_s11 + $0x18] sm:$0xff]  ;;  %v612_v1 = vld [vmem:[%s1498_s2] ss:$0 sm:$0xff]  ;;  %v318_v6 = vld [vmem:[%s1479_s11 + $0x10] sm:$0xff]  ;;  %s990_s2 = smov [#allocation2]  }
  0x1b   :  { %783 = vmatpush3.bf16.msra.mxu0 %v782_v13  ;;  %811 = vmatprep.subr.bf16.mxu1 %v986_v5  ;;  %v826_v59 = vpack.c.bf16 %v319_v56, %v317_v55  ;;  %v614_v2 = vld [vmem:[%s1473_s5] ss:$0 sm:$0xff]  ;;  %v462_v8 = vld [vmem:[%s1483_s15 + $0x8] sm:$0xff]  ;;  %v323_v11 = vld [vmem:[%s1479_s11 + $0x38] sm:$0xff]  ;;  %s562_s3 = sshll.u32 %s990_s2, 4  ;;  %s563_s3 = int_to_ptr.vmem [resolvable:$true] %s562_s3 }
  0x1c   :  { %784 = vmatprep.subr.bf16.mxu0 %v986_v5  ;;  %v316_v3 = vld [vmem:[%s1479_s11] sm:$0xff]  ;;  %v321_v10 = vld [vmem:[%s1479_s11 + $0x28] sm:$0xff]  ;;  %v322_v20 = vld [vmem:[%s1479_s11 + $0x30] sm:$0xff] }
  0x1d   :  { %v461_v7 = vld [vmem:[%s1483_s15] sm:$0xff]  ;;  %v828_v14 = vpack.c.bf16 %v318_v6, %v316_v3  ;;  %v329_v32 = vld [vmem:[%s1479_s11 + $0x68] sm:$0xff]  ;;  %v331_v33 = vld [vmem:[%s1479_s11 + $0x78] sm:$0xff] }
  0x1e   :  { %813 = vmatpush3.bf16.msra.mxu1 %v812_v31  ;;  %v615_v9 = vld [vmem:[%s1474_s6] ss:$0 sm:$0xff]  ;;  %v859_v15 = vpack.c.bf16 %v462_v8, %v461_v7  ;;  %v466_v31 = vld [vmem:[%s1483_s15 + $0x28] sm:$0xff]  ;;  %v330_v38 = vld [vmem:[%s1479_s11 + $0x70] sm:$0xff] }
  0x1f   :  { %786 = vmatpush3.bf16.msra.mxu0 %v785_v19  ;;  %814 = vmatprep.subr.bf16.mxu1 %v986_v5  ;;  %v320_v16 = vld [vmem:[%s1479_s11 + $0x20] sm:$0xff]  ;;  %v830_v19 = vpack.c.bf16 %v323_v11, %v321_v10  ;;  %v467_v39 = vld [vmem:[%s1483_s15 + $0x30] sm:$0xff]  ;;  %v468_v40 = vld [vmem:[%s1483_s15 + $0x38] sm:$0xff] }
  0x20   :  { %787 = vmatprep.subr.bf16.mxu0 %v986_v5  ;;  %v324_v27 = vld [vmem:[%s1479_s11 + $0x40] sm:$0xff]  ;;  %v335_v42 = vld [vmem:[%s1479_s11 + $0x98] sm:$0xff]  ;;  %v868_v44 = vpack.c.bf16 %v468_v40, %v467_v39  ;;  %v337_v50 = vld [vmem:[%s1479_s11 + $0xa8] sm:$0xff] }
  0x21   :  { %v465_v30 = vld [vmem:[%s1483_s15 + $0x20] sm:$0xff]  ;;  %v339_v51 = vld [vmem:[%s1479_s11 + $0xb8] sm:$0xff]  ;;  %v338_v56 = vld [vmem:[%s1479_s11 + $0xb0] sm:$0xff] }
  0x22   :  { %816 = vmatpush3.bf16.msra.mxu1 %v815_v37  ;;  %v328_v36 = vld [vmem:[%s1479_s11 + $0x60] sm:$0xff]  ;;  %v838_v37 = vpack.c.bf16 %v331_v33, %v329_v32  ;;  %v846_v55 = vpack.c.bf16 %v339_v51, %v337_v50  ;;  %v474_v3 = vld [vmem:[%s1483_s15 + $0x68] sm:$0xff]  ;;  %v347_v7 = vld [vmem:[%s1479_s11 + $0xf8] sm:$0xff] }
  0x23   :  { %789 = vmatpush3.bf16.msra.mxu0 %v788_v29  ;;  %817 = vmatprep.subr.bf16.mxu1 %v986_v5  ;;  %v326_v29 = vld [vmem:[%s1479_s11 + $0x50] sm:$0xff]  ;;  %v332_v45 = vld [vmem:[%s1479_s11 + $0x80] sm:$0xff]  ;;  %v345_v6 = vld [vmem:[%s1479_s11 + $0xe8] sm:$0xff] }
  0x24   :  { %790 = vmatprep.subr.bf16.mxu0 %v986_v5  ;;  %v836_v34 = vpack.c.bf16 %v326_v29, %v324_v27  ;;  %v469_v48 = vld [vmem:[%s1483_s15 + $0x40] sm:$0xff]  ;;  %v854_v11 = vpack.c.bf16 %v347_v7, %v345_v6 }
  0x25   :  { %v336_v54 = vld [vmem:[%s1479_s11 + $0xa0] sm:$0xff] }
  0x26   :  { %819 = vmatpush3.bf16.msra.mxu1 %v818_v43  ;;  %v840_v43 = vpack.c.bf16 %v330_v38, %v328_v36  ;;  %v344_v10 = vld [vmem:[%s1479_s11 + $0xe0] sm:$0xff] }
  0x27   :  { %792 = vmatpush3.bf16.msra.mxu0 %v791_v35  ;;  %820 = vmatprep.subr.bf16.mxu1 %v986_v5  ;;  %v865_v35 = vpack.c.bf16 %v466_v31, %v465_v30 }
  0x28   :  { %793 = vmatprep.subr.bf16.mxu0 %v986_v5 }
  0x2a   :  { %822 = vmatpush3.bf16.msra.mxu1 %v821_v49  ;;  %v470_v49 = vld [vmem:[%s1483_s15 + $0x48] sm:$0xff] }
  0x2b   :  { %795 = vmatpush3.bf16.msra.mxu0 %v794_v41  ;;  %823 = vmatprep.subr.bf16.mxu1 %v986_v5  ;;  %v333_v41 = vld [vmem:[%s1479_s11 + $0x88] sm:$0xff] }
  0x2c   :  { %796 = vmatprep.subr.bf16.mxu0 %v986_v5  ;;  %v842_v46 = vpack.c.bf16 %v335_v42, %v333_v41 }
  0x2e   :  { %825 = vmatpush3.bf16.msra.mxu1 %v824_v57  ;;  %v471_v57 = vld [vmem:[%s1483_s15 + $0x50] sm:$0xff] }
  0x2f   :  { %798 = vmatpush3.bf16.msra.mxu0 %v797_v47  ;;  %858 = vmatprep.subr.bf16.mxu1 %v986_v5  ;;  %v334_v47 = vld [vmem:[%s1479_s11 + $0x90] sm:$0xff] }
  0x30   :  { %799 = vmatprep.subr.bf16.mxu0 %v986_v5  ;;  %v844_v52 = vpack.c.bf16 %v334_v47, %v332_v45 }
  0x33   :  { %801 = vmatpush3.bf16.msra.mxu0 %v800_v53  ;;  %v871_v53 = vpack.c.bf16 %v470_v49, %v469_v48 }
  0x34   :  { %827 = vmatprep.subr.bf16.mxu0 %v826_v59  ;;  %v341_v59 = vld [vmem:[%s1479_s11 + $0xc8] sm:$0xff] }
  0x9c   :  { %v67_v21 = vpop.xlane.xlu0 %66 }
  0x9d   :  { %v69_v22 = vmul.f32 0.0078125, %v67_v21  ;;  %v463_v21 = vld [vmem:[%s1483_s15 + $0x10] sm:$0xff] }
  0x9f   :  { %v1147_v23 = vsub.f32 %v63_v0, %v69_v22  ;;  %v464_v22 = vld [vmem:[%s1483_s15 + $0x18] sm:$0xff] }
  0xa0   :  { %v862_v26 = vpack.c.bf16 %v464_v22, %v463_v21  ;;  %v618_v21 = vld [vmem:[%s1478_s10] ss:$0 sm:$0xff]  ;;  %s572_s10 = sshll.u32 %s989_s24, 4  ;;  %s573_s10 = int_to_ptr.vmem [resolvable:$true] %s572_s10 }
  0xa1   :  { %v71_v24 = vmul.f32 %v1147_v23, %v1147_v23  ;;  %v620_v22 = vld [vmem:[%s1482_s14] ss:$0 sm:$0xff]  ;;  %s892_s14 = scalar_lea.vmem %s573_s10, 32  ;;  %p897_p1 = scmp.lt.s32.totalorder %s573_s10, %s573_s10 }
  0xa2   :  { %p893_p0 = scmp.ne.s32.totalorder %s573_s10, %s892_s14  ;;  %p898_p2 = scmp.lt.s32.totalorder %s892_s14, %s892_s14 }
  0xa3   :  { %v72_v25 = vsel %vm64_vm0, %v71_v24, 0.0  ;;  %v327_v24 = vld [vmem:[%s1479_s11 + $0x58] sm:$0xff] }
  0xa4   :  { %73 = vadd.xlane.f32.xlu0 %v72_v25  ;;  %v832_v25 = vpack.c.bf16 %v322_v20, %v320_v16  ;;  %v619_v16 = vld [vmem:[%s1481_s13] ss:$0 sm:$0xff]  ;;  %p899_p3 = por %p898_p2, %p897_p1 }
  0xa6   :  { %p900_p4 = pnand %p899_p3, %p893_p0 }
 0x131   :  { %v74_v60 = vpop.xlane.xlu0 %73 }
 0x132   :  { %v75_v61 = vmul.f32 0.0078125, %v74_v60  ;;  %v343_v60 = vld [vmem:[%s1479_s11 + $0xd8] sm:$0xff] }
 0x134   :  { %v76_v62 = vadd.f32 1e-05, %v75_v61  ;;  %v848_v61 = vpack.c.bf16 %v338_v56, %v336_v54 }
 0x136   :  { %890 = vrsqrt.f32 %v76_v62 }
 0x140   :  { %v891_v0 = vpop.eup %890 }
 0x141   :  { %v1242_v4 = vmul.f32 %v891_v0, %v1147_v23  ;;  %v325_v23 = vld [vmem:[%s1479_s11 + $0x48] sm:$0xff]  ;;  %v850_v0 = vpack.c.bf16 %v343_v60, %v341_v59 }
 0x142   :  { %v834_v28 = vpack.c.bf16 %v327_v24, %v325_v23 }
 0x143   :  { %v86_v12 = vmul.f32 %v611_v63, %v1242_v4  ;;  %v197_v13 = vmul.f32 %v614_v2, %v1242_v4  ;;  %v340_v63 = vld [vmem:[%s1479_s11 + $0xc0] sm:$0xff]  ;;  %v452_v20 = vmul.f32 %v619_v16, %v1242_v4 }
 0x144   :  { %v473_v2 = vld [vmem:[%s1483_s15 + $0x60] sm:$0xff] }
 0x145   :  { %v94_v17 = vadd.f32 %v612_v1, %v86_v12  ;;  %v205_v18 = vadd.f32 %v615_v9, %v197_v13  ;;  %v342_v1 = vld [vmem:[%s1479_s11 + $0xd0] sm:$0xff]  ;;  %v877_v9 = vpack.c.bf16 %v474_v3, %v473_v2  ;;  %v460_v24 = vadd.f32 %v620_v22, %v452_v20 }
 0x146   :  { %v852_v8 = vpack.c.bf16 %v342_v1, %v340_v63  ;;  %v346_v12 = vld [vmem:[%s1479_s11 + $0xf0] sm:$0xff] }
 0x147   :  { %706 = vmatmul.mubr.f32.vlgmr.msra.gmra.mrb[0].mxu0 %v94_v17  ;;  %741 = vmatmul.mubr.f32.vlgmr.msra.gmra.mrb[0].mxu1 %v205_v18  ;;  %v475_v13 = vld [vmem:[%s1483_s15 + $0x70] sm:$0xff]  ;;  %v856_v17 = vpack.c.bf16 %v346_v12, %v344_v10 }
 0x148   :  { %829 = vmatpush1.bf16.msra.mxu0 %v828_v14  ;;  %860 = vmatpush3.bf16.msra.mxu1 %v859_v15  ;;  %v476_v14 = vld [vmem:[%s1483_s15 + $0x78] sm:$0xff]  ;;  %v617_v15 = vld [vmem:[%s1477_s9] ss:$0 sm:$0xff] }
 0x149   :  { %831 = vmatprep.subr.bf16.mxu0 %v830_v19  ;;  %861 = vmatprep.subr.bf16.mxu1 %v986_v5  ;;  %v880_v18 = vpack.c.bf16 %v476_v14, %v475_v13  ;;  %v307_v19 = vmul.f32 %v617_v15, %v1242_v4  ;;  %v616_v4 = vld [vmem:[%s1476_s8] ss:$0 sm:$0xff] }
 0x14a   :  { %424 = vmatprep.mubr.f32.mxu0 %v988_v58  ;;  %775 = vmatprep.mubr.msk.f32.mxu1 %vm987_vm1, %v988_v58  ;;  %v472_v58 = vld [vmem:[%s1483_s15 + $0x58] sm:$0xff] }
 0x14b   :  { %v874_v62 = vpack.c.bf16 %v472_v58, %v471_v57  ;;  %v315_v23 = vadd.f32 %v618_v21, %v307_v19 }
 0x14c   :  { %833 = vmatpush1.bf16.msra.mxu0 %v832_v25  ;;  %863 = vmatpush3.bf16.msra.mxu1 %v862_v26 }
 0x14d   :  { %835 = vmatprep.subr.bf16.mxu0 %v834_v28  ;;  %864 = vmatprep.subr.bf16.mxu1 %v986_v5 }
 0x150   :  { %837 = vmatpush1.bf16.msra.mxu0 %v836_v34  ;;  %866 = vmatpush3.bf16.msra.mxu1 %v865_v35 }
 0x151   :  { %839 = vmatprep.subr.bf16.mxu0 %v838_v37  ;;  %867 = vmatprep.subr.bf16.mxu1 %v986_v5 }
 0x154   :  { %841 = vmatpush1.bf16.msra.mxu0 %v840_v43  ;;  %869 = vmatpush3.bf16.msra.mxu1 %v868_v44 }
 0x155   :  { %843 = vmatprep.subr.bf16.mxu0 %v842_v46  ;;  %870 = vmatprep.subr.bf16.mxu1 %v986_v5 }
 0x158   :  { %845 = vmatpush1.bf16.msra.mxu0 %v844_v52  ;;  %872 = vmatpush3.bf16.msra.mxu1 %v871_v53 }
 0x159   :  { %847 = vmatprep.subr.bf16.mxu0 %v846_v55  ;;  %873 = vmatprep.subr.bf16.mxu1 %v986_v5 }
 0x15c   :  { %849 = vmatpush1.bf16.msra.mxu0 %v848_v61  ;;  %875 = vmatpush3.bf16.msra.mxu1 %v874_v62 }
 0x15d   :  { %851 = vmatprep.subr.bf16.mxu0 %v850_v0  ;;  %876 = vmatprep.subr.bf16.mxu1 %v986_v5 }
 0x160   :  { %853 = vmatpush1.bf16.msra.mxu0 %v852_v8  ;;  %878 = vmatpush3.bf16.msra.mxu1 %v877_v9 }
 0x161   :  { %855 = vmatprep.subr.bf16.mxu0 %v854_v11  ;;  %879 = vmatprep.subr.bf16.mxu1 %v986_v5  ;;  %v613_v5 = vld [vmem:[%s1499_s25] ss:$0 sm:$0xff] }
 0x164   :  { %857 = vmatpush1.bf16.msra.mxu0 %v856_v17  ;;  %881 = vmatpush3.bf16.msra.mxu1 %v880_v18 }
 0x167   :  { %425 = vmatmul.mubr.f32.vlgmr.msra.gmra.mrb[2].mxu0 %v315_v23  ;;  %776 = vmatmul.mubr.f32.vlgmr.msra.gmra.mrb[2].mxu1 %v460_v24 }
 0x21a   :  { %v184_v25 = vpop.f32.mrb[0].mxu0  ;;  %v295_v26 = vpop.f32.mrb[0].mxu1 }
 0x21b   :  { %v185_v27 = vadd.f32 %v613_v5, %v184_v25  ;;  %v296_v28 = vadd.f32 %v616_v4, %v295_v26  ;;  %v707_v29 = vpop.f32.mrb[1].mxu0  ;;  %v742_v30 = vpop.f32.mrb[1].mxu1 }
 0x21d   :  { %299 = vst.msk [vmem:[#allocation4] sm:$0x3] %vm188_vm2, %v296_v28  ;;  %189 = vst.msk [vmem:[#allocation2] sm:$0x3] %vm188_vm2, %v185_v27 }
 0x21e   :  { %903 = shalt.err (!%p900_p4)
}
 0x21f   :  { %s904_s26 = scalar_lea.hbm %s1486_s18, 32 }
 0x220   :  { %p905_p5 = scmp.ne.s32.totalorder %s1486_s18, %s904_s26  ;;  %p908_p6 = scmp.lt.u32.totalorder %s904_s26, %s1486_s18 }
 0x222   :  { %p910_p7 = pnand %p908_p6, %p905_p5 }
 0x224   :  { %913 = shalt.err (!%p910_p7)
}
 0x225   :  { %575 = dma.vmem_to_hbm [thread:$0]  %s573_s10, 32, %s1486_s18, [#allocation5]  }
 0x226   :  { %s914_s21 = scalar_lea.vmem %s563_s3, 32  ;;  %p919_p9 = scmp.lt.s32.totalorder %s563_s3, %s563_s3 }
 0x227   :  { %p915_p8 = scmp.ne.s32.totalorder %s563_s3, %s914_s21  ;;  %p920_p10 = scmp.lt.s32.totalorder %s914_s21, %s914_s21 }
 0x229   :  { %p921_p11 = por %p920_p10, %p919_p9 }
 0x22b   :  { %p922_p12 = pnand %p921_p11, %p915_p8 }
 0x22d   :  { %925 = shalt.err (!%p922_p12)
}
 0x22e   :  { %s926_s15 = scalar_lea.hbm %s1485_s17, 32 }
 0x22f   :  { %p927_p13 = scmp.ne.s32.totalorder %s1485_s17, %s926_s15  ;;  %p930_p0 = scmp.lt.u32.totalorder %s926_s15, %s1485_s17 }
 0x231   :  { %p932_p1 = pnand %p930_p0, %p927_p13 }
 0x233   :  { %935 = shalt.err (!%p932_p1)
}
 0x234   :  { %565 = dma.vmem_to_hbm [thread:$0]  %s563_s3, 32, %s1485_s17, [#allocation3]   ;;  %v350_v31 = vlaneseq  ;;  %v348_v34 = vld [vmem:[%s1480_s12] sm:$0x3]  ;;  %v991_v36 = vmov 1983009808  }
 0x235   :  { %v435_v37 = vunpack.c.l.s4 %v991_v36  ;;  %v621_v39 = vld [vmem:[%s1484_s16] ss:$0 sm:$0xff]  ;;  %s992_s2 = smov [#allocation7]   ;;  %vm554_vm3 = vcmask 959488   ;;  %vm442_vm4 = vcmask 830466   ;;  %s993_s12 = smov [#allocation6]  }
 0x236   :  { %v351_v32 = vshrl.u32 %v350_v31, 7  ;;  %s592_s14 = sshll.u32 %s992_s2, 4  ;;  %s582_s17 = sshll.u32 %s993_s12, 4  ;;  %s593_s14 = int_to_ptr.vmem [resolvable:$true] %s592_s14  ;;  %s583_s17 = int_to_ptr.vmem [resolvable:$true] %s582_s17 }
 0x237   :  { %v436_v41 = vunpack.c.0.s8 %v435_v37  ;;  %s936_s16 = scalar_lea.vmem %s593_s14, 32  ;;  %p941_p3 = scmp.lt.s32.totalorder %s593_s14, %s593_s14 }
 0x238   :  { %v352_v33 = vsub.s32 0, %v351_v32  ;;  %v356_v35 = vsub.s32 1, %v351_v32  ;;  %p937_p2 = scmp.ne.s32.totalorder %s593_s14, %s936_s16  ;;  %p942_p4 = scmp.lt.s32.totalorder %s936_s16, %s936_s16 }
 0x239   :  { %v439_v49 = vsub.s32 %v436_v41, %v351_v32 }
 0x23a   :  { %v353_v38 = vrot.slane %v348_v34, %v352_v33  ;;  %v357_v40 = vrot.slane %v348_v34, %v356_v35  ;;  %v426_v42 = vpop.f32.mrb[2].mxu0  ;;  %v550_v43 = vpop.f32.mrb[2].mxu1  ;;  %p943_p5 = por %p942_p4, %p941_p3 }
 0x23b   :  { %v551_v45 = vadd.f32 %v621_v39, %v550_v43  ;;  %v428_v46 = vpop.f32.mrb[3].mxu0  ;;  %v777_v47 = vpop.f32.mrb[3].mxu1 }
 0x23c   :  { %v427_v44 = vadd.f32 %v426_v42, %v353_v38  ;;  %v429_v48 = vadd.f32 %v428_v46, %v357_v40  ;;  %p944_p6 = pnand %p943_p5, %p937_p2 }
 0x23d   :  { %555 = vst.msk [vmem:[#allocation7] sm:$0x3] %vm554_vm3, %v551_v45 }
 0x23e   :  { %v433_v50 = vcombine.low %v427_v44, %v429_v48 }
 0x23f   :  { %947 = shalt.err (!%p944_p6)
}
 0x240   :  { %s948_s6 = scalar_lea.hbm %s1488_s20, 32 }
 0x241   :  { %p949_p7 = scmp.ne.s32.totalorder %s1488_s20, %s948_s6  ;;  %p952_p8 = scmp.lt.u32.totalorder %s948_s6, %s1488_s20 }
 0x243   :  { %p954_p9 = pnand %p952_p8, %p949_p7 }
 0x245   :  { %957 = shalt.err (!%p954_p9)
}
 0x246   :  { %595 = dma.vmem_to_hbm [thread:$0]  %s593_s14, 32, %s1488_s20, [#allocation8]   ;;  %vm443_vm5 = vmor %vm442_vm4, %vm64_vm0  ;;  %v440_v51 = vrot.slane %v433_v50, %v439_v49 }
 0x247   :  { %s958_s0 = scalar_lea.vmem %s583_s17, 64  ;;  %p963_p11 = scmp.lt.s32.totalorder %s583_s17, %s583_s17 }
 0x248   :  { %444 = vst.msk [vmem:[#allocation6] sm:$0xf] %vm443_vm5, %v440_v51  ;;  %p959_p10 = scmp.ne.s32.totalorder %s583_s17, %s958_s0  ;;  %p964_p12 = scmp.lt.s32.totalorder %s958_s0, %s958_s0 }
 0x24a   :  { %p965_p13 = por %p964_p12, %p963_p11 }
 0x24c   :  { %p966_p0 = pnand %p965_p13, %p959_p10 }
 0x24e   :  { %969 = shalt.err (!%p966_p0)
}
 0x24f   :  { %s970_s11 = scalar_lea.hbm %s1487_s19, 64 }
 0x250   :  { %p971_p1 = scmp.ne.s32.totalorder %s1487_s19, %s970_s11  ;;  %p974_p2 = scmp.lt.u32.totalorder %s970_s11, %s1487_s19 }
 0x252   :  { %p976_p3 = pnand %p974_p2, %p971_p1 }
 0x254   :  { %979 = shalt.err (!%p976_p3)
}
 0x255   :  { %585 = dma.vmem_to_hbm [thread:$0]  %s583_s17, 64, %s1487_s19, [#allocation5]  }
 0x256   :  { %980 = dma.done.wait [#allocation3], 32  }
 0x257   :  { %981 = vsyncadd [#allocation3], 4294967264 }
 0x258   :  { %982 = dma.done.wait [#allocation5], 96  }
 0x259   :  { %983 = vsyncadd [#allocation5], 4294967200 }
 0x25a   :  { %984 = dma.done.wait [#allocation8], 32  }
 0x25b   :  { %985 = vsyncadd [#allocation8], 4294967264 }
 0x25c   :  { %608 = vsyncpa [#allocation3], 1 }
 0x25d   :  { %609 = vsyncpa [#allocation5], 1 }
 0x25e   :  { %610 = vsyncpa [#allocation8], 1 }

// kernel: vit_forward.4
= control target key start
LH: loop header
LB: loop body
LE: loop exit
PB: predicated region body
PF: predicated region fallthrough
CT: control target
= control target key end

     0   :  { %s4205_s0 = inlined_call_operand.vmem [shape: f32[2,8,128], index: 0, kind: input, shape index: {}]   ;;  %s4206_s1 = inlined_call_operand.vmem [shape: f32[2,1,128], index: 1, kind: input, shape index: {}]   ;;  %s4207_s2 = inlined_call_operand.vmem [shape: f32[2,1,128], index: 2, kind: input, shape index: {}]   ;;  %s4208_s3 = inlined_call_operand.hbm [shape: bf16[2,128,384], index: 3, kind: input, shape index: {}]   ;;  %s4209_s4 = inlined_call_operand.hbm [shape: bf16[2,128,128], index: 4, kind: input, shape index: {}]   ;;  %s4210_s5 = inlined_call_operand.vmem [shape: f32[2,1,128], index: 5, kind: input, shape index: {}]   ;;  %s4211_s6 = inlined_call_operand.vmem [shape: f32[2,1,128], index: 6, kind: input, shape index: {}]   ;;  %s4212_s7 = inlined_call_operand.vmem [shape: f32[2,1,128], index: 7, kind: input, shape index: {}]   ;;  %s4213_s8 = inlined_call_operand.vmem [shape: bf16[2,128,256], index: 8, kind: input, shape index: {}]   ;;  %s4214_s9 = inlined_call_operand.vmem [shape: f32[2,1,256], index: 9, kind: input, shape index: {}]   ;;  %s4215_s10 = inlined_call_operand.hbm [shape: bf16[2,256,128], index: 10, kind: input, shape index: {}]   ;;  %s4216_s11 = inlined_call_operand.vmem [shape: f32[2,1,128], index: 11, kind: input, shape index: {}]   ;;  %s4217_s12 = inlined_call_operand.vmem [shape: f32[2,8,128], index: 12, kind: output, shape index: {}]  }
   0x1   :  { %4226 = sst [smem:[#allocation13_spill]] %s4205_s0 }
   0x2   :  { %4227 = sst [smem:[#allocation14_spill]] %s4208_s3 }
   0x3   :  { %4228 = sst [smem:[#allocation15_spill]] %s4209_s4 }
   0x4   :  { %4229 = sst [smem:[#allocation16_spill]] %s4215_s10 }
   0x5   :  { %4230 = sst [smem:[#allocation17_spill]] %s4216_s11 }
   0x6   :  { %4231 = sst [smem:[#allocation18_spill]] %s4217_s12 }
   0x7   :  { %17 = vsyncpa [#allocation4], 0 }
   0x8   :  { %19 = vsyncpa [#allocation4 + $0x1], 0 }
   0x9   :  { %20 = vsyncpa [#allocation6], 0 }
   0xa   :  { %22 = vsyncpa [#allocation6 + $0x1], 0  ;;  %s3594_s21 = smov 0   ;;  %s3596_s22 = smov 0  }
   0xb   :  { %s3598_s23 = smov 0   ;;  %s3600_s24 = smov 0  }
   0xc   :  { %s3602_s25 = smov 0   ;;  %s3604_s26 = smov 0  }
   0xd LB: > { %4232 = sst [smem:[#allocation10_spill]] %s3502_s23  ;;  %s4218_s27 = sadd.s32 4294967295, %s3514_s26   ;;  %s3514_s26 = sphi %s3604_s26, %s28_s26   ;;  %s3510_s25 = sphi %s3602_s25, %s4262_s25   ;;  %s3506_s24 = sphi %s3600_s24, %s4261_s24   ;;  %s3502_s23 = sphi %s3598_s23, %s4257_s23   ;;  %s3498_s22 = sphi %s3596_s22, %s4260_s22   ;;  %s3494_s21 = sphi %s3594_s21, %s4259_s21  }
   0xe   : > { %s37_s28 = sadd.s32 1, %s3510_s25  ;;  %s125_s29 = sadd.s32 1, %s3502_s23 }
   0xf   : > { %p38_p0 = scmp.ge.s32.totalorder %s37_s28, 2  ;;  %p132_p1 = scmp.ne.s32.totalorder %s3502_s23, %s3498_s22 }
  0x10   : > { %p133_p2 = scmp.eq.s32.totalorder %s3514_s26, 0  ;;  %p138_p4 = scmp.ne.s32.totalorder %s3498_s22, %s3494_s21 }
  0x11   : > { %s4264_s28 = smov (%p38_p0, %s37_s28), 0  ;;  %p139_p5 = scmp.eq.s32.totalorder %s4218_s27, 0 }
  0x12   : > { %4233 = sst [smem:[#allocation11_spill]] %s4264_s28  ;;  %p134_p3 = por %p133_p2, %p132_p1 }
  0x13   : > { %s122_s30 = ssub.s32 %s3510_s25, %s4264_s28  ;;  %p3635_p7 = por %p139_p5, %p138_p4 }
  0x14   : > { %p123_p6 = scmp.eq.s32.totalorder %s122_s30, 0  ;;  %p3173_p8 = scmp.lt.s32.totalorder %s3514_s26, 2 }
  0x15   : > { %s4234_s13 = scalar_select %p3635_p7, 1, 0 }
  0x16   : > { %s3641_s14 = scalar_select %p123_p6, %s3502_s23, %s125_s29  }
  0x17   : > { %s3644_s15 = sand.u32 1, %s3502_s23   ;;  %p3646_p9 = pnand %p3173_p8, %p134_p3 }
  0x18   : > { %4235 = sst [smem:[#allocation12_spill]] %s3641_s14  ;;  %s438_s17 = sand.u32 1, %s3514_s26  }
  0x19   : > { %s2820_s18 = sshll.u32 %s3644_s15, 6  ;;  %s2928_s19 = sshll.u32 %s3510_s25, 10 }
  0x1a   : > { %s4237_s4 = sld [smem:[#allocation15_spill]]  ;;  %s442_s29 = scalar_lea.vmem [#allocation5], %s2820_s18 }
  0x1b   : > { %s449_s27 = sshll.u32 %s442_s29, 4  ;;  %s3661_s28 = scalar_lea.sflag [#allocation6], %s438_s17  ;;  %s3658_s27 = int_to_ptr.vmem [resolvable:$true] %s449_s27 }
  0x1c   : > { %p3667_p12 = pneg %p3646_p9 }
  0x20   : > { %s3656_s30 = scalar_lea.hbm %s4237_s4, %s2928_s19  ;;  %s3375_s18 = scalar_lea.hbm %s4237_s4, 2048 }
  0x21   : > { %s3370_s14 = scalar_lea.hbm %s3656_s30, 1024  ;;  %p3376_p1 = scmp.lt.u32.totalorder %s3656_s30, %s4237_s4 }
  0x22   : > { %p3371_p11 = scmp.ne.s32.totalorder %s3656_s30, %s3370_s14  ;;  %p3377_p2 = scmp.lt.u32.totalorder %s3375_s18, %s3370_s14 }
  0x23   : > { %p3379_p4 = scmp.lt.u32.totalorder %s3370_s14, %s3656_s30 }
  0x24   : > { %p3373_p13 = pnand %p3667_p12, %p3371_p11  ;;  %p3378_p3 = por %p3377_p2, %p3376_p1 }
  0x26   : > { %p3374_p0 = pneg %p3373_p13  ;;  %p3380_p5 = por %p3379_p4, %p3378_p3 }
  0x28   : > { %p3381_p6 = pnand %p3380_p5, %p3374_p0 }
  0x2a   : > { %3384 = shalt.err (!%p3381_p6)
}
  0x2b   : > { %s3385_s17 = scalar_lea.vmem %s3658_s27, 1024  ;;  %s3516_s19 = smov [#allocation5]  }
  0x2c   : > { %p3386_p8 = scmp.ne.s32.totalorder %s3658_s27, %s3385_s17  ;;  %s3390_s20 = sshll.u32 %s3516_s19, 4  ;;  %s3391_s20 = int_to_ptr.vmem [resolvable:$false] %s3390_s20 }
  0x2d   : > { %s3392_s21 = scalar_lea.vmem %s3391_s20, 2048  ;;  %p3393_p10 = scmp.lt.s32.totalorder %s3658_s27, %s3391_s20 }
  0x2e   : > { %p3388_p11 = pnand %p3386_p8, %p3667_p12  ;;  %p3394_p7 = scmp.lt.s32.totalorder %s3392_s21, %s3385_s17 }
  0x30   : > { %p3389_p13 = pneg %p3388_p11  ;;  %p3395_p1 = por %p3394_p7, %p3393_p10 }
  0x32   : > { %p3396_p2 = pnand %p3395_p1, %p3389_p13 }
  0x34   : > { %3399 = shalt.err (!%p3396_p2)
}
  0x35   : > { %s4224_s14 = smov 64   ;;  %s4225_s18 = smov 4  }
  0x36   : > { %3169 = dma.hbm_to_vmem [thread:$0]  (!%p3646_p9), %s3656_s30, 1024, %s3658_s27, %s3661_s28, %s4224_s14, %s4224_s14, %s4225_s18  }
  0x37   : > { %p517_p7 = scmp.lt.s32.totalorder %s3514_s26, 3  ;;  %p4239_p10 = scmp.ge.s32.totalorder %s3514_s26, 1 }
  0x38   : > { %s3154_s17 = smul.u32 192, %s3644_s15  ;;  %s4241_s3 = sld [smem:[#allocation14_spill]] }
  0x39   : > { %p3697_p0 = pnand %p4239_p10, %p517_p7  ;;  %s3155_s19 = smul.u32 3072, %s3510_s25 }
  0x3a   : > { %s421_s12 = scalar_lea.vmem [#allocation3], %s3154_s17  ;;  %s2823_s27 = sshll.u32 %s3644_s15, 7 }
  0x3b   : > { %s4240_s29 = scalar_select %p3697_p0, 1, 0 }
  0x3c   : > { %s428_s0 = sshll.u32 %s421_s12, 4  ;;  %s418_s30 = scalar_lea.sflag [#allocation4], %s3644_s15  ;;  %s3708_s0 = int_to_ptr.vmem [resolvable:$true] %s428_s0 }
  0x3e   : > { %s3706_s4 = scalar_lea.hbm %s4241_s3, %s3155_s19  ;;  %s3405_s19 = scalar_lea.hbm %s4241_s3, 6144 }
  0x3f   : > { %s3400_s14 = scalar_lea.hbm %s3706_s4, 3072  ;;  %p3406_p6 = scmp.lt.u32.totalorder %s3706_s4, %s4241_s3 }
  0x40   : > { %p3401_p3 = scmp.ne.s32.totalorder %s3706_s4, %s3400_s14  ;;  %p3407_p8 = scmp.lt.u32.totalorder %s3405_s19, %s3400_s14 }
  0x41   : > { %p3409_p13 = scmp.lt.u32.totalorder %s3400_s14, %s3706_s4 }
  0x42   : > { %p3403_p4 = pnand %p3401_p3, %p3667_p12  ;;  %p3408_p11 = por %p3407_p8, %p3406_p6 }
  0x44   : > { %p3404_p5 = pneg %p3403_p4  ;;  %p3410_p1 = por %p3409_p13, %p3408_p11 }
  0x46   : > { %p3411_p2 = pnand %p3410_p1, %p3404_p5 }
  0x48   : > { %3414 = shalt.err (!%p3411_p2)
}
  0x49   : > { %s3415_s12 = scalar_lea.vmem %s3708_s0, 3072  ;;  %s3519_s11 = smov [#allocation3]  }
  0x4a   : > { %p3416_p7 = scmp.ne.s32.totalorder %s3708_s0, %s3415_s12  ;;  %s3420_s18 = sshll.u32 %s3519_s11, 4  ;;  %s3421_s18 = int_to_ptr.vmem [resolvable:$false] %s3420_s18 }
  0x4b   : > { %s3422_s17 = scalar_lea.vmem %s3421_s18, 6144  ;;  %p3423_p4 = scmp.lt.s32.totalorder %s3708_s0, %s3421_s18 }
  0x4c   : > { %p3418_p10 = pnand %p3416_p7, %p3667_p12  ;;  %p3424_p0 = scmp.lt.s32.totalorder %s3422_s17, %s3415_s12 }
  0x4e   : > { %p3419_p3 = pneg %p3418_p10  ;;  %p3425_p6 = por %p3424_p0, %p3423_p4 }
  0x50   : > { %p3426_p8 = pnand %p3425_p6, %p3419_p3 }
  0x52   : > { %3429 = shalt.err (!%p3426_p8)
}
  0x53   : > { %s3520_s14 = smov 192   ;;  %s3521_s19 = smov 12  }
  0x54   : > { %3166 = dma.hbm_to_vmem [thread:$0]  (!%p3646_p9), %s3706_s4, 3072, %s3708_s0, %s418_s30, %s3520_s14, %s3520_s14, %s3521_s19  }
  0x55   : > { %s2929_s20 = sshll.u32 %s3510_s25, 11  ;;  %s4242_s10 = sld [smem:[#allocation16_spill]] }
  0x56   : > { %s496_s18 = scalar_lea.vmem [#allocation7], %s2823_s27 }
  0x57   : > { %s503_s17 = sshll.u32 %s496_s18, 4  ;;  %s3743_s17 = int_to_ptr.vmem [resolvable:$true] %s503_s17 }
  0x5b   : > { %s3739_s12 = scalar_lea.hbm %s4242_s10, %s2929_s20  ;;  %s3435_s30 = scalar_lea.hbm %s4242_s10, 4096 }
  0x5c   : > { %s3430_s3 = scalar_lea.hbm %s3739_s12, 2048  ;;  %p3436_p13 = scmp.lt.u32.totalorder %s3739_s12, %s4242_s10 }
  0x5d   : > { %p3431_p0 = scmp.ne.s32.totalorder %s3739_s12, %s3430_s3  ;;  %p3437_p1 = scmp.lt.u32.totalorder %s3435_s30, %s3430_s3 }
  0x5e   : > { %p3439_p7 = scmp.lt.u32.totalorder %s3430_s3, %s3739_s12 }
  0x5f   : > { %p3433_p5 = pnand %p3431_p0, %p3667_p12  ;;  %p3438_p2 = por %p3437_p1, %p3436_p13 }
  0x61   : > { %p3434_p11 = pneg %p3433_p5  ;;  %p3440_p10 = por %p3439_p7, %p3438_p2 }
  0x63   : > { %p3441_p3 = pnand %p3440_p10, %p3434_p11 }
  0x65   : > { %3444 = shalt.err (!%p3441_p3)
}
  0x66   : > { %s3445_s15 = scalar_lea.vmem %s3743_s17, 2048  ;;  %s3522_s27 = smov [#allocation7]  }
  0x67   : > { %p3446_p4 = scmp.ne.s32.totalorder %s3743_s17, %s3445_s15  ;;  %s3450_s20 = sshll.u32 %s3522_s27, 4  ;;  %s3451_s20 = int_to_ptr.vmem [resolvable:$false] %s3450_s20 }
  0x68   : > { %s3452_s21 = scalar_lea.vmem %s3451_s20, 4096  ;;  %p3453_p0 = scmp.lt.s32.totalorder %s3743_s17, %s3451_s20 }
  0x69   : > { %p3448_p6 = pnand %p3446_p4, %p3667_p12  ;;  %p3454_p5 = scmp.lt.s32.totalorder %s3452_s21, %s3445_s15 }
  0x6b   : > { %p3449_p8 = pneg %p3448_p6  ;;  %p3455_p13 = por %p3454_p5, %p3453_p0 }
  0x6d   : > { %p3456_p1 = pnand %p3455_p13, %p3449_p8 }
  0x6f   : > { %3459 = shalt.err (!%p3456_p1)
}
  0x70   : > { %s4243_s3 = smov 4   ;;  %s4244_s11 = smov 64  }
  0x71   : > { %3172 = dma.hbm_to_vmem [thread:$0]  (!%p3646_p9), %s3739_s12, 2048, %s3743_s17, %s3661_s28, %s4244_s11, %s4244_s11, %s4243_s3  }
  0x72   : > { %p4245_p12 = scmp.ne.s32.totalorder %s4240_s29, 0 }
  0x73   : > { %s523_s23 = sand.u32 (!%p4245_p12), 1, %s3498_s22   ;;  %p4246_p11 = scmp.ne.s32.totalorder (!%p4245_p12), %s4234_s13, 0 }
  0x74   : > { %521 = sbr.rel (%p4245_p12) target bundleno = 4511 (0x119f), region = 68  ;;  %s524_s0 = scalar_lea.sflag (!%p4245_p12), [#allocation4], %s523_s23 }
  0x75   : > { %s3156_s18 = smul.u32 (!%p4245_p12), 192, %s523_s23 }
  0x77   : > { %s3773_s4 = scalar_lea.vmem (!%p4245_p12), [#allocation3], %s3156_s18 }
  0x7b   : > { %3485 = dma.done.wait (%p4246_p11), %s524_s0, 3072  }
  0x7c   : > { %3487 = vsyncadd (%p4246_p11), %s524_s0, 4294964224  ;;  %s4247_s16 = sadd.s32 4294967295, %s3514_s26   ;;  %s2827_s28 = sshll.u32 %s523_s23, 6 }
  0x7d   : > { %s532_s30 = sand.u32 1, %s4247_s16   ;;  %s3781_s29 = scalar_lea.vmem [#allocation5], %s2827_s28 }
  0x7e   : > { %s533_s12 = scalar_lea.sflag [#allocation6], %s532_s30 }
  0x7f   : > { %3489 = dma.done.wait (%p4246_p11), %s533_s12, 3072  }
  0x80   : > { %3491 = vsyncadd (%p4246_p11), %s533_s12, 4294964224  ;;  %s2828_s17 = sshll.u32 %s523_s23, 7  ;;  %p634_p9 = scmp.lt.s32.totalorder %s3506_s24, 1 }
  0x81   : > { %s4248_s18 = sld [smem:[#allocation17_spill]]  ;;  %s3827_s16 = scalar_lea.vmem [#allocation7], %s2828_s17 }
  0x82   : > { %s3789_s14 = scalar_select %p634_p9, %s3506_s24, 1 }
  0x83   : > { %p2832_p2 = scmp.ne.s32.totalorder %s3506_s24, 0 }
  0x84   : > { %s648_s12 = scalar_lea.vmem %s4212_s7, %s3789_s14  ;;  %s2930_s19 = sshll.u32 %s3789_s14, 7 }
  0x85   : > { %s3815_s27 = scalar_lea.vmem %s4213_s8, %s2930_s19  ;;  %s2831_s13 = sshll.u32 %s3789_s14, 1 }
  0x86   : > { %s3821_s3 = scalar_lea.vmem %s4214_s9, %s2831_s13  ;;  %671 = sbr.rel (%p2832_p2) target bundleno = 143 (0x8f), region = 84 }
  0x87   : > { %s660_s0 = scalar_lea.vmem %s4248_s18, %s3789_s14  ;;  %s4249_s10 = sld [smem:[#allocation13_spill]] (!%p2832_p2) }
  0x8d   : > { %v672_v0 = vld [vmem:[%s4249_s10] sm:$0xff]  ;;  %v673_v1 = vld [vmem:[%s4249_s10 + $0x8] sm:$0xff] }
  0x8e   : > { %674 = vst [vmem:[#allocation2] sm:$0xff] %v672_v0  ;;  %675 = vst [vmem:[#allocation2 + $0x8] sm:$0xff] %v673_v1 }
  0x8f PF: > { %v3232_v4 = vld [vmem:[%s3773_s4 + $0x4] ss:$12 sps:$4 sm:$0xff]   ;;  %v3234_v5 = vld [vmem:[%s3773_s4] ss:$12 sps:$4 sm:$0xff]   ;;  %v3523_v6 = vmov 0.0   ;;  %v3524_v32 = vmov 0   ;;  %s4250_s21 = scalar_lea.vmem %s4206_s1, %s3789_s14  ;;  %s4251_s20 = scalar_lea.vmem %s4207_s2, %s3789_s14 }
  0x90   : > { %3006 = vmatprep.subr.bf16.mxu1 %v3523_v6  ;;  %v3235_v7 = vld [vmem:[%s3773_s4 + $0x8] ss:$12 sps:$4 sm:$0xff]   ;;  %880 = vmatprep.subr.bf16.mxu0 %v3232_v4  ;;  %v3238_v17 = vld [vmem:[%s3773_s4 + $0x18] ss:$12 sps:$4 sm:$0xff]   ;;  %v3239_v18 = vld [vmem:[%s3773_s4 + $0x20] ss:$12 sps:$4 sm:$0xff]   ;;  %s4252_s19 = scalar_lea.vmem %s4210_s5, %s3789_s14  ;;  %s4253_s17 = scalar_lea.vmem %s4211_s6, %s3789_s14 }
  0x91   : > { %v3236_v8 = vld [vmem:[%s3773_s4 + $0x1c] ss:$12 sps:$4 sm:$0xff]   ;;  %881 = vmatpush1.bf16.msra.mxu0 %v3234_v5  ;;  %3007 = vmatpush3.bf16.msra.mxu1 %v3235_v7  ;;  %v3240_v19 = vld [vmem:[%s3773_s4 + $0x34] ss:$12 sps:$4 sm:$0xff]   ;;  %v3243_v21 = vld [vmem:[%s3773_s4 + $0x38] ss:$12 sps:$4 sm:$0xff]  }
  0x92   : > { %882 = vmatprep.subr.bf16.mxu0 %v3236_v8  ;;  %3008 = vmatprep.subr.bf16.mxu1 %v3523_v6  ;;  %v3242_v20 = vld [vmem:[%s3773_s4 + $0x30] ss:$12 sps:$4 sm:$0xff]   ;;  %v3244_v22 = vld [vmem:[%s3773_s4 + $0x4c] ss:$12 sps:$4 sm:$0xff]   ;;  %v3246_v23 = vld [vmem:[%s3773_s4 + $0x48] ss:$12 sps:$4 sm:$0xff]  }
  0x93   : > { %v3247_v24 = vld [vmem:[%s3773_s4 + $0x50] ss:$12 sps:$4 sm:$0xff]   ;;  %v3250_v26 = vld [vmem:[%s3773_s4 + $0x60] ss:$12 sps:$4 sm:$0xff]   ;;  %v3251_v27 = vld [vmem:[%s3773_s4 + $0x68] ss:$12 sps:$4 sm:$0xff]   ;;  %912 = vmatprep.mubr.bf16.mxu0 %v3524_v32 }
  0x94   : > { %v3248_v25 = vld [vmem:[%s3773_s4 + $0x64] ss:$12 sps:$4 sm:$0xff]   ;;  %v3252_v28 = vld [vmem:[%s3773_s4 + $0x7c] ss:$12 sps:$4 sm:$0xff]   ;;  %v3255_v30 = vld [vmem:[%s3773_s4 + $0x80] ss:$12 sps:$4 sm:$0xff]  }
  0x95   : > { %v676_v2 = vld [vmem:[#allocation2] sm:$0xff]  ;;  %v677_v3 = vld [vmem:[#allocation2 + $0x8] sm:$0xff]  ;;  %883 = vmatpush1.bf16.msra.mxu0 %v3238_v17  ;;  %3009 = vmatpush3.bf16.msra.mxu1 %v3239_v18  ;;  %vm3525_vm0 = vmmov 0   ;;  %vm986_vm1 = vcmask 261120   ;;  %vm1109_vm2 = vcmask 1043456   ;;  %vm1081_vm3 = vcmask 64512  }
  0x96   : > { %680 = vadd.xlane.f32.xlu0 %v676_v2  ;;  %3010 = vmatprep.subr.bf16.mxu1 %v3523_v6  ;;  %v3254_v29 = vld [vmem:[%s3773_s4 + $0x78] ss:$12 sps:$4 sm:$0xff]   ;;  %v3256_v31 = vld [vmem:[%s3773_s4 + $0x94] ss:$12 sps:$4 sm:$0xff]   ;;  %v3258_v33 = vld [vmem:[%s3773_s4 + $0x90] ss:$12 sps:$4 sm:$0xff]  }
  0x97   : > { %884 = vmatprep.subr.bf16.mxu0 %v3240_v19  ;;  %3022 = vmatprep.mubr.msk.bf16.mxu1 %vm3525_vm0, %v3523_v6  ;;  %v3259_v34 = vld [vmem:[%s3773_s4 + $0x98] ss:$12 sps:$4 sm:$0xff]   ;;  %v3262_v36 = vld [vmem:[%s3773_s4 + $0xa8] ss:$12 sps:$4 sm:$0xff]   ;;  %v3263_v37 = vld [vmem:[%s3773_s4 + $0xb0] ss:$12 sps:$4 sm:$0xff]  }
  0x98   : > { %v3260_v35 = vld [vmem:[%s3773_s4 + $0xac] ss:$12 sps:$4 sm:$0xff]   ;;  %v2833_v46 = vld [vmem:[%s4250_s21] ss:$0 sm:$0xff]  ;;  %s3526_s11 = smov 96   ;;  %s3527_s18 = smov 64  }
  0x99   : > { %885 = vmatpush1.bf16.msra.mxu0 %v3242_v20  ;;  %3011 = vmatpush3.bf16.msra.mxu1 %v3243_v21  ;;  %v2834_v50 = vld [vmem:[%s4251_s20] ss:$0 sm:$0xff]  ;;  %s3528_s30 = smov 32   ;;  %p2923_p7 = scmp.ne.s32.totalorder %s3506_s24, 1 }
  0x9a   : > { %682 = vadd.xlane.f32.xlu0 %v677_v3  ;;  %3012 = vmatprep.subr.bf16.mxu1 %v3523_v6  ;;  %s4255_s20 = sld [smem:[#allocation18_spill]] (!%p2923_p7) }
  0x9b   : > { %886 = vmatprep.subr.bf16.mxu0 %v3244_v22 }
  0x9d   : > { %887 = vmatpush1.bf16.msra.mxu0 %v3246_v23  ;;  %3013 = vmatpush3.bf16.msra.mxu1 %v3247_v24 }
  0x9e   : > { %3014 = vmatprep.subr.bf16.mxu1 %v3523_v6  ;;  %888 = vmatprep.subr.bf16.mxu0 %v3248_v25 }
  0xa1   : > { %889 = vmatpush1.bf16.msra.mxu0 %v3250_v26  ;;  %3015 = vmatpush3.bf16.msra.mxu1 %v3251_v27 }
  0xa2   : > { %890 = vmatprep.subr.bf16.mxu0 %v3252_v28  ;;  %3016 = vmatprep.subr.bf16.mxu1 %v3523_v6 }
  0xa5   : > { %891 = vmatpush1.bf16.msra.mxu0 %v3254_v29  ;;  %3017 = vmatpush3.bf16.msra.mxu1 %v3255_v30 }
  0xa6   : > { %892 = vmatprep.subr.bf16.mxu0 %v3256_v31  ;;  %3018 = vmatprep.subr.bf16.mxu1 %v3523_v6 }
  0xa9   : > { %893 = vmatpush1.bf16.msra.mxu0 %v3258_v33  ;;  %3019 = vmatpush3.bf16.msra.mxu1 %v3259_v34 }
  0xaa   : > { %894 = vmatprep.subr.bf16.mxu0 %v3260_v35  ;;  %3020 = vmatprep.subr.bf16.mxu1 %v3523_v6 }
  0xad   : > { %895 = vmatpush1.bf16.msra.mxu0 %v3262_v36  ;;  %3021 = vmatpush3.bf16.msra.mxu1 %v3263_v37 }
  0xae   : > { %3026 = vmatprep.subr.bf16.mxu0 %v3523_v6  ;;  %3032 = vmatprep.subr.bf16.mxu1 %v3523_v6 }
 0x123   : > { %v681_v9 = vpop.xlane.xlu0 %680 }
 0x124   : > { %v685_v10 = vmul.f32 0.0078125, %v681_v9 }
 0x126   : > { %v3842_v11 = vsub.f32 %v676_v2, %v685_v10 }
 0x127   : > { %v683_v12 = vpop.xlane.xlu0 %682 }
 0x128   : > { %v686_v13 = vmul.f32 0.0078125, %v683_v12  ;;  %v689_v14 = vmul.f32 %v3842_v11, %v3842_v11 }
 0x12a   : > { %v3846_v15 = vsub.f32 %v677_v3, %v686_v13  ;;  %691 = vadd.xlane.f32.xlu1 %v689_v14 }
 0x12c   : > { %v690_v16 = vmul.f32 %v3846_v15, %v3846_v15 }
 0x12e   : > { %693 = vadd.xlane.f32.xlu1 %v690_v16 }
 0x1b7   : > { %v692_v38 = vpop.xlane.xlu1 %691 }
 0x1b8   : > { %v695_v39 = vmul.f32 0.0078125, %v692_v38 }
 0x1ba   : > { %v697_v40 = vadd.f32 1e-05, %v695_v39 }
 0x1bb   : > { %v694_v41 = vpop.xlane.xlu1 %693 }
 0x1bc   : > { %3312 = vrsqrt.f32 %v697_v40  ;;  %v696_v42 = vmul.f32 0.0078125, %v694_v41 }
 0x1be   : > { %v698_v43 = vadd.f32 1e-05, %v696_v42 }
 0x1c0   : > { %3314 = vrsqrt.f32 %v698_v43 }
 0x1c6   : > { %v3313_v44 = vpop.eup %3312 }
 0x1c7   : > { %v701_v45 = vmul.f32 %v3313_v44, %v3842_v11 }
 0x1c9   : > { %v709_v49 = vmul.f32 %v2833_v46, %v701_v45 }
 0x1ca   : > { %v3315_v47 = vpop.eup %3314 }
 0x1cb   : > { %v702_v48 = vmul.f32 %v3315_v47, %v3846_v15  ;;  %v717_v52 = vadd.f32 %v2834_v50, %v709_v49 }
 0x1cd   : > { %v710_v51 = vmul.f32 %v2833_v46, %v702_v48 }
 0x1cf   : > { %v718_v53 = vadd.f32 %v2834_v50, %v710_v51 }
 0x1d1   : > { %v719_v54 = vpack.c.bf16 %v718_v53, %v717_v52 }
 0x1d3   : > { %913 = vmatmul.mubr.bf16.vlgmr.msra.gmra.mrb[0].mxu0 %v719_v54  ;;  %3023 = vmatmul.mubr.bf16.vlgmr.msra.gmra.mrb[0].mxu1 %v719_v54 }
 0x1d4   : > { %3028 = vmatprep.mubr.msk.bf16.mxu0 %vm3525_vm0, %v3523_v6  ;;  %3034 = vmatprep.mubr.msk.bf16.mxu1 %vm3525_vm0, %v3523_v6 }
 0x2a6   : > { %v914_v55 = vpop.f32.mrb[0].mxu0  ;;  %v957_v56 = vpop.f32.mrb[0].mxu1 }
 0x2a7   : > { %v916_v57 = vpop.f32.mrb[1].mxu0  ;;  %v3024_v58 = vpop.f32.mrb[1].mxu1  ;;  %v3906_v3 = vpack.c.bf16 %v957_v56, %v957_v56  ;;  %v3909_v4 = vpack.c.bf16 %v914_v55, %v914_v55 }
 0x2a8   : > { %v3897_v59 = vpack.c.bf16 %v916_v57, %v916_v57  ;;  %v918_v60 = vpop.f32.mrb[2].mxu0  ;;  %v960_v61 = vpop.f32.mrb[2].mxu1 }
 0x2a9   : > { %v920_v62 = vpop.f32.mrb[3].mxu0  ;;  %v3025_v63 = vpop.f32.mrb[3].mxu1  ;;  %v3911_v5 = vpack.c.bf16 %v960_v61, %v960_v61  ;;  %v3913_v7 = vpack.c.bf16 %v918_v60, %v918_v60  ;;  %v1111_v8 = vsel %vm1109_vm2, %v3906_v3, 0 }
 0x2aa   : > { %v3899_v0 = vpack.c.bf16 %v920_v62, %v920_v62  ;;  %v991_v1 = vsel %vm986_vm1, %v3897_v59, 0 }
 0x2ab   : > { %3027 = vmatpush3.bf16.xpose.msra.mxu0 %v991_v1  ;;  %v1157_v9 = vsel %vm1109_vm2, %v3911_v5, 0 }
 0x2ac   : > { %v1037_v2 = vsel %vm986_vm1, %v3899_v0, 0  ;;  %3038 = vmatprep.subr.bf16.mxu0 %v3523_v6 }
 0x2ad   : > { %3033 = vmatpush3.bf16.xpose.msra.mxu1 %v1037_v2 }
 0x2ae   : > { %3044 = vmatprep.subr.bf16.mxu1 %v3523_v6 }
 0x2b2   : > { %3029 = vmatmul.mubr.msk.bf16.vlgmr.msra.gmra.mrb[4].mxu0 %vm986_vm1, %v3909_v4 }
 0x2b3   : > { %3039 = vmatpush3.bf16.msra.mxu0 %v1111_v8  ;;  %3040 = vmatprep.mubr.msk.bf16.mxu0 %vm3525_vm0, %v3523_v6 }
 0x2b4   : > { %3035 = vmatmul.mubr.msk.bf16.vlgmr.msra.gmra.mrb[4].mxu1 %vm986_vm1, %v3913_v7  ;;  %3050 = vmatprep.subr.bf16.mxu0 %v3523_v6 }
 0x2b5   : > { %3045 = vmatpush3.bf16.msra.mxu1 %v1157_v9  ;;  %3046 = vmatprep.mubr.msk.bf16.mxu1 %vm3525_vm0, %v3523_v6 }
 0x2b6   : > { %3056 = vmatprep.subr.bf16.mxu1 %v3523_v6 }
 0x385   : > { %v1027_v10 = vpop.f32.mrb[4].mxu0 }
 0x386   : > { %v1079_v11 = vmul.f32 0.17677669, %v1027_v10  ;;  %v3030_v12 = vpop.f32.mrb[5].mxu0 }
 0x387   : > { %v1030_v13 = vpop.f32.mrb[6].mxu0  ;;  %v1073_v14 = vpop.f32.mrb[4].mxu1 }
 0x388   : > { %v1080_v15 = vmul.f32 0.17677669, %v1073_v14  ;;  %v3031_v16 = vpop.f32.mrb[7].mxu0  ;;  %v3036_v17 = vpop.f32.mrb[5].mxu1  ;;  %v1082_v18 = vsel %vm1081_vm3, %v1079_v11, -inf }
 0x389   : > { %1083 = vmax.xlane.f32.xlu0 %v1082_v18  ;;  %v1076_v19 = vpop.f32.mrb[6].mxu1 }
 0x38a   : > { %v3037_v20 = vpop.f32.mrb[7].mxu1  ;;  %v1085_v21 = vsel %vm1081_vm3, %v1080_v15, -inf }
 0x38b   : > { %1086 = vmax.xlane.f32.xlu1 %v1085_v21 }
 0x39c   : > { %1256 = vrot.lane.b32.xlu1 %v3899_v0, %s3526_s11 }
 0x416   : > { %v1084_v22 = vpop.xlane.xlu0 %1083 }
 0x417   : > { %v1088_v23 = vsub.f32 %v1079_v11, %v1084_v22 }
 0x418   : > { %v1087_v24 = vpop.xlane.xlu1 %1086 }
 0x419   : > { %v1090_v25 = vmul.f32 1.442695, %v1088_v23  ;;  %v1089_v26 = vsub.f32 %v1080_v15, %v1087_v24 }
 0x41b   : > { %3316 = vpow2.f32 %v1090_v25  ;;  %v1092_v27 = vmul.f32 1.442695, %v1089_v26 }
 0x41c   : > { %v1257_v33 = vpop.permute.xlu1 %1256 }
 0x41d   : > { %3318 = vpow2.f32 %v1092_v27  ;;  %v1262_v44 = vsel %vm986_vm1, %v1257_v33, 0 }
 0x425   : > { %v3317_v28 = vpop.eup %3316 }
 0x426   : > { %v1094_v29 = vsel %vm1081_vm3, %v3317_v28, 0.0 }
 0x427   : > { %v3319_v30 = vpop.eup %3318  ;;  %1095 = vadd.xlane.f32.xlu0 %v1094_v29  ;;  %v3266_v29 = vld [vmem:[%s3781_s29 + $0x10] sm:$0xff]  }
 0x428   : > { %v1097_v31 = vsel %vm1081_vm3, %v3319_v30, 0.0 }
 0x429   : > { %1098 = vadd.xlane.f32.xlu1 %v1097_v31 }
 0x43a   : > { %1201 = vrot.lane.b32.xlu1 %v3909_v4, %s3526_s11 }
 0x43d   : > { %1204 = vrot.lane.b32.xlu0 %v3897_v59, %s3526_s11 }
 0x43e   : > { %1253 = vrot.lane.b32.xlu1 %v3913_v7, %s3526_s11 }
 0x4b4   : > { %v1096_v34 = vpop.xlane.xlu0 %1095 }
 0x4b5   : > { %3320 = vrcp.f32 %v1096_v34  ;;  %v3264_v34 = vld [vmem:[%s3781_s29] sm:$0xff]  }
 0x4b6   : > { %v1099_v35 = vpop.xlane.xlu1 %1098 }
 0x4b7   : > { %3322 = vrcp.f32 %v1099_v35 }
 0x4b8   : > { %v1205_v39 = vpop.permute.xlu0 %1204 }
 0x4b9   : > { %v1210_v42 = vsel %vm986_vm1, %v1205_v39, 0 }
 0x4ba   : > { %v1202_v45 = vpop.permute.xlu1 %1201 }
 0x4be   : > { %v1254_v46 = vpop.permute.xlu1 %1253 }
 0x4bf   : > { %v3321_v36 = vpop.eup %3320 }
 0x4c0   : > { %v1102_v37 = vmul.f32 %v3321_v36, %v3317_v28  ;;  %v3267_v36 = vld [vmem:[%s3781_s29 + $0x18] sm:$0xff]  }
 0x4c1   : > { %v3323_v38 = vpop.eup %3322 }
 0x4c2   : > { %v1103_v40 = vmul.f32 %v3323_v38, %v3319_v30  ;;  %v1104_v41 = vpack.c.bf16 %v1102_v37, %v1102_v37  ;;  %v3265_v37 = vld [vmem:[%s3781_s29 + $0x8] sm:$0xff]  }
 0x4c4   : > { %3041 = vmatmul.mubr.msk.bf16.vlgmr.msra.gmra.mrb[8].mxu0 %vm1081_vm3, %v1104_v41  ;;  %v1105_v43 = vpack.c.bf16 %v1103_v40, %v1103_v40 }
 0x4c5   : > { %3051 = vmatpush3.bf16.xpose.msra.mxu0 %v1210_v42  ;;  %3052 = vmatprep.mubr.msk.bf16.mxu0 %vm3525_vm0, %v3523_v6 }
 0x4c6   : > { %3047 = vmatmul.mubr.msk.bf16.vlgmr.msra.gmra.mrb[8].mxu1 %vm1081_vm3, %v1105_v43  ;;  %3062 = vmatprep.subr.bf16.mxu0 %v3523_v6 }
 0x4c7   : > { %3057 = vmatpush3.bf16.xpose.msra.mxu1 %v1262_v44  ;;  %3058 = vmatprep.mubr.msk.bf16.mxu1 %vm3525_vm0, %v3523_v6 }
 0x4c8   : > { %3068 = vmatprep.subr.bf16.mxu1 %v3523_v6 }
 0x4cc   : > { %3053 = vmatmul.mubr.msk.bf16.vlgmr.msra.gmra.mrb[12].mxu0 %vm986_vm1, %v1202_v45 }
 0x4cd   : > { %3064 = vmatprep.mubr.msk.bf16.mxu0 %vm3525_vm0, %v3523_v6 }
 0x4ce   : > { %3059 = vmatmul.mubr.msk.bf16.vlgmr.msra.gmra.mrb[12].mxu1 %vm986_vm1, %v1254_v46 }
 0x4cf   : > { %3070 = vmatprep.mubr.msk.bf16.mxu1 %vm3525_vm0, %v3523_v6 }
 0x597   : > { %v3957_v47 = vpop.f32.mrb[8].mxu0 }
 0x598   : > { %v3042_v48 = vpop.f32.mrb[9].mxu0 }
 0x599   : > { %v1150_v49 = vpop.f32.mrb[10].mxu0  ;;  %v3959_v50 = vpop.f32.mrb[8].mxu1 }
 0x59a   : > { %v1199_v51 = vpack.c.bf16 %v3959_v50, %v3957_v47  ;;  %v3043_v52 = vpop.f32.mrb[11].mxu0  ;;  %v3048_v53 = vpop.f32.mrb[9].mxu1 }
 0x59b   : > { %v1196_v54 = vpop.f32.mrb[10].mxu1 }
 0x59c   : > { %v3049_v55 = vpop.f32.mrb[11].mxu1 }
 0x59f   : > { %v1246_v56 = vpop.f32.mrb[12].mxu0 }
 0x5a0   : > { %v1304_v57 = vmul.f32 0.17677669, %v1246_v56  ;;  %v3054_v58 = vpop.f32.mrb[13].mxu0 }
 0x5a1   : > { %v1249_v60 = vpop.f32.mrb[14].mxu0  ;;  %v1298_v61 = vpop.f32.mrb[12].mxu1 }
 0x5a2   : > { %v1305_v62 = vmul.f32 0.17677669, %v1298_v61  ;;  %v3055_v63 = vpop.f32.mrb[15].mxu0  ;;  %v3060_v1 = vpop.f32.mrb[13].mxu1  ;;  %v1306_v2 = vsel %vm1081_vm3, %v1304_v57, -inf }
 0x5a3   : > { %1307 = vmax.xlane.f32.xlu0 %v1306_v2  ;;  %v1301_v8 = vpop.f32.mrb[14].mxu1 }
 0x5a4   : > { %v3061_v9 = vpop.f32.mrb[15].mxu1  ;;  %v1309_v10 = vsel %vm1081_vm3, %v1305_v62, -inf }
 0x5a5   : > { %1310 = vmax.xlane.f32.xlu1 %v1309_v10 }
 0x5b6   : > { %1380 = vrot.lane.b32.xlu1 %v3911_v5, %s3526_s11 }
 0x5ba   : > { %1543 = vrot.lane.b32.xlu1 %v3897_v59, %s3527_s18 }
 0x5be   : > { %1593 = vrot.lane.b32.xlu1 %v3899_v0, %s3527_s18 }
 0x5c2   : > { %1591 = vrot.lane.b32.xlu1 %v3913_v7, %s3527_s18 }
 0x630   : > { %v1308_v11 = vpop.xlane.xlu0 %1307 }
 0x631   : > { %v1312_v12 = vsub.f32 %v1304_v57, %v1308_v11 }
 0x632   : > { %v1311_v13 = vpop.xlane.xlu1 %1310 }
 0x633   : > { %v1314_v14 = vmul.f32 1.442695, %v1312_v12  ;;  %v1313_v15 = vsub.f32 %v1305_v62, %v1311_v13 }
 0x635   : > { %3324 = vpow2.f32 %v1314_v14  ;;  %v1316_v16 = vmul.f32 1.442695, %v1313_v15 }
 0x636   : > { %v1381_v17 = vpop.permute.xlu1 %1380 }
 0x637   : > { %3326 = vpow2.f32 %v1316_v16  ;;  %v1386_v18 = vsel %vm1109_vm2, %v1381_v17, 0 }
 0x638   : > { %3069 = vmatpush3.bf16.msra.mxu1 %v1386_v18 }
 0x639   : > { %3082 = vmatprep.subr.bf16.mxu1 %v3523_v6 }
 0x63a   : > { %v1544_v38 = vpop.permute.xlu1 %1543 }
 0x63b   : > { %v1549_v50 = vsel %vm986_vm1, %v1544_v38, 0 }
 0x63e   : > { %v1594_v39 = vpop.permute.xlu1 %1593 }
 0x63f   : > { %v3325_v19 = vpop.eup %3324  ;;  %v1599_v40 = vsel %vm986_vm1, %v1594_v39, 0 }
 0x640   : > { %v1318_v20 = vsel %vm1081_vm3, %v3325_v19, 0.0 }
 0x641   : > { %v3327_v21 = vpop.eup %3326  ;;  %1319 = vadd.xlane.f32.xlu0 %v1318_v20 }
 0x642   : > { %v1321_v22 = vsel %vm1081_vm3, %v3327_v21, 0.0  ;;  %v1592_v41 = vpop.permute.xlu1 %1591 }
 0x645   : > { %1322 = vadd.xlane.f32.xlu0 %v1321_v22 }
 0x65b   : > { %1331 = vrot.lane.b32.xlu0 %v3906_v3, %s3526_s11 }
 0x65f   : > { %1541 = vrot.lane.b32.xlu0 %v3909_v4, %s3527_s18 }
 0x6ce   : > { %v1320_v23 = vpop.xlane.xlu0 %1319 }
 0x6cf   : > { %3328 = vrcp.f32 %v1320_v23 }
 0x6d2   : > { %v1323_v24 = vpop.xlane.xlu0 %1322 }
 0x6d3   : > { %3330 = vrcp.f32 %v1323_v24 }
 0x6d6   : > { %v1332_v25 = vpop.permute.xlu0 %1331 }
 0x6d7   : > { %v1337_v26 = vsel %vm1109_vm2, %v1332_v25, 0 }
 0x6d8   : > { %3063 = vmatpush3.bf16.msra.mxu0 %v1337_v26 }
 0x6d9   : > { %v3329_v27 = vpop.eup %3328  ;;  %3074 = vmatprep.subr.bf16.mxu0 %v3523_v6 }
 0x6da   : > { %v1326_v28 = vmul.f32 %v3329_v27, %v3325_v19  ;;  %v1542_v54 = vpop.permute.xlu0 %1541 }
 0x6dc   : > { %v1328_v30 = vpack.c.bf16 %v1326_v28, %v1326_v28 }
 0x6dd   : > { %v3331_v31 = vpop.eup %3330 }
 0x6de   : > { %v1327_v33 = vmul.f32 %v3331_v31, %v3327_v21  ;;  %3065 = vmatmul.mubr.msk.bf16.vlgmr.msra.gmra.mrb[16].mxu0 %vm1081_vm3, %v1328_v30 }
 0x6df   : > { %3075 = vmatpush3.bf16.msra.mxu0 %v3266_v29  ;;  %3078 = vmatprep.mubr.msk.bf16.mxu0 %vm3525_vm0, %v3523_v6 }
 0x6e0   : > { %v1329_v35 = vpack.c.bf16 %v1327_v33, %v1327_v33  ;;  %3076 = vmatprep.subr.bf16.mxu0 %v3523_v6 }
 0x6e2   : > { %3071 = vmatmul.mubr.msk.bf16.vlgmr.msra.gmra.mrb[16].mxu1 %vm1081_vm3, %v1329_v35 }
 0x6e3   : > { %3083 = vmatpush3.bf16.msra.mxu1 %v3264_v34  ;;  %3086 = vmatprep.mubr.msk.bf16.mxu1 %vm3525_vm0, %v3523_v6 }
 0x6e4   : > { %3084 = vmatprep.subr.bf16.mxu1 %v3523_v6  ;;  %3077 = vmatpush3.bf16.msra.mxu0 %v3267_v36 }
 0x6e5   : > { %3090 = vmatprep.subr.bf16.mxu0 %v3523_v6 }
 0x6e7   : > { %3085 = vmatpush3.bf16.msra.mxu1 %v3265_v37 }
 0x6e8   : > { %3096 = vmatprep.subr.bf16.mxu1 %v3523_v6 }
 0x6ea   : > { %3087 = vmatmul.mubr.msk.bf16.vlgmr.msra.gmra.mrb[20].mxu1 %vm986_vm1, %v1199_v51 }
 0x6eb   : > { %3098 = vmatprep.mubr.msk.bf16.mxu1 %vm3525_vm0, %v3523_v6 }
 0x6f0   : > { %3097 = vmatpush3.bf16.xpose.msra.mxu1 %v1599_v40  ;;  %v3268_v40 = vld [vmem:[%s3781_s29 + $0x20] sm:$0xff]  }
 0x6f1   : > { %3108 = vmatprep.subr.bf16.mxu1 %v3523_v6 }
 0x6f7   : > { %3099 = vmatmul.mubr.msk.bf16.vlgmr.msra.gmra.mrb[24].mxu1 %vm986_vm1, %v1592_v41 }
 0x6f8   : > { %3110 = vmatprep.mubr.msk.bf16.mxu1 %vm3525_vm0, %v3523_v6 }
 0x7b1   : > { %v1373_v42 = vpop.f32.mrb[16].mxu0 }
 0x7b2   : > { %v3066_v43 = vpop.f32.mrb[17].mxu0 }
 0x7b3   : > { %v1376_v44 = vpop.f32.mrb[18].mxu0 }
 0x7b4   : > { %v3067_v45 = vpop.f32.mrb[19].mxu0 }
 0x7b5   : > { %v1422_v46 = vpop.f32.mrb[16].mxu1  ;;  %v3269_v45 = vld [vmem:[%s3781_s29 + $0x28] sm:$0xff]  }
 0x7b6   : > { %v1428_v47 = vpack.c.bf16 %v1422_v46, %v1373_v42  ;;  %v3072_v48 = vpop.f32.mrb[17].mxu1 }
 0x7b7   : > { %v1425_v49 = vpop.f32.mrb[18].mxu1 }
 0x7b8   : > { %v3073_v51 = vpop.f32.mrb[19].mxu1  ;;  %3079 = vmatmul.mubr.msk.bf16.vlgmr.msra.gmra.mrb[20].mxu0 %vm986_vm1, %v1428_v47 }
 0x7b9   : > { %3091 = vmatpush3.bf16.xpose.msra.mxu0 %v1549_v50  ;;  %3092 = vmatprep.mubr.msk.bf16.mxu0 %vm3525_vm0, %v3523_v6 }
 0x7ba   : > { %3102 = vmatprep.subr.bf16.mxu0 %v3523_v6 }
 0x7bd   : > { %v1534_v52 = vpop.f32.mrb[20].mxu1 }
 0x7be   : > { %v3088_v53 = vpop.f32.mrb[21].mxu1 }
 0x7bf   : > { %v1537_v55 = vpop.f32.mrb[22].mxu1 }
 0x7c0   : > { %v3089_v56 = vpop.f32.mrb[23].mxu1  ;;  %3093 = vmatmul.mubr.msk.bf16.vlgmr.msra.gmra.mrb[24].mxu0 %vm986_vm1, %v1542_v54 }
 0x7c1   : > { %3104 = vmatprep.mubr.msk.bf16.mxu0 %vm3525_vm0, %v3523_v6 }
 0x7ca   : > { %v1635_v57 = vpop.f32.mrb[24].mxu1 }
 0x7cb   : > { %v1642_v58 = vmul.f32 0.17677669, %v1635_v57  ;;  %v3100_v60 = vpop.f32.mrb[25].mxu1 }
 0x7cc   : > { %v1638_v61 = vpop.f32.mrb[26].mxu1 }
 0x7cd   : > { %v3101_v62 = vpop.f32.mrb[27].mxu1  ;;  %v1646_v63 = vsel %vm1081_vm3, %v1642_v58, -inf }
 0x7ce   : > { %1647 = vmax.xlane.f32.xlu1 %v1646_v63 }
 0x7df   : > { %1715 = vrot.lane.b32.xlu1 %v3911_v5, %s3527_s18 }
 0x7e3   : > { %1824 = vrot.lane.b32.xlu1 %v3897_v59, %s3528_s30 }
 0x7e7   : > { %1874 = vrot.lane.b32.xlu1 %v3899_v0, %s3528_s30 }
 0x7eb   : > { %1872 = vrot.lane.b32.xlu1 %v3913_v7, %s3528_s30 }
 0x85b   : > { %v1648_v1 = vpop.xlane.xlu1 %1647 }
 0x85c   : > { %v1650_v9 = vsub.f32 %v1642_v58, %v1648_v1 }
 0x85e   : > { %v1653_v10 = vmul.f32 1.442695, %v1650_v9 }
 0x85f   : > { %v1716_v2 = vpop.permute.xlu1 %1715 }
 0x860   : > { %v1721_v8 = vsel %vm1109_vm2, %v1716_v2, 0  ;;  %3332 = vpow2.f32 %v1653_v10 }
 0x861   : > { %3109 = vmatpush3.bf16.msra.mxu1 %v1721_v8 }
 0x862   : > { %3122 = vmatprep.subr.bf16.mxu1 %v3523_v6 }
 0x863   : > { %v1825_v30 = vpop.permute.xlu1 %1824 }
 0x864   : > { %v1830_v33 = vsel %vm986_vm1, %v1825_v30, 0 }
 0x86a   : > { %v3333_v20 = vpop.eup %3332 }
 0x86b   : > { %v1658_v21 = vsel %vm1081_vm3, %v3333_v20, 0.0 }
 0x88b   : > { %v1478_v11 = vpop.f32.mrb[20].mxu0 }
 0x88c   : > { %v4027_v12 = vadd.f32 %v1534_v52, %v1478_v11  ;;  %v3080_v13 = vpop.f32.mrb[21].mxu0  ;;  %v1875_v52 = vpop.permute.xlu1 %1874 }
 0x88d   : > { %v1481_v59 = vpop.f32.mrb[22].mxu0  ;;  %v1880_v57 = vsel %vm986_vm1, %v1875_v52, 0 }
 0x88e   : > { %v4029_v14 = vadd.f32 %v1537_v55, %v1481_v59  ;;  %v3081_v0 = vpop.f32.mrb[23].mxu0 }
 0x890   : > { %v1873_v60 = vpop.permute.xlu1 %1872 }
 0x893   : > { %v1585_v15 = vpop.f32.mrb[24].mxu0 }
 0x894   : > { %v1641_v7 = vmul.f32 0.17677669, %v1585_v15  ;;  %v3094_v16 = vpop.f32.mrb[25].mxu0 }
 0x895   : > { %v1588_v17 = vpop.f32.mrb[26].mxu0 }
 0x896   : > { %v3095_v18 = vpop.f32.mrb[27].mxu0  ;;  %v1643_v19 = vsel %vm1081_vm3, %v1641_v7, -inf }
 0x897   : > { %1644 = vmax.xlane.f32.xlu0 %v1643_v19 }
 0x89b   : > { %1659 = vadd.xlane.f32.xlu0 %v1658_v21 }
 0x924   : > { %v1645_v22 = vpop.xlane.xlu0 %1644 }
 0x925   : > { %v1649_v23 = vsub.f32 %v1641_v7, %v1645_v22 }
 0x927   : > { %v1651_v24 = vmul.f32 1.442695, %v1649_v23 }
 0x928   : > { %v1660_v25 = vpop.xlane.xlu0 %1659 }
 0x929   : > { %3334 = vpow2.f32 %v1651_v24 }
 0x92a   : > { %3336 = vrcp.f32 %v1660_v25 }
 0x933   : > { %v3335_v26 = vpop.eup %3334 }
 0x934   : > { %v3337_v27 = vpop.eup %3336  ;;  %v1655_v28 = vsel %vm1081_vm3, %v3335_v26, 0.0 }
 0x935   : > { %v1664_v29 = vmul.f32 %v3337_v27, %v3333_v20  ;;  %1656 = vadd.xlane.f32.xlu0 %v1655_v28 }
 0x937   : > { %v1666_v31 = vpack.c.bf16 %v1664_v29, %v1664_v29 }
 0x939   : > { %3111 = vmatmul.mubr.msk.bf16.vlgmr.msra.gmra.mrb[28].mxu1 %vm1081_vm3, %v1666_v31 }
 0x93a   : > { %3123 = vmatpush3.bf16.xpose.msra.mxu1 %v1830_v33  ;;  %3124 = vmatprep.mubr.msk.bf16.mxu1 %vm3525_vm0, %v3523_v6  ;;  %v3270_v33 = vld [vmem:[%s3781_s29 + $0x30] sm:$0xff]  }
 0x93b   : > { %3134 = vmatprep.subr.bf16.mxu1 %v3523_v6 }
 0x94b   : > { %1667 = vrot.lane.b32.xlu0 %v3906_v3, %s3527_s18 }
 0x94f   : > { %1822 = vrot.lane.b32.xlu0 %v3909_v4, %s3528_s30 }
 0x9c2   : > { %v1657_v34 = vpop.xlane.xlu0 %1656 }
 0x9c3   : > { %3338 = vrcp.f32 %v1657_v34  ;;  %v3271_v34 = vld [vmem:[%s3781_s29 + $0x38] sm:$0xff]  }
 0x9c6   : > { %v1668_v35 = vpop.permute.xlu0 %1667 }
 0x9c7   : > { %v1673_v36 = vsel %vm1109_vm2, %v1668_v35, 0 }
 0x9c8   : > { %3103 = vmatpush3.bf16.msra.mxu0 %v1673_v36 }
 0x9c9   : > { %3114 = vmatprep.subr.bf16.mxu0 %v3523_v6 }
 0x9ca   : > { %v1823_v37 = vpop.permute.xlu0 %1822 }
 0x9cb   : > { %3125 = vmatmul.mubr.msk.bf16.vlgmr.msra.gmra.mrb[32].mxu1 %vm986_vm1, %v1823_v37 }
 0x9cc   : > { %3136 = vmatprep.mubr.msk.bf16.mxu1 %vm3525_vm0, %v3523_v6 }
 0x9cd   : > { %v3339_v38 = vpop.eup %3338 }
 0x9ce   : > { %v1663_v39 = vmul.f32 %v3339_v38, %v3335_v26 }
 0x9d0   : > { %v1665_v41 = vpack.c.bf16 %v1663_v39, %v1663_v39 }
 0x9d2   : > { %3105 = vmatmul.mubr.msk.bf16.vlgmr.msra.gmra.mrb[28].mxu0 %vm1081_vm3, %v1665_v41 }
 0x9d3   : > { %3115 = vmatpush3.bf16.msra.mxu0 %v3268_v40  ;;  %3118 = vmatprep.mubr.msk.bf16.mxu0 %vm3525_vm0, %v3523_v6 }
 0x9d4   : > { %3116 = vmatprep.subr.bf16.mxu0 %v3523_v6 }
 0x9d7   : > { %3117 = vmatpush3.bf16.msra.mxu0 %v3269_v45  ;;  %v2887_v45 = vld [vmem:[%s4252_s19] ss:$0 sm:$0xff] }
 0x9d8   : > { %3128 = vmatprep.subr.bf16.mxu0 %v3523_v6 }
 0xa0c   : > { %v1757_v4 = vpop.f32.mrb[28].mxu1 }
 0xa0d   : > { %v3112_v42 = vpop.f32.mrb[29].mxu1 }
 0xa0e   : > { %v1760_v43 = vpop.f32.mrb[30].mxu1 }
 0xa0f   : > { %v3113_v44 = vpop.f32.mrb[31].mxu1 }
 0xa9e   : > { %v1866_v46 = vpop.f32.mrb[32].mxu1 }
 0xa9f   : > { %v1922_v47 = vmul.f32 0.17677669, %v1866_v46  ;;  %v3126_v48 = vpop.f32.mrb[33].mxu1  ;;  %v3368_v46 = vld [vmem:[#allocation2] sm:$0xff] }
 0xaa0   : > { %v1869_v49 = vpop.f32.mrb[34].mxu1 }
 0xaa1   : > { %v3127_v50 = vpop.f32.mrb[35].mxu1  ;;  %v1924_v51 = vsel %vm1081_vm3, %v1922_v47, -inf }
 0xaa2   : > { %1925 = vmax.xlane.f32.xlu0 %v1924_v51  ;;  %v3369_v50 = vld [vmem:[#allocation2 + $0x8] sm:$0xff] }
 0xaa5   : > { %v1709_v53 = vpop.f32.mrb[28].mxu0 }
 0xaa6   : > { %v1763_v54 = vpack.c.bf16 %v1757_v4, %v1709_v53  ;;  %v3106_v55 = vpop.f32.mrb[29].mxu0 }
 0xaa7   : > { %v1712_v56 = vpop.f32.mrb[30].mxu0  ;;  %v3274_v55 = vld [vmem:[%s3815_s27 + $0x4] ss:$8 sps:$4 sm:$0xff]  }
 0xaa8   : > { %v3107_v58 = vpop.f32.mrb[31].mxu0  ;;  %3119 = vmatmul.mubr.msk.bf16.vlgmr.msra.gmra.mrb[32].mxu0 %vm986_vm1, %v1763_v54  ;;  %v3272_v54 = vld [vmem:[%s3815_s27] ss:$8 sps:$4 sm:$0xff]   ;;  %v3277_v56 = vld [vmem:[%s3815_s27 + $0x14] ss:$8 sps:$4 sm:$0xff]  }
 0xaa9   : > { %3129 = vmatpush3.bf16.xpose.msra.mxu0 %v1880_v57  ;;  %3130 = vmatprep.mubr.msk.bf16.mxu0 %vm3525_vm0, %v3523_v6  ;;  %v3275_v57 = vld [vmem:[%s3815_s27 + $0x10] ss:$8 sps:$4 sm:$0xff]  }
 0xaaa   : > { %3140 = vmatprep.subr.bf16.mxu0 %v3523_v6 }
 0xab0   : > { %3131 = vmatmul.mubr.msk.bf16.vlgmr.msra.gmra.mrb[36].mxu0 %vm986_vm1, %v1873_v60 }
 0xab1   : > { %3142 = vmatprep.mubr.msk.bf16.mxu0 %vm3525_vm0, %v3523_v6 }
 0xb2f   : > { %v1926_v61 = vpop.xlane.xlu0 %1925 }
 0xb30   : > { %v1930_v62 = vsub.f32 %v1922_v47, %v1926_v61 }
 0xb32   : > { %v1932_v63 = vmul.f32 1.442695, %v1930_v62 }
 0xb34   : > { %3340 = vpow2.f32 %v1932_v63 }
 0xb3e   : > { %v3341_v1 = vpop.eup %3340 }
 0xb3f   : > { %v1936_v2 = vsel %vm1081_vm3, %v3341_v1, 0.0 }
 0xb40   : > { %1937 = vadd.xlane.f32.xlu0 %v1936_v2 }
 0xb7b   : > { %v1813_v8 = vpop.f32.mrb[32].mxu0 }
 0xb7c   : > { %v1820_v9 = vadd.f32 %v1813_v8, %v4027_v12  ;;  %v3120_v10 = vpop.f32.mrb[33].mxu0 }
 0xb7d   : > { %v1816_v11 = vpop.f32.mrb[34].mxu0  ;;  %v3278_v10 = vld [vmem:[%s3815_s27 + $0x20] ss:$8 sps:$4 sm:$0xff]  }
 0xb7e   : > { %v1821_v13 = vadd.f32 %v1816_v11, %v4029_v14  ;;  %v3121_v59 = vpop.f32.mrb[35].mxu0  ;;  %v3283_v11 = vld [vmem:[%s3815_s27 + $0x34] ss:$8 sps:$4 sm:$0xff]  }
 0xb7f   : > { %v3286_v59 = vld [vmem:[%s3815_s27 + $0x44] ss:$8 sps:$4 sm:$0xff]  }
 0xb83   : > { %v1916_v0 = vpop.f32.mrb[36].mxu0 }
 0xb84   : > { %v1923_v15 = vmul.f32 0.17677669, %v1916_v0  ;;  %v3132_v7 = vpop.f32.mrb[37].mxu0  ;;  %v3284_v0 = vld [vmem:[%s3815_s27 + $0x40] ss:$8 sps:$4 sm:$0xff]  }
 0xb85   : > { %v1919_v16 = vpop.f32.mrb[38].mxu0  ;;  %v3287_v7 = vld [vmem:[%s3815_s27 + $0x50] ss:$8 sps:$4 sm:$0xff]  }
 0xb86   : > { %v3133_v17 = vpop.f32.mrb[39].mxu0  ;;  %v1927_v18 = vsel %vm1081_vm3, %v1923_v15, -inf  ;;  %v3290_v16 = vld [vmem:[%s3815_s27 + $0x60] ss:$8 sps:$4 sm:$0xff]  }
 0xb87   : > { %1928 = vmax.xlane.f32.xlu1 %v1927_v18  ;;  %v3292_v17 = vld [vmem:[%s3815_s27 + $0x64] ss:$8 sps:$4 sm:$0xff]   ;;  %v3295_v18 = vld [vmem:[%s3815_s27 + $0x74] ss:$8 sps:$4 sm:$0xff]  }
 0xb98   : > { %1996 = vrot.lane.b32.xlu1 %v3911_v5, %s3528_s30 }
 0xbcd   : > { %v1938_v24 = vpop.xlane.xlu0 %1937 }
 0xc14   : > { %v1929_v19 = vpop.xlane.xlu1 %1928 }
 0xc15   : > { %v1931_v20 = vsub.f32 %v1923_v15, %v1929_v19  ;;  %v3289_v15 = vld [vmem:[%s3815_s27 + $0x54] ss:$8 sps:$4 sm:$0xff]   ;;  %v3293_v19 = vld [vmem:[%s3815_s27 + $0x70] ss:$8 sps:$4 sm:$0xff]  }
 0xc17   : > { %v1934_v21 = vmul.f32 1.442695, %v1931_v20 }
 0xc18   : > { %v1997_v12 = vpop.permute.xlu1 %1996 }
 0xc19   : > { %3342 = vpow2.f32 %v1934_v21  ;;  %v2002_v22 = vsel %vm1109_vm2, %v1997_v12, 0 }
 0xc1a   : > { %3141 = vmatpush3.bf16.msra.mxu0 %v2002_v22  ;;  %3344 = vrcp.f32 %v1938_v24 }
 0xc1b   : > { %2263 = vmatprep.subr.bf16.mxu0 %v3274_v55 }
 0xc23   : > { %v3343_v14 = vpop.eup %3342 }
 0xc24   : > { %v1939_v23 = vsel %vm1081_vm3, %v3343_v14, 0.0  ;;  %v3345_v25 = vpop.eup %3344 }
 0xc25   : > { %1940 = vadd.xlane.f32.xlu0 %v1939_v23  ;;  %v1944_v26 = vmul.f32 %v3345_v25, %v3341_v1  ;;  %v2888_v25 = vld [vmem:[%s4253_s17] ss:$0 sm:$0xff] }
 0xc27   : > { %v1946_v29 = vpack.c.bf16 %v1944_v26, %v1944_v26 }
 0xc3b   : > { %1948 = vrot.lane.b32.xlu0 %v3906_v3, %s3528_s30 }
 0xcb2   : > { %v1941_v5 = vpop.xlane.xlu0 %1940 }
 0xcb3   : > { %3346 = vrcp.f32 %v1941_v5 }
 0xcb6   : > { %v1949_v27 = vpop.permute.xlu0 %1948 }
 0xcb7   : > { %v1954_v28 = vsel %vm1109_vm2, %v1949_v27, 0 }
 0xcb8   : > { %3135 = vmatpush3.bf16.msra.mxu1 %v1954_v28 }
 0xcb9   : > { %3146 = vmatprep.subr.bf16.mxu1 %v3523_v6 }
 0xcbb   : > { %3137 = vmatmul.mubr.msk.bf16.vlgmr.msra.gmra.mrb[36].mxu1 %vm1081_vm3, %v1946_v29  ;;  %v2889_v29 = vld [vmem:[%s648_s12] ss:$0 sm:$0xff] }
 0xcbc   : > { %3150 = vmatprep.mubr.msk.bf16.mxu1 %vm3525_vm0, %v3523_v6  ;;  %3147 = vmatpush3.bf16.msra.mxu1 %v3270_v33 }
 0xcbd   : > { %v3347_v3 = vpop.eup %3346  ;;  %3148 = vmatprep.subr.bf16.mxu1 %v3523_v6 }
 0xcbe   : > { %v1945_v30 = vmul.f32 %v3347_v3, %v3343_v14 }
 0xcc0   : > { %v1947_v31 = vpack.c.bf16 %v1945_v30, %v1945_v30  ;;  %3149 = vmatpush3.bf16.msra.mxu1 %v3271_v34  ;;  %v3296_v34 = vld [vmem:[%s3827_s16 + $0x40] sm:$0xff]  }
 0xcc1   : > { %2984 = vmatprep.subr.bf16.mxu1 %v3296_v34 }
 0xcc2   : > { %3143 = vmatmul.mubr.msk.bf16.vlgmr.msra.gmra.mrb[40].mxu0 %vm1081_vm3, %v1947_v31 }
 0xcc3   : > { %2295 = vmatprep.mubr.bf16.mxu0 %v3524_v32  ;;  %2264 = vmatpush1.bf16.msra.mxu0 %v3272_v54 }
 0xcc4   : > { %2265 = vmatprep.subr.bf16.mxu0 %v3277_v56 }
 0xcc7   : > { %2266 = vmatpush1.bf16.msra.mxu0 %v3275_v57 }
 0xd8e   : > { %v1990_v35 = vpop.f32.mrb[36].mxu1 }
 0xd8f   : > { %v3138_v36 = vpop.f32.mrb[37].mxu1 }
 0xd90   : > { %v1993_v37 = vpop.f32.mrb[38].mxu1  ;;  %v3298_v36 = vld [vmem:[%s3827_s16 + $0x48] sm:$0xff]  }
 0xd91   : > { %v3139_v38 = vpop.f32.mrb[39].mxu1  ;;  %v3299_v37 = vld [vmem:[%s3827_s16 + $0x8] sm:$0xff]  }
 0xd92   : > { %v3300_v38 = vld [vmem:[%s3827_s16 + $0x50] sm:$0xff]  }
 0xd95   : > { %v2038_v39 = vpop.f32.mrb[40].mxu0 }
 0xd96   : > { %v2044_v40 = vpack.c.bf16 %v2038_v39, %v1990_v35  ;;  %v3144_v41 = vpop.f32.mrb[41].mxu0  ;;  %v3297_v35 = vld [vmem:[%s3827_s16] sm:$0xff]   ;;  %v3301_v39 = vld [vmem:[%s3827_s16 + $0x10] sm:$0xff]  }
 0xd97   : > { %v2041_v4 = vpop.f32.mrb[42].mxu0  ;;  %v3303_v41 = vld [vmem:[%s3827_s16 + $0x18] sm:$0xff]  }
 0xd98   : > { %v3145_v42 = vpop.f32.mrb[43].mxu0  ;;  %3151 = vmatmul.mubr.msk.bf16.vlgmr.msra.gmra.mrb[40].mxu1 %vm986_vm1, %v2044_v40  ;;  %v3302_v40 = vld [vmem:[%s3827_s16 + $0x58] sm:$0xff]   ;;  %v3304_v4 = vld [vmem:[%s3827_s16 + $0x60] sm:$0xff]  }
 0xd99   : > { %2985 = vmatpush3.bf16.msra.mxu1 %v3297_v35  ;;  %v3305_v42 = vld [vmem:[%s3827_s16 + $0x20] sm:$0xff]  }
 0xd9a   : > { %2986 = vmatprep.subr.bf16.mxu1 %v3298_v36 }
 0xd9d   : > { %2987 = vmatpush3.bf16.msra.mxu1 %v3299_v37 }
 0xd9e   : > { %2988 = vmatprep.subr.bf16.mxu1 %v3300_v38 }
 0xda1   : > { %2989 = vmatpush3.bf16.msra.mxu1 %v3301_v39 }
 0xda2   : > { %2990 = vmatprep.subr.bf16.mxu1 %v3302_v40 }
 0xda5   : > { %2991 = vmatpush3.bf16.msra.mxu1 %v3303_v41 }
 0xda6   : > { %2992 = vmatprep.subr.bf16.mxu1 %v3304_v4 }
 0xda9   : > { %2993 = vmatpush3.bf16.msra.mxu1 %v3305_v42 }
 0xe6b   : > { %v2094_v32 = vpop.f32.mrb[40].mxu1 }
 0xe6c   : > { %v2101_v43 = vadd.f32 %v2094_v32, %v1820_v9  ;;  %v3152_v6 = vpop.f32.mrb[41].mxu1  ;;  %v3280_v9 = vld [vmem:[%s3815_s27 + $0x24] ss:$8 sps:$4 sm:$0xff]   ;;  %v3306_v32 = vld [vmem:[%s3827_s16 + $0x68] sm:$0xff]  }
 0xe6d   : > { %v2097_v44 = vpop.f32.mrb[42].mxu1  ;;  %2267 = vmatprep.subr.bf16.mxu0 %v3280_v9  ;;  %2994 = vmatprep.subr.bf16.mxu1 %v3306_v32  ;;  %v3308_v6 = vld [vmem:[%s3827_s16 + $0x70] sm:$0xff]  }
 0xe6e   : > { %v2103_v47 = vadd.f32 %v3368_v46, %v2101_v43  ;;  %v2102_v48 = vadd.f32 %v2097_v44, %v1821_v13  ;;  %v3153_v49 = vpop.f32.mrb[43].mxu1  ;;  %2268 = vmatpush1.bf16.msra.mxu0 %v3278_v10  ;;  %v3281_v13 = vld [vmem:[%s3815_s27 + $0x30] ss:$8 sps:$4 sm:$0xff]   ;;  %v3309_v44 = vld [vmem:[%s3827_s16 + $0x30] sm:$0xff]   ;;  %v3311_v46 = vld [vmem:[%s3827_s16 + $0x38] sm:$0xff]  }
 0xe6f   : > { %2269 = vmatprep.subr.bf16.mxu0 %v3283_v11  ;;  %v3307_v43 = vld [vmem:[%s3827_s16 + $0x28] sm:$0xff]  }
 0xe70   : > { %v2104_v51 = vadd.f32 %v3369_v50, %v2102_v48  ;;  %v4090_v52 = vadd.f32 %v2887_v45, %v2103_v47  ;;  %2995 = vmatpush3.bf16.msra.mxu1 %v3307_v43  ;;  %v2173_v47 = vlaneseq  ;;  %v2171_v50 = vld [vmem:[%s3821_s3] sm:$0x3] }
 0xe71   : > { %2996 = vmatprep.subr.bf16.mxu1 %v3308_v6 }
 0xe72   : > { %2116 = vadd.xlane.f32.xlu1 %v4090_v52  ;;  %v4093_v53 = vadd.f32 %v2887_v45, %v2104_v51  ;;  %2270 = vmatpush1.bf16.msra.mxu0 %v3281_v13  ;;  %v3310_v45 = vld [vmem:[%s3827_s16 + $0x78] sm:$0xff]   ;;  %v2174_v48 = vshrl.u32 %v2173_v47, 7 }
 0xe73   : > { %2271 = vmatprep.subr.bf16.mxu0 %v3286_v59 }
 0xe74   : > { %2118 = vadd.xlane.f32.xlu0 %v4093_v53  ;;  %2997 = vmatpush3.bf16.msra.mxu1 %v3309_v44  ;;  %v2175_v49 = vsub.s32 0, %v2174_v48  ;;  %v2179_v51 = vsub.s32 1, %v2174_v48 }
 0xe75   : > { %2998 = vmatprep.subr.bf16.mxu1 %v3310_v45 }
 0xe76   : > { %2272 = vmatpush1.bf16.msra.mxu0 %v3284_v0  ;;  %v2176_v54 = vrot.slane %v2171_v50, %v2175_v49  ;;  %v2180_v55 = vrot.slane %v2171_v50, %v2179_v51 }
 0xe77   : > { %2273 = vmatprep.subr.bf16.mxu0 %v3289_v15 }
 0xe78   : > { %2999 = vmatpush3.bf16.msra.mxu1 %v3311_v46 }
 0xe7a   : > { %2274 = vmatpush1.bf16.msra.mxu0 %v3287_v7 }
 0xe7b   : > { %2275 = vmatprep.subr.bf16.mxu0 %v3292_v17 }
 0xe7e   : > { %2276 = vmatpush1.bf16.msra.mxu0 %v3290_v16 }
 0xe7f   : > { %2277 = vmatprep.subr.bf16.mxu0 %v3295_v18 }
 0xe82   : > { %2278 = vmatpush1.bf16.msra.mxu0 %v3293_v19 }
 0xeff   : > { %v2117_v58 = vpop.xlane.xlu1 %2116 }
 0xf00   : > { %v2120_v60 = vmul.f32 0.0078125, %v2117_v58 }
 0xf01   : > { %v2119_v61 = vpop.xlane.xlu0 %2118 }
 0xf02   : > { %v2122_v62 = vsub.f32 %v4090_v52, %v2120_v60  ;;  %v2121_v63 = vmul.f32 0.0078125, %v2119_v61 }
 0xf04   : > { %v2123_v1 = vsub.f32 %v4093_v53, %v2121_v63  ;;  %v2124_v2 = vmul.f32 %v2122_v62, %v2122_v62 }
 0xf06   : > { %2126 = vadd.xlane.f32.xlu0 %v2124_v2  ;;  %v2125_v8 = vmul.f32 %v2123_v1, %v2123_v1 }
 0xf08   : > { %2128 = vadd.xlane.f32.xlu1 %v2125_v8 }
 0xf93   : > { %v2127_v20 = vpop.xlane.xlu0 %2126 }
 0xf94   : > { %v2130_v21 = vmul.f32 0.0078125, %v2127_v20 }
 0xf95   : > { %v2129_v12 = vpop.xlane.xlu1 %2128 }
 0xf96   : > { %v2132_v22 = vadd.f32 1e-05, %v2130_v21  ;;  %v2131_v14 = vmul.f32 0.0078125, %v2129_v12 }
 0xf98   : > { %3348 = vrsqrt.f32 %v2132_v22  ;;  %v2133_v23 = vadd.f32 1e-05, %v2131_v14 }
 0xf9a   : > { %3350 = vrsqrt.f32 %v2133_v23 }
 0xfa2   : > { %v3349_v24 = vpop.eup %3348 }
 0xfa3   : > { %v2136_v5 = vmul.f32 %v3349_v24, %v2122_v62 }
 0xfa4   : > { %v3351_v26 = vpop.eup %3350 }
 0xfa5   : > { %v2137_v27 = vmul.f32 %v3351_v26, %v2123_v1  ;;  %v2144_v28 = vmul.f32 %v2888_v25, %v2136_v5 }
 0xfa7   : > { %v2145_v3 = vmul.f32 %v2888_v25, %v2137_v27  ;;  %v2152_v30 = vadd.f32 %v2889_v29, %v2144_v28 }
 0xfa9   : > { %v2153_v31 = vadd.f32 %v2889_v29, %v2145_v3 }
 0xfab   : > { %v2154_v33 = vpack.c.bf16 %v2153_v31, %v2152_v30 }
 0xfad   : > { %2296 = vmatmul.mubr.bf16.vlgmr.msra.gmra.mrb[44].mxu0 %v2154_v33 }
0x1080   : > { %v2297_v56 = vpop.f32.mrb[44].mxu0 }
0x1081   : > { %v4141_v57 = vadd.f32 %v2297_v56, %v2176_v54  ;;  %v2299_v58 = vpop.f32.mrb[45].mxu0 }
0x1082   : > { %v4143_v60 = vadd.f32 %v2299_v58, %v2180_v55  ;;  %v2301_v61 = vpop.f32.mrb[46].mxu0 }
0x1083   : > { %v4146_v62 = vmul.f32 0.70710677, %v4141_v57  ;;  %v4148_v63 = vadd.f32 %v2301_v61, %v2176_v54  ;;  %v2303_v1 = vpop.f32.mrb[47].mxu0 }
0x1084   : > { %v4151_v2 = vmul.f32 0.70710677, %v4143_v60  ;;  %v4153_v8 = vadd.f32 %v2303_v1, %v2180_v55 }
0x1085   : > { %v2314_v9 = vand.u32 2147483647, %v4146_v62  ;;  %v4157_v10 = vmul.f32 0.70710677, %v4148_v63  ;;  %vm2394_vm4 = vcmp.ge.f32.partialorder %v4146_v62, 0.0 }
0x1086   : > { %v2315_v11 = vand.u32 2147483647, %v4151_v2  ;;  %v4161_v13 = vmul.f32 0.70710677, %v4153_v8  ;;  %vm2395_vm5 = vcmp.ge.f32.partialorder %v4151_v2, 0.0 }
0x1087   : > { %v2318_v59 = vmul.f32 0.3275911, %v2314_v9  ;;  %v2316_v0 = vand.u32 2147483647, %v4157_v10  ;;  %v2370_v12 = vsub.f32 0.0, %v2314_v9  ;;  %vm2396_vm6 = vcmp.ge.f32.partialorder %v4157_v10, 0.0 }
0x1088   : > { %v2319_v15 = vmul.f32 0.3275911, %v2315_v11  ;;  %v2317_v7 = vand.u32 2147483647, %v4161_v13  ;;  %v2371_v22 = vsub.f32 0.0, %v2315_v11  ;;  %vm2397_vm7 = vcmp.ge.f32.partialorder %v4161_v13, 0.0 }
0x1089   : > { %v2322_v16 = vadd.f32 1.0, %v2318_v59  ;;  %v2320_v17 = vmul.f32 0.3275911, %v2316_v0  ;;  %v2374_v23 = vmul.f32 %v2370_v12, %v2314_v9  ;;  %v2372_v24 = vsub.f32 0.0, %v2316_v0 }
0x108a   : > { %v2323_v18 = vadd.f32 1.0, %v2319_v15  ;;  %v2321_v19 = vmul.f32 0.3275911, %v2317_v7  ;;  %v2375_v26 = vmul.f32 %v2371_v22, %v2315_v11  ;;  %v2373_v28 = vsub.f32 0.0, %v2317_v7 }
0x108b   : > { %3352 = vrcp.f32 %v2322_v16  ;;  %v2324_v20 = vadd.f32 1.0, %v2320_v17  ;;  %v2378_v30 = vmul.f32 1.442695, %v2374_v23  ;;  %v2376_v33 = vmul.f32 %v2372_v24, %v2316_v0 }
0x108c   : > { %3354 = vrcp.f32 %v2323_v18  ;;  %v2325_v21 = vadd.f32 1.0, %v2321_v19  ;;  %v2380_v35 = vmul.f32 1.442695, %v2375_v26  ;;  %v2377_v39 = vmul.f32 %v2373_v28, %v2317_v7 }
0x108d   : > { %3356 = vrcp.f32 %v2324_v20  ;;  %v2382_v32 = vmul.f32 1.442695, %v2376_v33 }
0x108e   : > { %3358 = vrcp.f32 %v2325_v21  ;;  %v2384_v46 = vmul.f32 1.442695, %v2377_v39  ;;  %v2308_v39 = vmul.f32 0.5, %v4148_v63 }
0x108f   : > { %3360 = vpow2.f32 %v2378_v30 }
0x1090   : > { %3362 = vpow2.f32 %v2380_v35 }
0x1091   : > { %3364 = vpow2.f32 %v2382_v32 }
0x1092   : > { %3366 = vpow2.f32 %v2384_v46 }
0x1095   : > { %v3353_v14 = vpop.eup %3352 }
0x1096   : > { %v3355_v25 = vpop.eup %3354  ;;  %v2334_v5 = vmul.f32 1.0614054, %v3353_v14 }
0x1097   : > { %v2335_v27 = vmul.f32 1.0614054, %v3355_v25  ;;  %v3357_v3 = vpop.eup %3356 }
0x1098   : > { %v2338_v29 = vadd.f32 -1.4531521, %v2334_v5  ;;  %v2336_v36 = vmul.f32 1.0614054, %v3357_v3  ;;  %v3359_v37 = vpop.eup %3358 }
0x1099   : > { %v2339_v31 = vadd.f32 -1.4531521, %v2335_v27  ;;  %v2337_v4 = vmul.f32 1.0614054, %v3359_v37  ;;  %v3361_v15 = vpop.eup %3360 }
0x109a   : > { %v2342_v34 = vmul.f32 %v3353_v14, %v2338_v29  ;;  %v2340_v41 = vadd.f32 -1.4531521, %v2336_v36  ;;  %v3363_v16 = vpop.eup %3362 }
0x109b   : > { %v2343_v38 = vmul.f32 %v3355_v25, %v2339_v31  ;;  %v2341_v44 = vadd.f32 -1.4531521, %v2337_v4  ;;  %v3365_v23 = vpop.eup %3364 }
0x109c   : > { %v2346_v40 = vadd.f32 1.4214138, %v2342_v34  ;;  %v2344_v6 = vmul.f32 %v3357_v3, %v2340_v41  ;;  %v3367_v28 = vpop.eup %3366 }
0x109d   : > { %v2347_v42 = vadd.f32 1.4214138, %v2343_v38  ;;  %v2345_v49 = vmul.f32 %v3359_v37, %v2341_v44 }
0x109e   : > { %v2350_v43 = vmul.f32 %v3353_v14, %v2346_v40  ;;  %v2348_v48 = vadd.f32 1.4214138, %v2344_v6  ;;  %v2307_v40 = vmul.f32 0.5, %v4143_v60  ;;  %v2922_v60 = vld [vmem:[%s660_s0] ss:$0 sm:$0xff] }
0x109f   : > { %v2351_v45 = vmul.f32 %v3355_v25, %v2347_v42  ;;  %v2349_v55 = vadd.f32 1.4214138, %v2345_v49  ;;  %v2309_v42 = vmul.f32 0.5, %v4153_v8 }
0x10a0   : > { %v2354_v47 = vadd.f32 -0.28449672, %v2350_v43  ;;  %v2352_v54 = vmul.f32 %v3357_v3, %v2348_v48 }
0x10a1   : > { %v2355_v50 = vadd.f32 -0.28449672, %v2351_v45  ;;  %v2353_v1 = vmul.f32 %v3359_v37, %v2349_v55 }
0x10a2   : > { %v2358_v51 = vmul.f32 %v3353_v14, %v2354_v47  ;;  %v2356_v61 = vadd.f32 -0.28449672, %v2352_v54 }
0x10a3   : > { %v2359_v56 = vmul.f32 %v3355_v25, %v2355_v50  ;;  %v2357_v0 = vadd.f32 -0.28449672, %v2353_v1 }
0x10a4   : > { %v2362_v58 = vadd.f32 0.2548296, %v2358_v51  ;;  %v2360_v59 = vmul.f32 %v3357_v3, %v2356_v61 }
0x10a5   : > { %v2363_v9 = vadd.f32 0.2548296, %v2359_v56  ;;  %v2361_v19 = vmul.f32 %v3359_v37, %v2357_v0 }
0x10a6   : > { %v2366_v11 = vmul.f32 %v3353_v14, %v2362_v58  ;;  %v2364_v18 = vadd.f32 0.2548296, %v2360_v59 }
0x10a7   : > { %v2367_v7 = vmul.f32 %v3355_v25, %v2363_v9  ;;  %v2365_v22 = vadd.f32 0.2548296, %v2361_v19 }
0x10a8   : > { %v2386_v17 = vmul.f32 %v3361_v15, %v2366_v11  ;;  %v2368_v12 = vmul.f32 %v3357_v3, %v2364_v18  ;;  %v2306_v3 = vmul.f32 0.5, %v4141_v57 }
0x10a9   : > { %v2387_v20 = vmul.f32 %v3363_v16, %v2367_v7  ;;  %v2369_v27 = vmul.f32 %v3359_v37, %v2365_v22 }
0x10aa   : > { %v2390_v21 = vsub.f32 1.0, %v2386_v17  ;;  %v2388_v26 = vmul.f32 %v3365_v23, %v2368_v12 }
0x10ab   : > { %v2391_v24 = vsub.f32 1.0, %v2387_v20  ;;  %v2389_v25 = vmul.f32 %v3367_v28, %v2369_v27 }
0x10ac   : > { %v2398_v5 = vsub.f32 0.0, %v2390_v21  ;;  %v2392_v30 = vsub.f32 1.0, %v2388_v26 }
0x10ad   : > { %v2399_v14 = vsub.f32 0.0, %v2391_v24  ;;  %v2393_v34 = vsub.f32 1.0, %v2389_v25 }
0x10ae   : > { %v2402_v29 = vsel %vm2394_vm4, %v2390_v21, %v2398_v5  ;;  %v2400_v33 = vsub.f32 0.0, %v2392_v30 }
0x10af   : > { %v2403_v31 = vsel %vm2395_vm5, %v2391_v24, %v2399_v14  ;;  %v2406_v35 = vadd.f32 1.0, %v2402_v29  ;;  %v2401_v38 = vsub.f32 0.0, %v2393_v34 }
0x10b0   : > { %v2404_v36 = vsel %vm2396_vm6, %v2392_v30, %v2400_v33  ;;  %v2407_v37 = vadd.f32 1.0, %v2403_v31 }
0x10b1   : > { %v2408_v62 = vadd.f32 1.0, %v2404_v36  ;;  %v2405_v2 = vsel %vm2397_vm7, %v2393_v34, %v2401_v38  ;;  %v2410_v41 = vmul.f32 %v2406_v35, %v2306_v3 }
0x10b2   : > { %v2409_v32 = vadd.f32 1.0, %v2405_v2  ;;  %v2411_v10 = vmul.f32 %v2407_v37, %v2307_v40 }
0x10b3   : > { %v2412_v4 = vmul.f32 %v2408_v62, %v2308_v39 }
0x10b4   : > { %v2413_v57 = vmul.f32 %v2409_v32, %v2309_v42 }
0x10b5   : > { %v2414_v43 = vpack.c.bf16 %v2412_v4, %v2410_v41 }
0x10b6   : > { %v2415_v6 = vpack.c.bf16 %v2413_v57, %v2411_v10 }
0x10b8   : > { %2576 = vmatprep.mubr.bf16.mxu1 %v2415_v6 }
0x10b9   : > { %2577 = vmatmul.mubr.bf16.vlgmr.msra.gmra.mrb[44].mxu1 %v2414_v43 }
0x118c   : > { %v3000_v44 = vpop.f32.mrb[44].mxu1 }
0x118d   : > { %v3001_v63 = vpop.f32.mrb[45].mxu1 }
0x118e   : > { %v3002_v45 = vadd.f32 %v3001_v63, %v3000_v44  ;;  %v3003_v46 = vpop.f32.mrb[46].mxu1 }
0x118f   : > { %v3004_v13 = vpop.f32.mrb[47].mxu1 }
0x1190   : > { %v2585_v47 = vadd.f32 %v3002_v45, %v4090_v52  ;;  %v3005_v8 = vadd.f32 %v3004_v13, %v3003_v46  ;;  %2601 = sbr.rel (%p2923_p7) target bundleno = 4511 (0x119f), region = 88 }
0x1192   : > { %v2594_v48 = vadd.f32 %v2922_v60, %v2585_v47  ;;  %v2586_v49 = vadd.f32 %v3005_v8, %v4093_v53 }
0x1194   : > { %2596 = vst [vmem:[#allocation2] sm:$0xff] %v2594_v48  ;;  %v2595_v50 = vadd.f32 %v2922_v60, %v2586_v49 }
0x1196   : > { %2597 = vst [vmem:[#allocation2 + $0x8] sm:$0xff] %v2595_v50 }
0x119b   : > { %v2602_v51 = vld [vmem:[#allocation2] sm:$0xff] }
0x119c   : > { %2604 = vst [vmem:[%s4255_s20] sm:$0xff] %v2602_v51 }
0x119d   : > { %v2603_v54 = vld [vmem:[#allocation2 + $0x8] sm:$0xff] }
0x119e   : > { %2605 = vst [vmem:[%s4255_s20 + $0x8] sm:$0xff] %v2603_v54 }
0x119f PF: > { %s28_s26 = sadd.s32 1, %s3514_s26   ;;  %s4256_s11 = sld [smem:[#allocation10_spill]] }
0x11a0   : > { %p25_p10 = scmp.ge.s32.totalorder %s28_s26, 4   ;;  %s4257_s23 = sld [smem:[#allocation12_spill]] }
0x11a1   : > { %s4258_s18 = sld [smem:[#allocation11_spill]]  ;;  %s4259_s21 = smov %s3498_s22 }
0x11a2   : > { %s4261_s24 = smov %s3510_s25  ;;  %27 = sbr.rel (!%p25_p10) target bundleno = 13 (0xd), region = 167 }
0x11a5   : > { %s4260_s22 = smov %s4256_s11 }
0x11a7   : > { %s4262_s25 = smov %s4258_s18 }
0x11a9   :  { %2628 = vsyncpa [#allocation4], 1 }
0x11aa   :  { %2630 = vsyncpa [#allocation4 + $0x1], 1 }
0x11ab   :  { %2631 = vsyncpa [#allocation6], 1 }
0x11ac   :  { %2633 = vsyncpa [#allocation6 + $0x1], 1 }

</bundles_post_ra>
